<compile_context>
chip_gen: v7x
topology: tpu7x:2x2x1
jax: 0.10.0
libtpu: 0.0.40
codegen_flags: <defaults>
</compile_context>

<pallas_src>
import functools

import jax
import jax.numpy as jnp
from jax import lax
from jax.experimental import pallas as pl
from jax.experimental.pallas import tpu as pltpu  # noqa: F401  (TPU backend)


# ----------------------------- model config ---------------------------------
VOCAB = 128        # synthetic vocab (gpt2-large = 50257)
N_POS = 32         # max positions
D_MODEL = 32       # hidden size
N_HEAD = 4
D_HEAD = D_MODEL // N_HEAD
N_LAYER = 2
D_FF = 4 * D_MODEL
LN_EPS = 1e-5
NEG_INF = -1e9
MM_DTYPE = jnp.bfloat16    # MXU-native operand dtype; accumulation stays f32


# ------------------------------ kernel helpers -------------------------------
def _mm(a, b):
    """2-D MXU matmul, bf16 operands, f32 accumulation."""
    return jnp.dot(a.astype(MM_DTYPE), b.astype(MM_DTYPE),
                   preferred_element_type=jnp.float32)


def _layernorm(x, g, b):
    mean = jnp.mean(x, axis=-1, keepdims=True)
    var = jnp.mean((x - mean) ** 2, axis=-1, keepdims=True)
    return (x - mean) * lax.rsqrt(var + LN_EPS) * g + b


def _gelu(x):
    # GPT-2 tanh-approx GELU ("gelu_new"), computed in f32.
    return 0.5 * x * (1.0 + jnp.tanh(0.7978845608028654
                                     * (x + 0.044715 * x * x * x)))


# ------------------------------ fused kernel ---------------------------------
def _gpt2_forward_kernel(ids_ref, pad_bias_ref,
                         wte_ref, wpe_ref, lnf_g_ref, lnf_b_ref,
                         ln1_g_ref, ln1_b_ref, w_qkv_ref, b_qkv_ref,
                         w_o_ref, b_o_ref, ln2_g_ref, ln2_b_ref,
                         w_fc_ref, b_fc_ref, w_proj_ref, b_proj_ref,
                         logits_ref, *, batch, seq):
    n = batch * seq
    scale = 1.0 / (D_HEAD ** 0.5)

    # --- embeddings: one-hot @ wte on the MXU + positional table slice ---
    wte_bf16 = wte_ref[...].astype(MM_DTYPE)                      # (V, D) reused twice
    ids = ids_ref[...]                                            # (N, 1) int32
    vocab_iota = lax.broadcasted_iota(jnp.int32, (n, VOCAB), 1)
    onehot = (ids == vocab_iota).astype(MM_DTYPE)                 # (N, V)
    tok = jnp.dot(onehot, wte_bf16,
                  preferred_element_type=jnp.float32)             # (N, D) f32
    pos = wpe_ref[pl.ds(0, seq), :].astype(jnp.float32)           # (T, D)
    h = (tok.reshape(batch, seq, D_MODEL) + pos[None, :, :]).reshape(n, D_MODEL)

    # --- attention bias: causal (in-kernel iota) + padding (tiny input) ---
    row = lax.broadcasted_iota(jnp.int32, (seq, seq), 0)
    col = lax.broadcasted_iota(jnp.int32, (seq, seq), 1)
    causal = jnp.where(col <= row, 0.0, NEG_INF).astype(jnp.float32)  # (T, T)
    bias = pad_bias_ref[...] + causal[None, :, :]                 # (B, T, T) f32
    # NOTE: fully padded query rows get a uniform softmax (garbage logits for
    # padded positions) -- same semantics as the original masked forward.

    for l in range(N_LAYER):                                      # unrolled (N_LAYER=2)
        # ---------------- attention block ----------------
        x = _layernorm(h, ln1_g_ref[pl.ds(l, 1), :], ln1_b_ref[pl.ds(l, 1), :])
        qkv = _mm(x, w_qkv_ref[l]) + b_qkv_ref[pl.ds(l, 1), :]    # (N, 3D)
        w_o = w_o_ref[l]                                          # (D, D)
        attn = jnp.zeros((n, D_MODEL), jnp.float32)
        for hd in range(N_HEAD):
            lo = hd * D_HEAD
            q = qkv[:, lo:lo + D_HEAD].reshape(batch, seq, D_HEAD)
            k = qkv[:, D_MODEL + lo:D_MODEL + lo + D_HEAD].reshape(batch, seq, D_HEAD)
            v = qkv[:, 2 * D_MODEL + lo:2 * D_MODEL + lo + D_HEAD].reshape(batch, seq, D_HEAD)
            s = jnp.einsum('bqd,bkd->bqk',
                           q.astype(MM_DTYPE), k.astype(MM_DTYPE),
                           preferred_element_type=jnp.float32) * scale + bias
            s = s - jnp.max(s, axis=-1, keepdims=True)
            p = jnp.exp(s)
            p = p * pl.reciprocal(jnp.sum(p, axis=-1, keepdims=True), approx=True)
            a = jnp.einsum('bqk,bkd->bqd',
                           p.astype(MM_DTYPE), v.astype(MM_DTYPE),
                           preferred_element_type=jnp.float32)
            a = a.reshape(n, D_HEAD)
            # concat(heads) @ W_o  ==  sum_h  a_h @ W_o[h*Dh:(h+1)*Dh, :]
            attn = attn + _mm(a, w_o[lo:lo + D_HEAD, :])
        h = h + attn + b_o_ref[pl.ds(l, 1), :]                    # residual in-kernel

        # ---------------- MLP block ----------------
        x = _layernorm(h, ln2_g_ref[pl.ds(l, 1), :], ln2_b_ref[pl.ds(l, 1), :])
        ff = _gelu(_mm(x, w_fc_ref[l]) + b_fc_ref[pl.ds(l, 1), :])
        h = h + _mm(ff, w_proj_ref[l]) + b_proj_ref[pl.ds(l, 1), :]

    # --- final LN + tied LM head (contract dim 1 of x with dim 1 of wte) ---
    x = _layernorm(h, lnf_g_ref[...], lnf_b_ref[...])
    logits_ref[...] = lax.dot_general(
        x.astype(MM_DTYPE), wte_bf16,
        dimension_numbers=(((1,), (1,)), ((), ())),
        preferred_element_type=jnp.float32)                       # (N, V) lane-dense


# ------------------------------ parameters -----------------------------------
def init_params(key):
    def normal(k, shape, std=0.02):
        return (std * jax.random.normal(k, shape)).astype(jnp.float32)

    keys = jax.random.split(key, 6)
    return {
        "wte": normal(keys[0], (VOCAB, D_MODEL)),
        "wpe": normal(keys[1], (N_POS, D_MODEL)),
        "ln_f_g": jnp.ones((1, D_MODEL), jnp.float32),
        "ln_f_b": jnp.zeros((1, D_MODEL), jnp.float32),
        # per-layer weights stacked along a leading layer axis
        "ln1_g": jnp.ones((N_LAYER, D_MODEL), jnp.float32),
        "ln1_b": jnp.zeros((N_LAYER, D_MODEL), jnp.float32),
        "w_qkv": normal(keys[2], (N_LAYER, D_MODEL, 3 * D_MODEL)),
        "b_qkv": jnp.zeros((N_LAYER, 3 * D_MODEL), jnp.float32),
        "w_o": normal(keys[3], (N_LAYER, D_MODEL, D_MODEL)),
        "b_o": jnp.zeros((N_LAYER, D_MODEL), jnp.float32),
        "ln2_g": jnp.ones((N_LAYER, D_MODEL), jnp.float32),
        "ln2_b": jnp.zeros((N_LAYER, D_MODEL), jnp.float32),
        "w_fc": normal(keys[4], (N_LAYER, D_MODEL, D_FF)),
        "b_fc": jnp.zeros((N_LAYER, D_FF), jnp.float32),
        "w_proj": normal(keys[5], (N_LAYER, D_FF, D_MODEL)),
        "b_proj": jnp.zeros((N_LAYER, D_MODEL), jnp.float32),
    }


# ------------------------------ forward pass ----------------------------------
def qa_generator_forward(params, input_ids, attention_mask=None):
    """Equivalent of QAGenerator.forward: returns logits [B, T, VOCAB]."""
    bsz, t = input_ids.shape
    n = bsz * t
    if attention_mask is None:
        attention_mask = jnp.ones((bsz, t), dtype=jnp.float32)
    # additive padding bias, shaped so the kernel only needs size-1 broadcasts
    pad_bias = ((1.0 - attention_mask.astype(jnp.float32)) * NEG_INF).reshape(bsz, 1, t)
    ids = input_ids.astype(jnp.int32).reshape(n, 1)

    kernel = functools.partial(_gpt2_forward_kernel, batch=bsz, seq=t)
    logits = pl.pallas_call(
        kernel,
        out_shape=jax.ShapeDtypeStruct((n, VOCAB), jnp.float32),
        # no grid / no BlockSpecs: single invocation, all operands resident in VMEM
        compiler_params=pltpu.CompilerParams(vmem_limit_bytes=32 * 1024 * 1024),
    )(ids, pad_bias,
      params["wte"], params["wpe"], params["ln_f_g"], params["ln_f_b"],
      params["ln1_g"], params["ln1_b"], params["w_qkv"], params["b_qkv"],
      params["w_o"], params["b_o"], params["ln2_g"], params["ln2_b"],
      params["w_fc"], params["b_fc"], params["w_proj"], params["b_proj"])
    return logits.reshape(bsz, t, VOCAB)


# ---------------------------------- main --------------------------------------
if __name__ == "__main__":
    key = jax.random.PRNGKey(0)
    k_param, k_ids = jax.random.split(key)

    params = init_params(k_param)

    B, T = 2, 8
    input_ids = jax.random.randint(k_ids, (B, T), 0, VOCAB, dtype=jnp.int32)
    attention_mask = jnp.ones((B, T), dtype=jnp.float32)

    forward = jax.jit(qa_generator_forward)
    logits = forward(params, input_ids, attention_mask)
    jax.block_until_ready(logits)

    assert logits.shape == (B, T, VOCAB)
    assert logits.dtype == jnp.float32
    assert bool(jnp.all(jnp.isfinite(logits)))
    print("KERNEL_OK")
</pallas_src>

<mosaic_0001>
module attributes {stable_mosaic.version = 11 : i64} {
  func.func @_gpt2_forward_kernel(%arg0: memref<16x1xi32, #tpu.memory_space<vmem>>, %arg1: memref<2x1x8xf32, #tpu.memory_space<vmem>>, %arg2: memref<128x32xf32, #tpu.memory_space<vmem>>, %arg3: memref<32x32xf32, #tpu.memory_space<vmem>>, %arg4: memref<1x32xf32, #tpu.memory_space<vmem>>, %arg5: memref<1x32xf32, #tpu.memory_space<vmem>>, %arg6: memref<2x32xf32, #tpu.memory_space<vmem>>, %arg7: memref<2x32xf32, #tpu.memory_space<vmem>>, %arg8: memref<2x32x96xf32, #tpu.memory_space<vmem>>, %arg9: memref<2x96xf32, #tpu.memory_space<vmem>>, %arg10: memref<2x32x32xf32, #tpu.memory_space<vmem>>, %arg11: memref<2x32xf32, #tpu.memory_space<vmem>>, %arg12: memref<2x32xf32, #tpu.memory_space<vmem>>, %arg13: memref<2x32xf32, #tpu.memory_space<vmem>>, %arg14: memref<2x32x128xf32, #tpu.memory_space<vmem>>, %arg15: memref<2x128xf32, #tpu.memory_space<vmem>>, %arg16: memref<2x128x32xf32, #tpu.memory_space<vmem>>, %arg17: memref<2x32xf32, #tpu.memory_space<vmem>>, %arg18: memref<16x128xf32, #tpu.memory_space<vmem>>) attributes {dimension_semantics = [], scalar_prefetch = 0 : i64, scratch_operands = 0 : i64, tpu.core_type = #tpu.core_type<tc>} {
    %c0 = arith.constant 0 : index
    %c0_0 = arith.constant 0 : index
    %0 = vector.load %arg2[%c0, %c0_0] : memref<128x32xf32, #tpu.memory_space<vmem>>, vector<128x32xf32>
    %1 = arith.truncf %0 : vector<128x32xf32> to vector<128x32xbf16>
    %c0_1 = arith.constant 0 : index
    %c0_2 = arith.constant 0 : index
    %2 = vector.load %arg0[%c0_1, %c0_2] : memref<16x1xi32, #tpu.memory_space<vmem>>, vector<16x1xi32>
    %3 = tpu.iota {dimensions = array<i32: 1>} : vector<16x128xi32>
    %4 = vector.broadcast %2 : vector<16x1xi32> to vector<16x128xi32>
    %5 = arith.cmpi eq, %4, %3 : vector<16x128xi32>
    %6 = arith.extui %5 : vector<16x128xi1> to vector<16x128xi32>
    %7 = arith.sitofp %6 : vector<16x128xi32> to vector<16x128xf32>
    %8 = arith.truncf %7 : vector<16x128xf32> to vector<16x128xbf16>
    %cst = arith.constant dense<0.000000e+00> : vector<16x32xf32>
    %9 = tpu.matmul %8, %1, %cst {dimension_numbers = #tpu.dot_dimension_numbers<[1], [0], [0], [1], [0, 0, 1, 1], [], []>} : vector<16x128xbf16>, vector<128x32xbf16>, vector<16x32xf32> -> vector<16x32xf32>
    %c0_3 = arith.constant 0 : index
    %c0_4 = arith.constant 0 : index
    %10 = vector.load %arg3[%c0_3, %c0_4] : memref<32x32xf32, #tpu.memory_space<vmem>>, vector<8x32xf32>
    %11 = vector.shape_cast %9 : vector<16x32xf32> to vector<2x8x32xf32>
    %12 = vector.shape_cast %10 : vector<8x32xf32> to vector<1x8x32xf32>
    %13 = vector.broadcast %12 : vector<1x8x32xf32> to vector<2x8x32xf32>
    %14 = arith.addf %11, %13 : vector<2x8x32xf32>
    %15 = vector.shape_cast %14 : vector<2x8x32xf32> to vector<16x32xf32>
    %16 = tpu.iota {dimensions = array<i32: 0>} : vector<8x8xi32>
    %17 = tpu.iota {dimensions = array<i32: 1>} : vector<8x8xi32>
    %18 = arith.cmpi sle, %17, %16 : vector<8x8xi32>
    %cst_5 = arith.constant 0.000000e+00 : f32
    %cst_6 = arith.constant -1.000000e+09 : f32
    %19 = vector.broadcast %cst_5 : f32 to vector<8x8xf32>
    %20 = vector.broadcast %cst_6 : f32 to vector<8x8xf32>
    %21 = arith.select %18, %19, %20 : vector<8x8xi1>, vector<8x8xf32>
    %c0_7 = arith.constant 0 : index
    %c0_8 = arith.constant 0 : index
    %c0_9 = arith.constant 0 : index
    %22 = vector.load %arg1[%c0_7, %c0_8, %c0_9] : memref<2x1x8xf32, #tpu.memory_space<vmem>>, vector<2x1x8xf32>
    %23 = vector.shape_cast %21 : vector<8x8xf32> to vector<1x8x8xf32>
    %24 = vector.broadcast %22 : vector<2x1x8xf32> to vector<2x8x8xf32>
    %25 = vector.broadcast %23 : vector<1x8x8xf32> to vector<2x8x8xf32>
    %26 = arith.addf %24, %25 : vector<2x8x8xf32>
    %c0_10 = arith.constant 0 : index
    %c0_11 = arith.constant 0 : index
    %27 = vector.load %arg6[%c0_10, %c0_11] : memref<2x32xf32, #tpu.memory_space<vmem>>, vector<1x32xf32>
    %c0_12 = arith.constant 0 : index
    %c0_13 = arith.constant 0 : index
    %28 = vector.load %arg7[%c0_12, %c0_13] : memref<2x32xf32, #tpu.memory_space<vmem>>, vector<1x32xf32>
    %cst_14 = arith.constant dense<0.000000e+00> : vector<16xf32>
    %29 = vector.multi_reduction <add>, %15, %cst_14 [1] : vector<16x32xf32> to vector<16xf32>
    %30 = vector.shape_cast %29 : vector<16xf32> to vector<16x1xf32>
    %cst_15 = arith.constant 3.200000e+01 : f32
    %31 = vector.broadcast %cst_15 : f32 to vector<16x1xf32>
    %32 = arith.divf %30, %31 : vector<16x1xf32>
    %33 = vector.broadcast %32 : vector<16x1xf32> to vector<16x32xf32>
    %34 = arith.subf %15, %33 : vector<16x32xf32>
    %35 = arith.mulf %34, %34 : vector<16x32xf32>
    %cst_16 = arith.constant dense<0.000000e+00> : vector<16xf32>
    %36 = vector.multi_reduction <add>, %35, %cst_16 [1] : vector<16x32xf32> to vector<16xf32>
    %37 = vector.shape_cast %36 : vector<16xf32> to vector<16x1xf32>
    %cst_17 = arith.constant 3.200000e+01 : f32
    %38 = vector.broadcast %cst_17 : f32 to vector<16x1xf32>
    %39 = arith.divf %37, %38 : vector<16x1xf32>
    %40 = vector.broadcast %32 : vector<16x1xf32> to vector<16x32xf32>
    %41 = arith.subf %15, %40 : vector<16x32xf32>
    %cst_18 = arith.constant 9.99999974E-6 : f32
    %42 = vector.broadcast %cst_18 : f32 to vector<16x1xf32>
    %43 = arith.addf %39, %42 : vector<16x1xf32>
    %44 = math.rsqrt %43 : vector<16x1xf32>
    %45 = vector.broadcast %44 : vector<16x1xf32> to vector<16x32xf32>
    %46 = arith.mulf %41, %45 : vector<16x32xf32>
    %47 = vector.broadcast %27 : vector<1x32xf32> to vector<16x32xf32>
    %48 = arith.mulf %46, %47 : vector<16x32xf32>
    %49 = vector.broadcast %28 : vector<1x32xf32> to vector<16x32xf32>
    %50 = arith.addf %48, %49 : vector<16x32xf32>
    %c0_19 = arith.constant 0 : index
    %c0_20 = arith.constant 0 : index
    %c0_21 = arith.constant 0 : index
    %51 = vector.load %arg8[%c0_19, %c0_20, %c0_21] : memref<2x32x96xf32, #tpu.memory_space<vmem>>, vector<1x32x96xf32>
    %52 = vector.shape_cast %51 : vector<1x32x96xf32> to vector<32x96xf32>
    %53 = arith.truncf %50 : vector<16x32xf32> to vector<16x32xbf16>
    %54 = arith.truncf %52 : vector<32x96xf32> to vector<32x96xbf16>
    %cst_22 = arith.constant dense<0.000000e+00> : vector<16x96xf32>
    %55 = tpu.matmul %53, %54, %cst_22 {dimension_numbers = #tpu.dot_dimension_numbers<[1], [0], [0], [1], [0, 0, 1, 1], [], []>} : vector<16x32xbf16>, vector<32x96xbf16>, vector<16x96xf32> -> vector<16x96xf32>
    %c0_23 = arith.constant 0 : index
    %c0_24 = arith.constant 0 : index
    %56 = vector.load %arg9[%c0_23, %c0_24] : memref<2x96xf32, #tpu.memory_space<vmem>>, vector<1x96xf32>
    %57 = vector.broadcast %56 : vector<1x96xf32> to vector<16x96xf32>
    %58 = arith.addf %55, %57 : vector<16x96xf32>
    %c0_25 = arith.constant 0 : index
    %c0_26 = arith.constant 0 : index
    %c0_27 = arith.constant 0 : index
    %59 = vector.load %arg10[%c0_25, %c0_26, %c0_27] : memref<2x32x32xf32, #tpu.memory_space<vmem>>, vector<1x32x32xf32>
    %60 = vector.shape_cast %59 : vector<1x32x32xf32> to vector<32x32xf32>
    %cst_28 = arith.constant 0.000000e+00 : f32
    %61 = vector.broadcast %cst_28 : f32 to vector<16x32xf32>
    %62 = vector.extract_strided_slice %58 {offsets = [0, 0], sizes = [16, 8], strides = [1, 1]} : vector<16x96xf32> to vector<16x8xf32>
    %63 = vector.shape_cast %62 : vector<16x8xf32> to vector<2x8x8xf32>
    %64 = vector.extract_strided_slice %58 {offsets = [0, 32], sizes = [16, 8], strides = [1, 1]} : vector<16x96xf32> to vector<16x8xf32>
    %65 = vector.shape_cast %64 : vector<16x8xf32> to vector<2x8x8xf32>
    %66 = vector.extract_strided_slice %58 {offsets = [0, 64], sizes = [16, 8], strides = [1, 1]} : vector<16x96xf32> to vector<16x8xf32>
    %67 = vector.shape_cast %66 : vector<16x8xf32> to vector<2x8x8xf32>
    %68 = arith.truncf %63 : vector<2x8x8xf32> to vector<2x8x8xbf16>
    %69 = arith.truncf %65 : vector<2x8x8xf32> to vector<2x8x8xbf16>
    "tpu.trace_start"() <{level = 10 : i32, message = "bqd,bkd->bqk"}> : () -> ()
    %cst_29 = arith.constant dense<0.000000e+00> : vector<2x8x8xf32>
    %70 = tpu.matmul %68, %69, %cst_29 {dimension_numbers = #tpu.dot_dimension_numbers<[2], [2], [1], [1], [0, 0, 0, 1, 1, 1], [0], [0]>} : vector<2x8x8xbf16>, vector<2x8x8xbf16>, vector<2x8x8xf32> -> vector<2x8x8xf32>
    "tpu.trace_stop"() : () -> ()
    %cst_30 = arith.constant 0.353553385 : f32
    %71 = vector.broadcast %cst_30 : f32 to vector<2x8x8xf32>
    %72 = arith.mulf %70, %71 : vector<2x8x8xf32>
    %73 = arith.addf %72, %26 : vector<2x8x8xf32>
    %cst_31 = arith.constant dense<0xFF800000> : vector<2x8xf32>
    %74 = vector.multi_reduction <maximumf>, %73, %cst_31 [2] : vector<2x8x8xf32> to vector<2x8xf32>
    %75 = vector.shape_cast %74 : vector<2x8xf32> to vector<2x8x1xf32>
    %76 = vector.broadcast %75 : vector<2x8x1xf32> to vector<2x8x8xf32>
    %77 = arith.subf %73, %76 : vector<2x8x8xf32>
    %78 = math.exp %77 : vector<2x8x8xf32>
    %cst_32 = arith.constant dense<0.000000e+00> : vector<2x8xf32>
    %79 = vector.multi_reduction <add>, %78, %cst_32 [2] : vector<2x8x8xf32> to vector<2x8xf32>
    %80 = vector.shape_cast %79 : vector<2x8xf32> to vector<2x8x1xf32>
    %81 = tpu.reciprocal %80 {approx = true} : vector<2x8x1xf32> -> vector<2x8x1xf32>
    %82 = vector.broadcast %81 : vector<2x8x1xf32> to vector<2x8x8xf32>
    %83 = arith.mulf %78, %82 : vector<2x8x8xf32>
    %84 = arith.truncf %83 : vector<2x8x8xf32> to vector<2x8x8xbf16>
    %85 = arith.truncf %67 : vector<2x8x8xf32> to vector<2x8x8xbf16>
    "tpu.trace_start"() <{level = 10 : i32, message = "bqk,bkd->bqd"}> : () -> ()
    %cst_33 = arith.constant dense<0.000000e+00> : vector<2x8x8xf32>
    %86 = tpu.matmul %84, %85, %cst_33 {dimension_numbers = #tpu.dot_dimension_numbers<[2], [1], [1], [2], [0, 0, 0, 1, 1, 2], [0], [0]>} : vector<2x8x8xbf16>, vector<2x8x8xbf16>, vector<2x8x8xf32> -> vector<2x8x8xf32>
    "tpu.trace_stop"() : () -> ()
    %87 = vector.shape_cast %86 : vector<2x8x8xf32> to vector<16x8xf32>
    %88 = vector.extract_strided_slice %60 {offsets = [0, 0], sizes = [8, 32], strides = [1, 1]} : vector<32x32xf32> to vector<8x32xf32>
    %89 = arith.truncf %87 : vector<16x8xf32> to vector<16x8xbf16>
    %90 = arith.truncf %88 : vector<8x32xf32> to vector<8x32xbf16>
    %cst_34 = arith.constant dense<0.000000e+00> : vector<16x32xf32>
    %91 = tpu.matmul %89, %90, %cst_34 {dimension_numbers = #tpu.dot_dimension_numbers<[1], [0], [0], [1], [0, 0, 1, 1], [], []>} : vector<16x8xbf16>, vector<8x32xbf16>, vector<16x32xf32> -> vector<16x32xf32>
    %92 = arith.addf %61, %91 : vector<16x32xf32>
    %93 = vector.extract_strided_slice %58 {offsets = [0, 8], sizes = [16, 8], strides = [1, 1]} : vector<16x96xf32> to vector<16x8xf32>
    %94 = vector.shape_cast %93 : vector<16x8xf32> to vector<2x8x8xf32>
    %95 = vector.extract_strided_slice %58 {offsets = [0, 40], sizes = [16, 8], strides = [1, 1]} : vector<16x96xf32> to vector<16x8xf32>
    %96 = vector.shape_cast %95 : vector<16x8xf32> to vector<2x8x8xf32>
    %97 = vector.extract_strided_slice %58 {offsets = [0, 72], sizes = [16, 8], strides = [1, 1]} : vector<16x96xf32> to vector<16x8xf32>
    %98 = vector.shape_cast %97 : vector<16x8xf32> to vector<2x8x8xf32>
    %99 = arith.truncf %94 : vector<2x8x8xf32> to vector<2x8x8xbf16>
    %100 = arith.truncf %96 : vector<2x8x8xf32> to vector<2x8x8xbf16>
    "tpu.trace_start"() <{level = 10 : i32, message = "bqd,bkd->bqk"}> : () -> ()
    %cst_35 = arith.constant dense<0.000000e+00> : vector<2x8x8xf32>
    %101 = tpu.matmul %99, %100, %cst_35 {dimension_numbers = #tpu.dot_dimension_numbers<[2], [2], [1], [1], [0, 0, 0, 1, 1, 1], [0], [0]>} : vector<2x8x8xbf16>, vector<2x8x8xbf16>, vector<2x8x8xf32> -> vector<2x8x8xf32>
    "tpu.trace_stop"() : () -> ()
    %cst_36 = arith.constant 0.353553385 : f32
    %102 = vector.broadcast %cst_36 : f32 to vector<2x8x8xf32>
    %103 = arith.mulf %101, %102 : vector<2x8x8xf32>
    %104 = arith.addf %103, %26 : vector<2x8x8xf32>
    %cst_37 = arith.constant dense<0xFF800000> : vector<2x8xf32>
    %105 = vector.multi_reduction <maximumf>, %104, %cst_37 [2] : vector<2x8x8xf32> to vector<2x8xf32>
    %106 = vector.shape_cast %105 : vector<2x8xf32> to vector<2x8x1xf32>
    %107 = vector.broadcast %106 : vector<2x8x1xf32> to vector<2x8x8xf32>
    %108 = arith.subf %104, %107 : vector<2x8x8xf32>
    %109 = math.exp %108 : vector<2x8x8xf32>
    %cst_38 = arith.constant dense<0.000000e+00> : vector<2x8xf32>
    %110 = vector.multi_reduction <add>, %109, %cst_38 [2] : vector<2x8x8xf32> to vector<2x8xf32>
    %111 = vector.shape_cast %110 : vector<2x8xf32> to vector<2x8x1xf32>
    %112 = tpu.reciprocal %111 {approx = true} : vector<2x8x1xf32> -> vector<2x8x1xf32>
    %113 = vector.broadcast %112 : vector<2x8x1xf32> to vector<2x8x8xf32>
    %114 = arith.mulf %109, %113 : vector<2x8x8xf32>
    %115 = arith.truncf %114 : vector<2x8x8xf32> to vector<2x8x8xbf16>
    %116 = arith.truncf %98 : vector<2x8x8xf32> to vector<2x8x8xbf16>
    "tpu.trace_start"() <{level = 10 : i32, message = "bqk,bkd->bqd"}> : () -> ()
    %cst_39 = arith.constant dense<0.000000e+00> : vector<2x8x8xf32>
    %117 = tpu.matmul %115, %116, %cst_39 {dimension_numbers = #tpu.dot_dimension_numbers<[2], [1], [1], [2], [0, 0, 0, 1, 1, 2], [0], [0]>} : vector<2x8x8xbf16>, vector<2x8x8xbf16>, vector<2x8x8xf32> -> vector<2x8x8xf32>
    "tpu.trace_stop"() : () -> ()
    %118 = vector.shape_cast %117 : vector<2x8x8xf32> to vector<16x8xf32>
    %119 = vector.extract_strided_slice %60 {offsets = [8, 0], sizes = [8, 32], strides = [1, 1]} : vector<32x32xf32> to vector<8x32xf32>
    %120 = arith.truncf %118 : vector<16x8xf32> to vector<16x8xbf16>
    %121 = arith.truncf %119 : vector<8x32xf32> to vector<8x32xbf16>
    %cst_40 = arith.constant dense<0.000000e+00> : vector<16x32xf32>
    %122 = tpu.matmul %120, %121, %cst_40 {dimension_numbers = #tpu.dot_dimension_numbers<[1], [0], [0], [1], [0, 0, 1, 1], [], []>} : vector<16x8xbf16>, vector<8x32xbf16>, vector<16x32xf32> -> vector<16x32xf32>
    %123 = arith.addf %92, %122 : vector<16x32xf32>
    %124 = vector.extract_strided_slice %58 {offsets = [0, 16], sizes = [16, 8], strides = [1, 1]} : vector<16x96xf32> to vector<16x8xf32>
    %125 = vector.shape_cast %124 : vector<16x8xf32> to vector<2x8x8xf32>
    %126 = vector.extract_strided_slice %58 {offsets = [0, 48], sizes = [16, 8], strides = [1, 1]} : vector<16x96xf32> to vector<16x8xf32>
    %127 = vector.shape_cast %126 : vector<16x8xf32> to vector<2x8x8xf32>
    %128 = vector.extract_strided_slice %58 {offsets = [0, 80], sizes = [16, 8], strides = [1, 1]} : vector<16x96xf32> to vector<16x8xf32>
    %129 = vector.shape_cast %128 : vector<16x8xf32> to vector<2x8x8xf32>
    %130 = arith.truncf %125 : vector<2x8x8xf32> to vector<2x8x8xbf16>
    %131 = arith.truncf %127 : vector<2x8x8xf32> to vector<2x8x8xbf16>
    "tpu.trace_start"() <{level = 10 : i32, message = "bqd,bkd->bqk"}> : () -> ()
    %cst_41 = arith.constant dense<0.000000e+00> : vector<2x8x8xf32>
    %132 = tpu.matmul %130, %131, %cst_41 {dimension_numbers = #tpu.dot_dimension_numbers<[2], [2], [1], [1], [0, 0, 0, 1, 1, 1], [0], [0]>} : vector<2x8x8xbf16>, vector<2x8x8xbf16>, vector<2x8x8xf32> -> vector<2x8x8xf32>
    "tpu.trace_stop"() : () -> ()
    %cst_42 = arith.constant 0.353553385 : f32
    %133 = vector.broadcast %cst_42 : f32 to vector<2x8x8xf32>
    %134 = arith.mulf %132, %133 : vector<2x8x8xf32>
    %135 = arith.addf %134, %26 : vector<2x8x8xf32>
    %cst_43 = arith.constant dense<0xFF800000> : vector<2x8xf32>
    %136 = vector.multi_reduction <maximumf>, %135, %cst_43 [2] : vector<2x8x8xf32> to vector<2x8xf32>
    %137 = vector.shape_cast %136 : vector<2x8xf32> to vector<2x8x1xf32>
    %138 = vector.broadcast %137 : vector<2x8x1xf32> to vector<2x8x8xf32>
    %139 = arith.subf %135, %138 : vector<2x8x8xf32>
    %140 = math.exp %139 : vector<2x8x8xf32>
    %cst_44 = arith.constant dense<0.000000e+00> : vector<2x8xf32>
    %141 = vector.multi_reduction <add>, %140, %cst_44 [2] : vector<2x8x8xf32> to vector<2x8xf32>
    %142 = vector.shape_cast %141 : vector<2x8xf32> to vector<2x8x1xf32>
    %143 = tpu.reciprocal %142 {approx = true} : vector<2x8x1xf32> -> vector<2x8x1xf32>
    %144 = vector.broadcast %143 : vector<2x8x1xf32> to vector<2x8x8xf32>
    %145 = arith.mulf %140, %144 : vector<2x8x8xf32>
    %146 = arith.truncf %145 : vector<2x8x8xf32> to vector<2x8x8xbf16>
    %147 = arith.truncf %129 : vector<2x8x8xf32> to vector<2x8x8xbf16>
    "tpu.trace_start"() <{level = 10 : i32, message = "bqk,bkd->bqd"}> : () -> ()
    %cst_45 = arith.constant dense<0.000000e+00> : vector<2x8x8xf32>
    %148 = tpu.matmul %146, %147, %cst_45 {dimension_numbers = #tpu.dot_dimension_numbers<[2], [1], [1], [2], [0, 0, 0, 1, 1, 2], [0], [0]>} : vector<2x8x8xbf16>, vector<2x8x8xbf16>, vector<2x8x8xf32> -> vector<2x8x8xf32>
    "tpu.trace_stop"() : () -> ()
    %149 = vector.shape_cast %148 : vector<2x8x8xf32> to vector<16x8xf32>
    %150 = vector.extract_strided_slice %60 {offsets = [16, 0], sizes = [8, 32], strides = [1, 1]} : vector<32x32xf32> to vector<8x32xf32>
    %151 = arith.truncf %149 : vector<16x8xf32> to vector<16x8xbf16>
    %152 = arith.truncf %150 : vector<8x32xf32> to vector<8x32xbf16>
    %cst_46 = arith.constant dense<0.000000e+00> : vector<16x32xf32>
    %153 = tpu.matmul %151, %152, %cst_46 {dimension_numbers = #tpu.dot_dimension_numbers<[1], [0], [0], [1], [0, 0, 1, 1], [], []>} : vector<16x8xbf16>, vector<8x32xbf16>, vector<16x32xf32> -> vector<16x32xf32>
    %154 = arith.addf %123, %153 : vector<16x32xf32>
    %155 = vector.extract_strided_slice %58 {offsets = [0, 24], sizes = [16, 8], strides = [1, 1]} : vector<16x96xf32> to vector<16x8xf32>
    %156 = vector.shape_cast %155 : vector<16x8xf32> to vector<2x8x8xf32>
    %157 = vector.extract_strided_slice %58 {offsets = [0, 56], sizes = [16, 8], strides = [1, 1]} : vector<16x96xf32> to vector<16x8xf32>
    %158 = vector.shape_cast %157 : vector<16x8xf32> to vector<2x8x8xf32>
    %159 = vector.extract_strided_slice %58 {offsets = [0, 88], sizes = [16, 8], strides = [1, 1]} : vector<16x96xf32> to vector<16x8xf32>
    %160 = vector.shape_cast %159 : vector<16x8xf32> to vector<2x8x8xf32>
    %161 = arith.truncf %156 : vector<2x8x8xf32> to vector<2x8x8xbf16>
    %162 = arith.truncf %158 : vector<2x8x8xf32> to vector<2x8x8xbf16>
    "tpu.trace_start"() <{level = 10 : i32, message = "bqd,bkd->bqk"}> : () -> ()
    %cst_47 = arith.constant dense<0.000000e+00> : vector<2x8x8xf32>
    %163 = tpu.matmul %161, %162, %cst_47 {dimension_numbers = #tpu.dot_dimension_numbers<[2], [2], [1], [1], [0, 0, 0, 1, 1, 1], [0], [0]>} : vector<2x8x8xbf16>, vector<2x8x8xbf16>, vector<2x8x8xf32> -> vector<2x8x8xf32>
    "tpu.trace_stop"() : () -> ()
    %cst_48 = arith.constant 0.353553385 : f32
    %164 = vector.broadcast %cst_48 : f32 to vector<2x8x8xf32>
    %165 = arith.mulf %163, %164 : vector<2x8x8xf32>
    %166 = arith.addf %165, %26 : vector<2x8x8xf32>
    %cst_49 = arith.constant dense<0xFF800000> : vector<2x8xf32>
    %167 = vector.multi_reduction <maximumf>, %166, %cst_49 [2] : vector<2x8x8xf32> to vector<2x8xf32>
    %168 = vector.shape_cast %167 : vector<2x8xf32> to vector<2x8x1xf32>
    %169 = vector.broadcast %168 : vector<2x8x1xf32> to vector<2x8x8xf32>
    %170 = arith.subf %166, %169 : vector<2x8x8xf32>
    %171 = math.exp %170 : vector<2x8x8xf32>
    %cst_50 = arith.constant dense<0.000000e+00> : vector<2x8xf32>
    %172 = vector.multi_reduction <add>, %171, %cst_50 [2] : vector<2x8x8xf32> to vector<2x8xf32>
    %173 = vector.shape_cast %172 : vector<2x8xf32> to vector<2x8x1xf32>
    %174 = tpu.reciprocal %173 {approx = true} : vector<2x8x1xf32> -> vector<2x8x1xf32>
    %175 = vector.broadcast %174 : vector<2x8x1xf32> to vector<2x8x8xf32>
    %176 = arith.mulf %171, %175 : vector<2x8x8xf32>
    %177 = arith.truncf %176 : vector<2x8x8xf32> to vector<2x8x8xbf16>
    %178 = arith.truncf %160 : vector<2x8x8xf32> to vector<2x8x8xbf16>
    "tpu.trace_start"() <{level = 10 : i32, message = "bqk,bkd->bqd"}> : () -> ()
    %cst_51 = arith.constant dense<0.000000e+00> : vector<2x8x8xf32>
    %179 = tpu.matmul %177, %178, %cst_51 {dimension_numbers = #tpu.dot_dimension_numbers<[2], [1], [1], [2], [0, 0, 0, 1, 1, 2], [0], [0]>} : vector<2x8x8xbf16>, vector<2x8x8xbf16>, vector<2x8x8xf32> -> vector<2x8x8xf32>
    "tpu.trace_stop"() : () -> ()
    %180 = vector.shape_cast %179 : vector<2x8x8xf32> to vector<16x8xf32>
    %181 = vector.extract_strided_slice %60 {offsets = [24, 0], sizes = [8, 32], strides = [1, 1]} : vector<32x32xf32> to vector<8x32xf32>
    %182 = arith.truncf %180 : vector<16x8xf32> to vector<16x8xbf16>
    %183 = arith.truncf %181 : vector<8x32xf32> to vector<8x32xbf16>
    %cst_52 = arith.constant dense<0.000000e+00> : vector<16x32xf32>
    %184 = tpu.matmul %182, %183, %cst_52 {dimension_numbers = #tpu.dot_dimension_numbers<[1], [0], [0], [1], [0, 0, 1, 1], [], []>} : vector<16x8xbf16>, vector<8x32xbf16>, vector<16x32xf32> -> vector<16x32xf32>
    %185 = arith.addf %154, %184 : vector<16x32xf32>
    %186 = arith.addf %15, %185 : vector<16x32xf32>
    %c0_53 = arith.constant 0 : index
    %c0_54 = arith.constant 0 : index
    %187 = vector.load %arg11[%c0_53, %c0_54] : memref<2x32xf32, #tpu.memory_space<vmem>>, vector<1x32xf32>
    %188 = vector.broadcast %187 : vector<1x32xf32> to vector<16x32xf32>
    %189 = arith.addf %186, %188 : vector<16x32xf32>
    %c0_55 = arith.constant 0 : index
    %c0_56 = arith.constant 0 : index
    %190 = vector.load %arg12[%c0_55, %c0_56] : memref<2x32xf32, #tpu.memory_space<vmem>>, vector<1x32xf32>
    %c0_57 = arith.constant 0 : index
    %c0_58 = arith.constant 0 : index
    %191 = vector.load %arg13[%c0_57, %c0_58] : memref<2x32xf32, #tpu.memory_space<vmem>>, vector<1x32xf32>
    %cst_59 = arith.constant dense<0.000000e+00> : vector<16xf32>
    %192 = vector.multi_reduction <add>, %189, %cst_59 [1] : vector<16x32xf32> to vector<16xf32>
    %193 = vector.shape_cast %192 : vector<16xf32> to vector<16x1xf32>
    %cst_60 = arith.constant 3.200000e+01 : f32
    %194 = vector.broadcast %cst_60 : f32 to vector<16x1xf32>
    %195 = arith.divf %193, %194 : vector<16x1xf32>
    %196 = vector.broadcast %195 : vector<16x1xf32> to vector<16x32xf32>
    %197 = arith.subf %189, %196 : vector<16x32xf32>
    %198 = arith.mulf %197, %197 : vector<16x32xf32>
    %cst_61 = arith.constant dense<0.000000e+00> : vector<16xf32>
    %199 = vector.multi_reduction <add>, %198, %cst_61 [1] : vector<16x32xf32> to vector<16xf32>
    %200 = vector.shape_cast %199 : vector<16xf32> to vector<16x1xf32>
    %cst_62 = arith.constant 3.200000e+01 : f32
    %201 = vector.broadcast %cst_62 : f32 to vector<16x1xf32>
    %202 = arith.divf %200, %201 : vector<16x1xf32>
    %203 = vector.broadcast %195 : vector<16x1xf32> to vector<16x32xf32>
    %204 = arith.subf %189, %203 : vector<16x32xf32>
    %cst_63 = arith.constant 9.99999974E-6 : f32
    %205 = vector.broadcast %cst_63 : f32 to vector<16x1xf32>
    %206 = arith.addf %202, %205 : vector<16x1xf32>
    %207 = math.rsqrt %206 : vector<16x1xf32>
    %208 = vector.broadcast %207 : vector<16x1xf32> to vector<16x32xf32>
    %209 = arith.mulf %204, %208 : vector<16x32xf32>
    %210 = vector.broadcast %190 : vector<1x32xf32> to vector<16x32xf32>
    %211 = arith.mulf %209, %210 : vector<16x32xf32>
    %212 = vector.broadcast %191 : vector<1x32xf32> to vector<16x32xf32>
    %213 = arith.addf %211, %212 : vector<16x32xf32>
    %c0_64 = arith.constant 0 : index
    %c0_65 = arith.constant 0 : index
    %c0_66 = arith.constant 0 : index
    %214 = vector.load %arg14[%c0_64, %c0_65, %c0_66] : memref<2x32x128xf32, #tpu.memory_space<vmem>>, vector<1x32x128xf32>
    %215 = vector.shape_cast %214 : vector<1x32x128xf32> to vector<32x128xf32>
    %216 = arith.truncf %213 : vector<16x32xf32> to vector<16x32xbf16>
    %217 = arith.truncf %215 : vector<32x128xf32> to vector<32x128xbf16>
    %cst_67 = arith.constant dense<0.000000e+00> : vector<16x128xf32>
    %218 = tpu.matmul %216, %217, %cst_67 {dimension_numbers = #tpu.dot_dimension_numbers<[1], [0], [0], [1], [0, 0, 1, 1], [], []>} : vector<16x32xbf16>, vector<32x128xbf16>, vector<16x128xf32> -> vector<16x128xf32>
    %c0_68 = arith.constant 0 : index
    %c0_69 = arith.constant 0 : index
    %219 = vector.load %arg15[%c0_68, %c0_69] : memref<2x128xf32, #tpu.memory_space<vmem>>, vector<1x128xf32>
    %220 = vector.broadcast %219 : vector<1x128xf32> to vector<16x128xf32>
    %221 = arith.addf %218, %220 : vector<16x128xf32>
    %cst_70 = arith.constant 5.000000e-01 : f32
    %222 = vector.broadcast %cst_70 : f32 to vector<16x128xf32>
    %223 = arith.mulf %222, %221 : vector<16x128xf32>
    %cst_71 = arith.constant 4.471500e-02 : f32
    %224 = vector.broadcast %cst_71 : f32 to vector<16x128xf32>
    %225 = arith.mulf %224, %221 : vector<16x128xf32>
    %226 = arith.mulf %225, %221 : vector<16x128xf32>
    %227 = arith.mulf %226, %221 : vector<16x128xf32>
    %228 = arith.addf %221, %227 : vector<16x128xf32>
    %cst_72 = arith.constant 0.797884583 : f32
    %229 = vector.broadcast %cst_72 : f32 to vector<16x128xf32>
    %230 = arith.mulf %229, %228 : vector<16x128xf32>
    %231 = math.tanh %230 : vector<16x128xf32>
    %cst_73 = arith.constant 1.000000e+00 : f32
    %232 = vector.broadcast %cst_73 : f32 to vector<16x128xf32>
    %233 = arith.addf %232, %231 : vector<16x128xf32>
    %234 = arith.mulf %223, %233 : vector<16x128xf32>
    %c0_74 = arith.constant 0 : index
    %c0_75 = arith.constant 0 : index
    %c0_76 = arith.constant 0 : index
    %235 = vector.load %arg16[%c0_74, %c0_75, %c0_76] : memref<2x128x32xf32, #tpu.memory_space<vmem>>, vector<1x128x32xf32>
    %236 = vector.shape_cast %235 : vector<1x128x32xf32> to vector<128x32xf32>
    %237 = arith.truncf %234 : vector<16x128xf32> to vector<16x128xbf16>
    %238 = arith.truncf %236 : vector<128x32xf32> to vector<128x32xbf16>
    %cst_77 = arith.constant dense<0.000000e+00> : vector<16x32xf32>
    %239 = tpu.matmul %237, %238, %cst_77 {dimension_numbers = #tpu.dot_dimension_numbers<[1], [0], [0], [1], [0, 0, 1, 1], [], []>} : vector<16x128xbf16>, vector<128x32xbf16>, vector<16x32xf32> -> vector<16x32xf32>
    %240 = arith.addf %189, %239 : vector<16x32xf32>
    %c0_78 = arith.constant 0 : index
    %c0_79 = arith.constant 0 : index
    %241 = vector.load %arg17[%c0_78, %c0_79] : memref<2x32xf32, #tpu.memory_space<vmem>>, vector<1x32xf32>
    %242 = vector.broadcast %241 : vector<1x32xf32> to vector<16x32xf32>
    %243 = arith.addf %240, %242 : vector<16x32xf32>
    %c1 = arith.constant 1 : index
    %c0_80 = arith.constant 0 : index
    %244 = vector.load %arg6[%c1, %c0_80] : memref<2x32xf32, #tpu.memory_space<vmem>>, vector<1x32xf32>
    %c1_81 = arith.constant 1 : index
    %c0_82 = arith.constant 0 : index
    %245 = vector.load %arg7[%c1_81, %c0_82] : memref<2x32xf32, #tpu.memory_space<vmem>>, vector<1x32xf32>
    %cst_83 = arith.constant dense<0.000000e+00> : vector<16xf32>
    %246 = vector.multi_reduction <add>, %243, %cst_83 [1] : vector<16x32xf32> to vector<16xf32>
    %247 = vector.shape_cast %246 : vector<16xf32> to vector<16x1xf32>
    %cst_84 = arith.constant 3.200000e+01 : f32
    %248 = vector.broadcast %cst_84 : f32 to vector<16x1xf32>
    %249 = arith.divf %247, %248 : vector<16x1xf32>
    %250 = vector.broadcast %249 : vector<16x1xf32> to vector<16x32xf32>
    %251 = arith.subf %243, %250 : vector<16x32xf32>
    %252 = arith.mulf %251, %251 : vector<16x32xf32>
    %cst_85 = arith.constant dense<0.000000e+00> : vector<16xf32>
    %253 = vector.multi_reduction <add>, %252, %cst_85 [1] : vector<16x32xf32> to vector<16xf32>
    %254 = vector.shape_cast %253 : vector<16xf32> to vector<16x1xf32>
    %cst_86 = arith.constant 3.200000e+01 : f32
    %255 = vector.broadcast %cst_86 : f32 to vector<16x1xf32>
    %256 = arith.divf %254, %255 : vector<16x1xf32>
    %257 = vector.broadcast %249 : vector<16x1xf32> to vector<16x32xf32>
    %258 = arith.subf %243, %257 : vector<16x32xf32>
    %cst_87 = arith.constant 9.99999974E-6 : f32
    %259 = vector.broadcast %cst_87 : f32 to vector<16x1xf32>
    %260 = arith.addf %256, %259 : vector<16x1xf32>
    %261 = math.rsqrt %260 : vector<16x1xf32>
    %262 = vector.broadcast %261 : vector<16x1xf32> to vector<16x32xf32>
    %263 = arith.mulf %258, %262 : vector<16x32xf32>
    %264 = vector.broadcast %244 : vector<1x32xf32> to vector<16x32xf32>
    %265 = arith.mulf %263, %264 : vector<16x32xf32>
    %266 = vector.broadcast %245 : vector<1x32xf32> to vector<16x32xf32>
    %267 = arith.addf %265, %266 : vector<16x32xf32>
    %c1_88 = arith.constant 1 : index
    %c0_89 = arith.constant 0 : index
    %c0_90 = arith.constant 0 : index
    %268 = vector.load %arg8[%c1_88, %c0_89, %c0_90] : memref<2x32x96xf32, #tpu.memory_space<vmem>>, vector<1x32x96xf32>
    %269 = vector.shape_cast %268 : vector<1x32x96xf32> to vector<32x96xf32>
    %270 = arith.truncf %267 : vector<16x32xf32> to vector<16x32xbf16>
    %271 = arith.truncf %269 : vector<32x96xf32> to vector<32x96xbf16>
    %cst_91 = arith.constant dense<0.000000e+00> : vector<16x96xf32>
    %272 = tpu.matmul %270, %271, %cst_91 {dimension_numbers = #tpu.dot_dimension_numbers<[1], [0], [0], [1], [0, 0, 1, 1], [], []>} : vector<16x32xbf16>, vector<32x96xbf16>, vector<16x96xf32> -> vector<16x96xf32>
    %c1_92 = arith.constant 1 : index
    %c0_93 = arith.constant 0 : index
    %273 = vector.load %arg9[%c1_92, %c0_93] : memref<2x96xf32, #tpu.memory_space<vmem>>, vector<1x96xf32>
    %274 = vector.broadcast %273 : vector<1x96xf32> to vector<16x96xf32>
    %275 = arith.addf %272, %274 : vector<16x96xf32>
    %c1_94 = arith.constant 1 : index
    %c0_95 = arith.constant 0 : index
    %c0_96 = arith.constant 0 : index
    %276 = vector.load %arg10[%c1_94, %c0_95, %c0_96] : memref<2x32x32xf32, #tpu.memory_space<vmem>>, vector<1x32x32xf32>
    %277 = vector.shape_cast %276 : vector<1x32x32xf32> to vector<32x32xf32>
    %cst_97 = arith.constant 0.000000e+00 : f32
    %278 = vector.broadcast %cst_97 : f32 to vector<16x32xf32>
    %279 = vector.extract_strided_slice %275 {offsets = [0, 0], sizes = [16, 8], strides = [1, 1]} : vector<16x96xf32> to vector<16x8xf32>
    %280 = vector.shape_cast %279 : vector<16x8xf32> to vector<2x8x8xf32>
    %281 = vector.extract_strided_slice %275 {offsets = [0, 32], sizes = [16, 8], strides = [1, 1]} : vector<16x96xf32> to vector<16x8xf32>
    %282 = vector.shape_cast %281 : vector<16x8xf32> to vector<2x8x8xf32>
    %283 = vector.extract_strided_slice %275 {offsets = [0, 64], sizes = [16, 8], strides = [1, 1]} : vector<16x96xf32> to vector<16x8xf32>
    %284 = vector.shape_cast %283 : vector<16x8xf32> to vector<2x8x8xf32>
    %285 = arith.truncf %280 : vector<2x8x8xf32> to vector<2x8x8xbf16>
    %286 = arith.truncf %282 : vector<2x8x8xf32> to vector<2x8x8xbf16>
    "tpu.trace_start"() <{level = 10 : i32, message = "bqd,bkd->bqk"}> : () -> ()
    %cst_98 = arith.constant dense<0.000000e+00> : vector<2x8x8xf32>
    %287 = tpu.matmul %285, %286, %cst_98 {dimension_numbers = #tpu.dot_dimension_numbers<[2], [2], [1], [1], [0, 0, 0, 1, 1, 1], [0], [0]>} : vector<2x8x8xbf16>, vector<2x8x8xbf16>, vector<2x8x8xf32> -> vector<2x8x8xf32>
    "tpu.trace_stop"() : () -> ()
    %cst_99 = arith.constant 0.353553385 : f32
    %288 = vector.broadcast %cst_99 : f32 to vector<2x8x8xf32>
    %289 = arith.mulf %287, %288 : vector<2x8x8xf32>
    %290 = arith.addf %289, %26 : vector<2x8x8xf32>
    %cst_100 = arith.constant dense<0xFF800000> : vector<2x8xf32>
    %291 = vector.multi_reduction <maximumf>, %290, %cst_100 [2] : vector<2x8x8xf32> to vector<2x8xf32>
    %292 = vector.shape_cast %291 : vector<2x8xf32> to vector<2x8x1xf32>
    %293 = vector.broadcast %292 : vector<2x8x1xf32> to vector<2x8x8xf32>
    %294 = arith.subf %290, %293 : vector<2x8x8xf32>
    %295 = math.exp %294 : vector<2x8x8xf32>
    %cst_101 = arith.constant dense<0.000000e+00> : vector<2x8xf32>
    %296 = vector.multi_reduction <add>, %295, %cst_101 [2] : vector<2x8x8xf32> to vector<2x8xf32>
    %297 = vector.shape_cast %296 : vector<2x8xf32> to vector<2x8x1xf32>
    %298 = tpu.reciprocal %297 {approx = true} : vector<2x8x1xf32> -> vector<2x8x1xf32>
    %299 = vector.broadcast %298 : vector<2x8x1xf32> to vector<2x8x8xf32>
    %300 = arith.mulf %295, %299 : vector<2x8x8xf32>
    %301 = arith.truncf %300 : vector<2x8x8xf32> to vector<2x8x8xbf16>
    %302 = arith.truncf %284 : vector<2x8x8xf32> to vector<2x8x8xbf16>
    "tpu.trace_start"() <{level = 10 : i32, message = "bqk,bkd->bqd"}> : () -> ()
    %cst_102 = arith.constant dense<0.000000e+00> : vector<2x8x8xf32>
    %303 = tpu.matmul %301, %302, %cst_102 {dimension_numbers = #tpu.dot_dimension_numbers<[2], [1], [1], [2], [0, 0, 0, 1, 1, 2], [0], [0]>} : vector<2x8x8xbf16>, vector<2x8x8xbf16>, vector<2x8x8xf32> -> vector<2x8x8xf32>
    "tpu.trace_stop"() : () -> ()
    %304 = vector.shape_cast %303 : vector<2x8x8xf32> to vector<16x8xf32>
    %305 = vector.extract_strided_slice %277 {offsets = [0, 0], sizes = [8, 32], strides = [1, 1]} : vector<32x32xf32> to vector<8x32xf32>
    %306 = arith.truncf %304 : vector<16x8xf32> to vector<16x8xbf16>
    %307 = arith.truncf %305 : vector<8x32xf32> to vector<8x32xbf16>
    %cst_103 = arith.constant dense<0.000000e+00> : vector<16x32xf32>
    %308 = tpu.matmul %306, %307, %cst_103 {dimension_numbers = #tpu.dot_dimension_numbers<[1], [0], [0], [1], [0, 0, 1, 1], [], []>} : vector<16x8xbf16>, vector<8x32xbf16>, vector<16x32xf32> -> vector<16x32xf32>
    %309 = arith.addf %278, %308 : vector<16x32xf32>
    %310 = vector.extract_strided_slice %275 {offsets = [0, 8], sizes = [16, 8], strides = [1, 1]} : vector<16x96xf32> to vector<16x8xf32>
    %311 = vector.shape_cast %310 : vector<16x8xf32> to vector<2x8x8xf32>
    %312 = vector.extract_strided_slice %275 {offsets = [0, 40], sizes = [16, 8], strides = [1, 1]} : vector<16x96xf32> to vector<16x8xf32>
    %313 = vector.shape_cast %312 : vector<16x8xf32> to vector<2x8x8xf32>
    %314 = vector.extract_strided_slice %275 {offsets = [0, 72], sizes = [16, 8], strides = [1, 1]} : vector<16x96xf32> to vector<16x8xf32>
    %315 = vector.shape_cast %314 : vector<16x8xf32> to vector<2x8x8xf32>
    %316 = arith.truncf %311 : vector<2x8x8xf32> to vector<2x8x8xbf16>
    %317 = arith.truncf %313 : vector<2x8x8xf32> to vector<2x8x8xbf16>
    "tpu.trace_start"() <{level = 10 : i32, message = "bqd,bkd->bqk"}> : () -> ()
    %cst_104 = arith.constant dense<0.000000e+00> : vector<2x8x8xf32>
    %318 = tpu.matmul %316, %317, %cst_104 {dimension_numbers = #tpu.dot_dimension_numbers<[2], [2], [1], [1], [0, 0, 0, 1, 1, 1], [0], [0]>} : vector<2x8x8xbf16>, vector<2x8x8xbf16>, vector<2x8x8xf32> -> vector<2x8x8xf32>
    "tpu.trace_stop"() : () -> ()
    %cst_105 = arith.constant 0.353553385 : f32
    %319 = vector.broadcast %cst_105 : f32 to vector<2x8x8xf32>
    %320 = arith.mulf %318, %319 : vector<2x8x8xf32>
    %321 = arith.addf %320, %26 : vector<2x8x8xf32>
    %cst_106 = arith.constant dense<0xFF800000> : vector<2x8xf32>
    %322 = vector.multi_reduction <maximumf>, %321, %cst_106 [2] : vector<2x8x8xf32> to vector<2x8xf32>
    %323 = vector.shape_cast %322 : vector<2x8xf32> to vector<2x8x1xf32>
    %324 = vector.broadcast %323 : vector<2x8x1xf32> to vector<2x8x8xf32>
    %325 = arith.subf %321, %324 : vector<2x8x8xf32>
    %326 = math.exp %325 : vector<2x8x8xf32>
    %cst_107 = arith.constant dense<0.000000e+00> : vector<2x8xf32>
    %327 = vector.multi_reduction <add>, %326, %cst_107 [2] : vector<2x8x8xf32> to vector<2x8xf32>
    %328 = vector.shape_cast %327 : vector<2x8xf32> to vector<2x8x1xf32>
    %329 = tpu.reciprocal %328 {approx = true} : vector<2x8x1xf32> -> vector<2x8x1xf32>
    %330 = vector.broadcast %329 : vector<2x8x1xf32> to vector<2x8x8xf32>
    %331 = arith.mulf %326, %330 : vector<2x8x8xf32>
    %332 = arith.truncf %331 : vector<2x8x8xf32> to vector<2x8x8xbf16>
    %333 = arith.truncf %315 : vector<2x8x8xf32> to vector<2x8x8xbf16>
    "tpu.trace_start"() <{level = 10 : i32, message = "bqk,bkd->bqd"}> : () -> ()
    %cst_108 = arith.constant dense<0.000000e+00> : vector<2x8x8xf32>
    %334 = tpu.matmul %332, %333, %cst_108 {dimension_numbers = #tpu.dot_dimension_numbers<[2], [1], [1], [2], [0, 0, 0, 1, 1, 2], [0], [0]>} : vector<2x8x8xbf16>, vector<2x8x8xbf16>, vector<2x8x8xf32> -> vector<2x8x8xf32>
    "tpu.trace_stop"() : () -> ()
    %335 = vector.shape_cast %334 : vector<2x8x8xf32> to vector<16x8xf32>
    %336 = vector.extract_strided_slice %277 {offsets = [8, 0], sizes = [8, 32], strides = [1, 1]} : vector<32x32xf32> to vector<8x32xf32>
    %337 = arith.truncf %335 : vector<16x8xf32> to vector<16x8xbf16>
    %338 = arith.truncf %336 : vector<8x32xf32> to vector<8x32xbf16>
    %cst_109 = arith.constant dense<0.000000e+00> : vector<16x32xf32>
    %339 = tpu.matmul %337, %338, %cst_109 {dimension_numbers = #tpu.dot_dimension_numbers<[1], [0], [0], [1], [0, 0, 1, 1], [], []>} : vector<16x8xbf16>, vector<8x32xbf16>, vector<16x32xf32> -> vector<16x32xf32>
    %340 = arith.addf %309, %339 : vector<16x32xf32>
    %341 = vector.extract_strided_slice %275 {offsets = [0, 16], sizes = [16, 8], strides = [1, 1]} : vector<16x96xf32> to vector<16x8xf32>
    %342 = vector.shape_cast %341 : vector<16x8xf32> to vector<2x8x8xf32>
    %343 = vector.extract_strided_slice %275 {offsets = [0, 48], sizes = [16, 8], strides = [1, 1]} : vector<16x96xf32> to vector<16x8xf32>
    %344 = vector.shape_cast %343 : vector<16x8xf32> to vector<2x8x8xf32>
    %345 = vector.extract_strided_slice %275 {offsets = [0, 80], sizes = [16, 8], strides = [1, 1]} : vector<16x96xf32> to vector<16x8xf32>
    %346 = vector.shape_cast %345 : vector<16x8xf32> to vector<2x8x8xf32>
    %347 = arith.truncf %342 : vector<2x8x8xf32> to vector<2x8x8xbf16>
    %348 = arith.truncf %344 : vector<2x8x8xf32> to vector<2x8x8xbf16>
    "tpu.trace_start"() <{level = 10 : i32, message = "bqd,bkd->bqk"}> : () -> ()
    %cst_110 = arith.constant dense<0.000000e+00> : vector<2x8x8xf32>
    %349 = tpu.matmul %347, %348, %cst_110 {dimension_numbers = #tpu.dot_dimension_numbers<[2], [2], [1], [1], [0, 0, 0, 1, 1, 1], [0], [0]>} : vector<2x8x8xbf16>, vector<2x8x8xbf16>, vector<2x8x8xf32> -> vector<2x8x8xf32>
    "tpu.trace_stop"() : () -> ()
    %cst_111 = arith.constant 0.353553385 : f32
    %350 = vector.broadcast %cst_111 : f32 to vector<2x8x8xf32>
    %351 = arith.mulf %349, %350 : vector<2x8x8xf32>
    %352 = arith.addf %351, %26 : vector<2x8x8xf32>
    %cst_112 = arith.constant dense<0xFF800000> : vector<2x8xf32>
    %353 = vector.multi_reduction <maximumf>, %352, %cst_112 [2] : vector<2x8x8xf32> to vector<2x8xf32>
    %354 = vector.shape_cast %353 : vector<2x8xf32> to vector<2x8x1xf32>
    %355 = vector.broadcast %354 : vector<2x8x1xf32> to vector<2x8x8xf32>
    %356 = arith.subf %352, %355 : vector<2x8x8xf32>
    %357 = math.exp %356 : vector<2x8x8xf32>
    %cst_113 = arith.constant dense<0.000000e+00> : vector<2x8xf32>
    %358 = vector.multi_reduction <add>, %357, %cst_113 [2] : vector<2x8x8xf32> to vector<2x8xf32>
    %359 = vector.shape_cast %358 : vector<2x8xf32> to vector<2x8x1xf32>
    %360 = tpu.reciprocal %359 {approx = true} : vector<2x8x1xf32> -> vector<2x8x1xf32>
    %361 = vector.broadcast %360 : vector<2x8x1xf32> to vector<2x8x8xf32>
    %362 = arith.mulf %357, %361 : vector<2x8x8xf32>
    %363 = arith.truncf %362 : vector<2x8x8xf32> to vector<2x8x8xbf16>
    %364 = arith.truncf %346 : vector<2x8x8xf32> to vector<2x8x8xbf16>
    "tpu.trace_start"() <{level = 10 : i32, message = "bqk,bkd->bqd"}> : () -> ()
    %cst_114 = arith.constant dense<0.000000e+00> : vector<2x8x8xf32>
    %365 = tpu.matmul %363, %364, %cst_114 {dimension_numbers = #tpu.dot_dimension_numbers<[2], [1], [1], [2], [0, 0, 0, 1, 1, 2], [0], [0]>} : vector<2x8x8xbf16>, vector<2x8x8xbf16>, vector<2x8x8xf32> -> vector<2x8x8xf32>
    "tpu.trace_stop"() : () -> ()
    %366 = vector.shape_cast %365 : vector<2x8x8xf32> to vector<16x8xf32>
    %367 = vector.extract_strided_slice %277 {offsets = [16, 0], sizes = [8, 32], strides = [1, 1]} : vector<32x32xf32> to vector<8x32xf32>
    %368 = arith.truncf %366 : vector<16x8xf32> to vector<16x8xbf16>
    %369 = arith.truncf %367 : vector<8x32xf32> to vector<8x32xbf16>
    %cst_115 = arith.constant dense<0.000000e+00> : vector<16x32xf32>
    %370 = tpu.matmul %368, %369, %cst_115 {dimension_numbers = #tpu.dot_dimension_numbers<[1], [0], [0], [1], [0, 0, 1, 1], [], []>} : vector<16x8xbf16>, vector<8x32xbf16>, vector<16x32xf32> -> vector<16x32xf32>
    %371 = arith.addf %340, %370 : vector<16x32xf32>
    %372 = vector.extract_strided_slice %275 {offsets = [0, 24], sizes = [16, 8], strides = [1, 1]} : vector<16x96xf32> to vector<16x8xf32>
    %373 = vector.shape_cast %372 : vector<16x8xf32> to vector<2x8x8xf32>
    %374 = vector.extract_strided_slice %275 {offsets = [0, 56], sizes = [16, 8], strides = [1, 1]} : vector<16x96xf32> to vector<16x8xf32>
    %375 = vector.shape_cast %374 : vector<16x8xf32> to vector<2x8x8xf32>
    %376 = vector.extract_strided_slice %275 {offsets = [0, 88], sizes = [16, 8], strides = [1, 1]} : vector<16x96xf32> to vector<16x8xf32>
    %377 = vector.shape_cast %376 : vector<16x8xf32> to vector<2x8x8xf32>
    %378 = arith.truncf %373 : vector<2x8x8xf32> to vector<2x8x8xbf16>
    %379 = arith.truncf %375 : vector<2x8x8xf32> to vector<2x8x8xbf16>
    "tpu.trace_start"() <{level = 10 : i32, message = "bqd,bkd->bqk"}> : () -> ()
    %cst_116 = arith.constant dense<0.000000e+00> : vector<2x8x8xf32>
    %380 = tpu.matmul %378, %379, %cst_116 {dimension_numbers = #tpu.dot_dimension_numbers<[2], [2], [1], [1], [0, 0, 0, 1, 1, 1], [0], [0]>} : vector<2x8x8xbf16>, vector<2x8x8xbf16>, vector<2x8x8xf32> -> vector<2x8x8xf32>
    "tpu.trace_stop"() : () -> ()
    %cst_117 = arith.constant 0.353553385 : f32
    %381 = vector.broadcast %cst_117 : f32 to vector<2x8x8xf32>
    %382 = arith.mulf %380, %381 : vector<2x8x8xf32>
    %383 = arith.addf %382, %26 : vector<2x8x8xf32>
    %cst_118 = arith.constant dense<0xFF800000> : vector<2x8xf32>
    %384 = vector.multi_reduction <maximumf>, %383, %cst_118 [2] : vector<2x8x8xf32> to vector<2x8xf32>
    %385 = vector.shape_cast %384 : vector<2x8xf32> to vector<2x8x1xf32>
    %386 = vector.broadcast %385 : vector<2x8x1xf32> to vector<2x8x8xf32>
    %387 = arith.subf %383, %386 : vector<2x8x8xf32>
    %388 = math.exp %387 : vector<2x8x8xf32>
    %cst_119 = arith.constant dense<0.000000e+00> : vector<2x8xf32>
    %389 = vector.multi_reduction <add>, %388, %cst_119 [2] : vector<2x8x8xf32> to vector<2x8xf32>
    %390 = vector.shape_cast %389 : vector<2x8xf32> to vector<2x8x1xf32>
    %391 = tpu.reciprocal %390 {approx = true} : vector<2x8x1xf32> -> vector<2x8x1xf32>
    %392 = vector.broadcast %391 : vector<2x8x1xf32> to vector<2x8x8xf32>
    %393 = arith.mulf %388, %392 : vector<2x8x8xf32>
    %394 = arith.truncf %393 : vector<2x8x8xf32> to vector<2x8x8xbf16>
    %395 = arith.truncf %377 : vector<2x8x8xf32> to vector<2x8x8xbf16>
    "tpu.trace_start"() <{level = 10 : i32, message = "bqk,bkd->bqd"}> : () -> ()
    %cst_120 = arith.constant dense<0.000000e+00> : vector<2x8x8xf32>
    %396 = tpu.matmul %394, %395, %cst_120 {dimension_numbers = #tpu.dot_dimension_numbers<[2], [1], [1], [2], [0, 0, 0, 1, 1, 2], [0], [0]>} : vector<2x8x8xbf16>, vector<2x8x8xbf16>, vector<2x8x8xf32> -> vector<2x8x8xf32>
    "tpu.trace_stop"() : () -> ()
    %397 = vector.shape_cast %396 : vector<2x8x8xf32> to vector<16x8xf32>
    %398 = vector.extract_strided_slice %277 {offsets = [24, 0], sizes = [8, 32], strides = [1, 1]} : vector<32x32xf32> to vector<8x32xf32>
    %399 = arith.truncf %397 : vector<16x8xf32> to vector<16x8xbf16>
    %400 = arith.truncf %398 : vector<8x32xf32> to vector<8x32xbf16>
    %cst_121 = arith.constant dense<0.000000e+00> : vector<16x32xf32>
    %401 = tpu.matmul %399, %400, %cst_121 {dimension_numbers = #tpu.dot_dimension_numbers<[1], [0], [0], [1], [0, 0, 1, 1], [], []>} : vector<16x8xbf16>, vector<8x32xbf16>, vector<16x32xf32> -> vector<16x32xf32>
    %402 = arith.addf %371, %401 : vector<16x32xf32>
    %403 = arith.addf %243, %402 : vector<16x32xf32>
    %c1_122 = arith.constant 1 : index
    %c0_123 = arith.constant 0 : index
    %404 = vector.load %arg11[%c1_122, %c0_123] : memref<2x32xf32, #tpu.memory_space<vmem>>, vector<1x32xf32>
    %405 = vector.broadcast %404 : vector<1x32xf32> to vector<16x32xf32>
    %406 = arith.addf %403, %405 : vector<16x32xf32>
    %c1_124 = arith.constant 1 : index
    %c0_125 = arith.constant 0 : index
    %407 = vector.load %arg12[%c1_124, %c0_125] : memref<2x32xf32, #tpu.memory_space<vmem>>, vector<1x32xf32>
    %c1_126 = arith.constant 1 : index
    %c0_127 = arith.constant 0 : index
    %408 = vector.load %arg13[%c1_126, %c0_127] : memref<2x32xf32, #tpu.memory_space<vmem>>, vector<1x32xf32>
    %cst_128 = arith.constant dense<0.000000e+00> : vector<16xf32>
    %409 = vector.multi_reduction <add>, %406, %cst_128 [1] : vector<16x32xf32> to vector<16xf32>
    %410 = vector.shape_cast %409 : vector<16xf32> to vector<16x1xf32>
    %cst_129 = arith.constant 3.200000e+01 : f32
    %411 = vector.broadcast %cst_129 : f32 to vector<16x1xf32>
    %412 = arith.divf %410, %411 : vector<16x1xf32>
    %413 = vector.broadcast %412 : vector<16x1xf32> to vector<16x32xf32>
    %414 = arith.subf %406, %413 : vector<16x32xf32>
    %415 = arith.mulf %414, %414 : vector<16x32xf32>
    %cst_130 = arith.constant dense<0.000000e+00> : vector<16xf32>
    %416 = vector.multi_reduction <add>, %415, %cst_130 [1] : vector<16x32xf32> to vector<16xf32>
    %417 = vector.shape_cast %416 : vector<16xf32> to vector<16x1xf32>
    %cst_131 = arith.constant 3.200000e+01 : f32
    %418 = vector.broadcast %cst_131 : f32 to vector<16x1xf32>
    %419 = arith.divf %417, %418 : vector<16x1xf32>
    %420 = vector.broadcast %412 : vector<16x1xf32> to vector<16x32xf32>
    %421 = arith.subf %406, %420 : vector<16x32xf32>
    %cst_132 = arith.constant 9.99999974E-6 : f32
    %422 = vector.broadcast %cst_132 : f32 to vector<16x1xf32>
    %423 = arith.addf %419, %422 : vector<16x1xf32>
    %424 = math.rsqrt %423 : vector<16x1xf32>
    %425 = vector.broadcast %424 : vector<16x1xf32> to vector<16x32xf32>
    %426 = arith.mulf %421, %425 : vector<16x32xf32>
    %427 = vector.broadcast %407 : vector<1x32xf32> to vector<16x32xf32>
    %428 = arith.mulf %426, %427 : vector<16x32xf32>
    %429 = vector.broadcast %408 : vector<1x32xf32> to vector<16x32xf32>
    %430 = arith.addf %428, %429 : vector<16x32xf32>
    %c1_133 = arith.constant 1 : index
    %c0_134 = arith.constant 0 : index
    %c0_135 = arith.constant 0 : index
    %431 = vector.load %arg14[%c1_133, %c0_134, %c0_135] : memref<2x32x128xf32, #tpu.memory_space<vmem>>, vector<1x32x128xf32>
    %432 = vector.shape_cast %431 : vector<1x32x128xf32> to vector<32x128xf32>
    %433 = arith.truncf %430 : vector<16x32xf32> to vector<16x32xbf16>
    %434 = arith.truncf %432 : vector<32x128xf32> to vector<32x128xbf16>
    %cst_136 = arith.constant dense<0.000000e+00> : vector<16x128xf32>
    %435 = tpu.matmul %433, %434, %cst_136 {dimension_numbers = #tpu.dot_dimension_numbers<[1], [0], [0], [1], [0, 0, 1, 1], [], []>} : vector<16x32xbf16>, vector<32x128xbf16>, vector<16x128xf32> -> vector<16x128xf32>
    %c1_137 = arith.constant 1 : index
    %c0_138 = arith.constant 0 : index
    %436 = vector.load %arg15[%c1_137, %c0_138] : memref<2x128xf32, #tpu.memory_space<vmem>>, vector<1x128xf32>
    %437 = vector.broadcast %436 : vector<1x128xf32> to vector<16x128xf32>
    %438 = arith.addf %435, %437 : vector<16x128xf32>
    %cst_139 = arith.constant 5.000000e-01 : f32
    %439 = vector.broadcast %cst_139 : f32 to vector<16x128xf32>
    %440 = arith.mulf %439, %438 : vector<16x128xf32>
    %cst_140 = arith.constant 4.471500e-02 : f32
    %441 = vector.broadcast %cst_140 : f32 to vector<16x128xf32>
    %442 = arith.mulf %441, %438 : vector<16x128xf32>
    %443 = arith.mulf %442, %438 : vector<16x128xf32>
    %444 = arith.mulf %443, %438 : vector<16x128xf32>
    %445 = arith.addf %438, %444 : vector<16x128xf32>
    %cst_141 = arith.constant 0.797884583 : f32
    %446 = vector.broadcast %cst_141 : f32 to vector<16x128xf32>
    %447 = arith.mulf %446, %445 : vector<16x128xf32>
    %448 = math.tanh %447 : vector<16x128xf32>
    %cst_142 = arith.constant 1.000000e+00 : f32
    %449 = vector.broadcast %cst_142 : f32 to vector<16x128xf32>
    %450 = arith.addf %449, %448 : vector<16x128xf32>
    %451 = arith.mulf %440, %450 : vector<16x128xf32>
    %c1_143 = arith.constant 1 : index
    %c0_144 = arith.constant 0 : index
    %c0_145 = arith.constant 0 : index
    %452 = vector.load %arg16[%c1_143, %c0_144, %c0_145] : memref<2x128x32xf32, #tpu.memory_space<vmem>>, vector<1x128x32xf32>
    %453 = vector.shape_cast %452 : vector<1x128x32xf32> to vector<128x32xf32>
    %454 = arith.truncf %451 : vector<16x128xf32> to vector<16x128xbf16>
    %455 = arith.truncf %453 : vector<128x32xf32> to vector<128x32xbf16>
    %cst_146 = arith.constant dense<0.000000e+00> : vector<16x32xf32>
    %456 = tpu.matmul %454, %455, %cst_146 {dimension_numbers = #tpu.dot_dimension_numbers<[1], [0], [0], [1], [0, 0, 1, 1], [], []>} : vector<16x128xbf16>, vector<128x32xbf16>, vector<16x32xf32> -> vector<16x32xf32>
    %457 = arith.addf %406, %456 : vector<16x32xf32>
    %c1_147 = arith.constant 1 : index
    %c0_148 = arith.constant 0 : index
    %458 = vector.load %arg17[%c1_147, %c0_148] : memref<2x32xf32, #tpu.memory_space<vmem>>, vector<1x32xf32>
    %459 = vector.broadcast %458 : vector<1x32xf32> to vector<16x32xf32>
    %460 = arith.addf %457, %459 : vector<16x32xf32>
    %c0_149 = arith.constant 0 : index
    %c0_150 = arith.constant 0 : index
    %461 = vector.load %arg4[%c0_149, %c0_150] : memref<1x32xf32, #tpu.memory_space<vmem>>, vector<1x32xf32>
    %c0_151 = arith.constant 0 : index
    %c0_152 = arith.constant 0 : index
    %462 = vector.load %arg5[%c0_151, %c0_152] : memref<1x32xf32, #tpu.memory_space<vmem>>, vector<1x32xf32>
    %cst_153 = arith.constant dense<0.000000e+00> : vector<16xf32>
    %463 = vector.multi_reduction <add>, %460, %cst_153 [1] : vector<16x32xf32> to vector<16xf32>
    %464 = vector.shape_cast %463 : vector<16xf32> to vector<16x1xf32>
    %cst_154 = arith.constant 3.200000e+01 : f32
    %465 = vector.broadcast %cst_154 : f32 to vector<16x1xf32>
    %466 = arith.divf %464, %465 : vector<16x1xf32>
    %467 = vector.broadcast %466 : vector<16x1xf32> to vector<16x32xf32>
    %468 = arith.subf %460, %467 : vector<16x32xf32>
    %469 = arith.mulf %468, %468 : vector<16x32xf32>
    %cst_155 = arith.constant dense<0.000000e+00> : vector<16xf32>
    %470 = vector.multi_reduction <add>, %469, %cst_155 [1] : vector<16x32xf32> to vector<16xf32>
    %471 = vector.shape_cast %470 : vector<16xf32> to vector<16x1xf32>
    %cst_156 = arith.constant 3.200000e+01 : f32
    %472 = vector.broadcast %cst_156 : f32 to vector<16x1xf32>
    %473 = arith.divf %471, %472 : vector<16x1xf32>
    %474 = vector.broadcast %466 : vector<16x1xf32> to vector<16x32xf32>
    %475 = arith.subf %460, %474 : vector<16x32xf32>
    %cst_157 = arith.constant 9.99999974E-6 : f32
    %476 = vector.broadcast %cst_157 : f32 to vector<16x1xf32>
    %477 = arith.addf %473, %476 : vector<16x1xf32>
    %478 = math.rsqrt %477 : vector<16x1xf32>
    %479 = vector.broadcast %478 : vector<16x1xf32> to vector<16x32xf32>
    %480 = arith.mulf %475, %479 : vector<16x32xf32>
    %481 = vector.broadcast %461 : vector<1x32xf32> to vector<16x32xf32>
    %482 = arith.mulf %480, %481 : vector<16x32xf32>
    %483 = vector.broadcast %462 : vector<1x32xf32> to vector<16x32xf32>
    %484 = arith.addf %482, %483 : vector<16x32xf32>
    %485 = arith.truncf %484 : vector<16x32xf32> to vector<16x32xbf16>
    %cst_158 = arith.constant dense<0.000000e+00> : vector<16x128xf32>
    %486 = tpu.matmul %485, %1, %cst_158 {dimension_numbers = #tpu.dot_dimension_numbers<[1], [1], [0], [0], [0, 0, 1, 0], [], []>} : vector<16x32xbf16>, vector<128x32xbf16>, vector<16x128xf32> -> vector<16x128xf32>
    %c0_159 = arith.constant 0 : index
    %c0_160 = arith.constant 0 : index
    %487 = vector.load %arg18[%c0_159, %c0_160] : memref<16x128xf32, #tpu.memory_space<vmem>>, vector<16x128xf32>
    tpu.vector_store %arg18[%c0_159, %c0_160], %486 {strides = array<i32>} : memref<16x128xf32, #tpu.memory_space<vmem>>, vector<16x128xf32>,
    return
  }
}

</mosaic_0001>

<bundles_post_ra>
// kernel: qa_generator_forward.1
= control target key start
LH: loop header
LB: loop body
LE: loop exit
PB: predicated region body
PF: predicated region fallthrough
CT: control target
= control target key end

     0   :  { %s4779_s0 = inlined_call_operand.vmem [shape: s32[16,1], index: 0, kind: input, shape index: {}]   ;;  %s4780_s1 = inlined_call_operand.vmem [shape: f32[2,1,8], index: 1, kind: input, shape index: {}]   ;;  %s4781_s2 = inlined_call_operand.vmem [shape: f32[128,32], index: 2, kind: input, shape index: {}]   ;;  %s4782_s3 = inlined_call_operand.vmem [shape: f32[32,32], index: 3, kind: input, shape index: {}]   ;;  %s4783_s4 = inlined_call_operand.vmem [shape: f32[1,32], index: 4, kind: input, shape index: {}]   ;;  %s4784_s5 = inlined_call_operand.vmem [shape: f32[1,32], index: 5, kind: input, shape index: {}]   ;;  %s4785_s6 = inlined_call_operand.vmem [shape: f32[2,32], index: 6, kind: input, shape index: {}]   ;;  %s4786_s7 = inlined_call_operand.vmem [shape: f32[2,32], index: 7, kind: input, shape index: {}]   ;;  %s4787_s8 = inlined_call_operand.vmem [shape: f32[2,32,96], index: 8, kind: input, shape index: {}]   ;;  %s4788_s9 = inlined_call_operand.vmem [shape: f32[2,96], index: 9, kind: input, shape index: {}]   ;;  %s4789_s10 = inlined_call_operand.vmem [shape: f32[2,32,32], index: 10, kind: input, shape index: {}]   ;;  %s4790_s11 = inlined_call_operand.vmem [shape: f32[2,32], index: 11, kind: input, shape index: {}]   ;;  %s4791_s12 = inlined_call_operand.vmem [shape: f32[2,32], index: 12, kind: input, shape index: {}]   ;;  %s4792_s13 = inlined_call_operand.vmem [shape: f32[2,32], index: 13, kind: input, shape index: {}]   ;;  %s4793_s14 = inlined_call_operand.vmem [shape: f32[2,32,128], index: 14, kind: input, shape index: {}]   ;;  %s4794_s15 = inlined_call_operand.vmem [shape: f32[2,128], index: 15, kind: input, shape index: {}]   ;;  %s4795_s16 = inlined_call_operand.vmem [shape: f32[2,128,32], index: 16, kind: input, shape index: {}]   ;;  %s4796_s17 = inlined_call_operand.vmem [shape: f32[2,32], index: 17, kind: input, shape index: {}]   ;;  %s4797_s18 = inlined_call_operand.hbm [shape: f32[16,128], index: 18, kind: output, shape index: {}]  }
   0x1   :  { %4807 = sst [smem:[#allocation5_spill]] %s4779_s0 }
   0x2   :  { %4808 = sst [smem:[#allocation6_spill]] %s4780_s1 }
   0x3   :  { %4809 = sst [smem:[#allocation7_spill]] %s4781_s2 }
   0x4   :  { %4810 = sst [smem:[#allocation8_spill]] %s4784_s5 }
   0x5   :  { %s4811_s29 = sld [smem:[#allocation5_spill]]  ;;  %s4812_s5 = sld [smem:[#allocation7_spill]]  ;;  %v3806_v2 = vmov 0   ;;  %v3807_v3 = vmov 0.0  }
   0x6   :  { %3689 = vset.pattern.permute.xlu0 %v3806_v2  ;;  %3318 = vmatprep.subr.bf16.mxu0 %v3807_v3 }
   0x7   :  { %3352 = vmatprep.subr.bf16.mxu1 %v3807_v3 }
   0xb   :  { %v85_v0 = vld [vmem:[%s4811_s29] sm:$0xff]  ;;  %v62_v4 = vld [vmem:[%s4812_s5 + $0x8] sm:$0xff]  ;;  %v63_v5 = vld [vmem:[%s4812_s5 + $0x10] sm:$0xff] }
   0xc   :  { %v61_v1 = vld [vmem:[%s4812_s5] sm:$0xff]  ;;  %v64_v6 = vld [vmem:[%s4812_s5 + $0x18] sm:$0xff]  ;;  %90 = vperm.xlu0 %3689, %v85_v0   ;;  %v86_v8 = vld [vmem:[%s4811_s29 + $0x8] sm:$0xff] }
   0xd   :  { %v3936_v7 = vpack.c.bf16 %v62_v4, %v61_v1  ;;  %v3943_v9 = vpack.c.bf16 %v64_v6, %v63_v5  ;;  %v65_v10 = vld [vmem:[%s4812_s5 + $0x20] sm:$0xff]  ;;  %v66_v11 = vld [vmem:[%s4812_s5 + $0x28] sm:$0xff] }
   0xf   :  { %3319 = vmatpush3.bf16.msra.mxu0 %v3936_v7 }
  0x10   :  { %3320 = vmatprep.subr.bf16.mxu0 %v3807_v3  ;;  %93 = vperm.xlu0 %3689, %v86_v8  }
  0x11   :  { %23 = vsyncpa [#allocation3], 0  ;;  %vm3808_vm0 = vmmov 0   ;;  %v3957_v12 = vpack.c.bf16 %v66_v11, %v65_v10  ;;  %v67_v13 = vld [vmem:[%s4812_s5 + $0x30] sm:$0xff]  ;;  %v68_v14 = vld [vmem:[%s4812_s5 + $0x38] sm:$0xff]  ;;  %v87_v28 = vlaneseq  ;;  %vm168_vm4 = vcmask 261120  }
  0x12   :  { %3334 = vmatprep.mubr.msk.bf16.mxu0 %vm3808_vm0, %v3807_v3  ;;  %3354 = vmatprep.mubr.msk.bf16.mxu1 %vm3808_vm0, %v3807_v3  ;;  %v3967_v15 = vpack.c.bf16 %v68_v14, %v67_v13  ;;  %v69_v16 = vld [vmem:[%s4812_s5 + $0x40] sm:$0xff]  ;;  %v70_v17 = vld [vmem:[%s4812_s5 + $0x48] sm:$0xff]  ;;  %v71_v19 = vld [vmem:[%s4812_s5 + $0x50] sm:$0xff]  ;;  %v3809_v32 = vmov 1.0|1.0   ;;  %s3810_s1 = smov 96  }
  0x13   :  { %3321 = vmatpush3.bf16.msra.mxu0 %v3943_v9  ;;  %v3977_v18 = vpack.c.bf16 %v70_v17, %v69_v16  ;;  %v72_v20 = vld [vmem:[%s4812_s5 + $0x58] sm:$0xff]  ;;  %v73_v22 = vld [vmem:[%s4812_s5 + $0x60] sm:$0xff]  ;;  %v74_v23 = vld [vmem:[%s4812_s5 + $0x68] sm:$0xff]  ;;  %v4013_v30 = vand.u32 127, %v87_v28  ;;  %vm273_vm5 = vcmask 64512   ;;  %s3812_s2 = smov 64  }
  0x14   :  { %3322 = vmatprep.subr.bf16.mxu0 %v3807_v3  ;;  %v3987_v21 = vpack.c.bf16 %v72_v20, %v71_v19  ;;  %v3997_v24 = vpack.c.bf16 %v74_v23, %v73_v22  ;;  %v75_v25 = vld [vmem:[%s4812_s5 + $0x70] sm:$0xff]  ;;  %v76_v26 = vld [vmem:[%s4812_s5 + $0x78] sm:$0xff]  ;;  %v143_v33 = vld [vmem:[%s4782_s3] sm:$0xff]  ;;  %s4813_s3 = sld [smem:[#allocation6_spill]]  ;;  %s3813_s23 = smov 88   ;;  %vm402_vm7 = vcmask 1043456  }
  0x15   :  { %v4007_v27 = vpack.c.bf16 %v76_v26, %v75_v25  ;;  %v208_v52 = vld [vmem:[%s4787_s8] sm:$0xff]  ;;  %v209_v53 = vld [vmem:[%s4787_s8 + $0x8] sm:$0xff]  ;;  %v210_v55 = vld [vmem:[%s4787_s8 + $0x10] sm:$0xff]  ;;  %s3814_s24 = smov 120   ;;  %s3815_s25 = smov 56  }
  0x16   :  { %v213_v54 = vpack.c.bf16 %v209_v53, %v208_v52  ;;  %v211_v56 = vld [vmem:[%s4787_s8 + $0x18] sm:$0xff]  ;;  %v3099_v2 = vld [vmem:[%s4785_s6] ss:$0 sm:$0xff]  ;;  %s3816_s26 = smov 80   ;;  %s3817_s27 = smov 112  }
  0x17   :  { %3323 = vmatpush3.bf16.msra.mxu0 %v3957_v12  ;;  %v214_v57 = vpack.c.bf16 %v211_v56, %v210_v55  ;;  %v3100_v8 = vld [vmem:[%s4786_s7] ss:$0 sm:$0xff]  ;;  %s3818_s19 = smov 48   ;;  %s4805_s5 = smov 72  }
  0x18   :  { %3324 = vmatprep.subr.bf16.mxu0 %v3807_v3  ;;  %v3101_v16 = vld [vmem:[%s4788_s9] ss:$0 sm:$0xff]  ;;  %s4803_s20 = smov 104   ;;  %s4801_s22 = smov 40  }
  0x1b   :  { %3325 = vmatpush3.bf16.msra.mxu0 %v3967_v15 }
  0x1c   :  { %3326 = vmatprep.subr.bf16.mxu0 %v3807_v3 }
  0x1f   :  { %3327 = vmatpush3.bf16.msra.mxu0 %v3977_v18 }
  0x20   :  { %3328 = vmatprep.subr.bf16.mxu0 %v3807_v3 }
  0x23   :  { %3329 = vmatpush3.bf16.msra.mxu0 %v3987_v21 }
  0x24   :  { %3330 = vmatprep.subr.bf16.mxu0 %v3807_v3 }
  0x27   :  { %3331 = vmatpush3.bf16.msra.mxu0 %v3997_v24 }
  0x28   :  { %3332 = vmatprep.subr.bf16.mxu0 %v3807_v3 }
  0x2b   :  { %3333 = vmatpush3.bf16.msra.mxu0 %v4007_v27 }
  0x2c   :  { %3338 = vmatprep.subr.bf16.mxu0 %v3807_v3 }
  0x8b   :  { %v91_v29 = vpop.permute.xlu0 %90 }
  0x8c   :  { %vm95_vm1 = vcmp.eq.s32.totalorder %v91_v29, %v4013_v30 }
  0x8f   :  { %v94_v31 = vpop.permute.xlu0 %93 }
  0x90   :  { %vm96_vm2 = vcmp.eq.s32.totalorder %v94_v31, %v4013_v30 }
  0x91   :  { %vm3095_vm3 = vmpackc.low %vm96_vm2, %vm95_vm1 }
  0x92   :  { %3335 = vmatmul.mubr.msk.bf16.vlgmr.msra.gmra.mrb[0].mxu0 %vm3095_vm3, %v3809_v32 }
  0x93   :  { %3342 = vmatprep.mubr.msk.bf16.mxu0 %vm3808_vm0, %v3807_v3  ;;  %3339 = vmatpush3.bf16.msra.mxu0 %v213_v54 }
  0x94   :  { %3340 = vmatprep.subr.bf16.mxu0 %v3807_v3 }
  0x97   :  { %3341 = vmatpush3.bf16.msra.mxu0 %v214_v57 }
  0x98   :  { %3346 = vmatprep.subr.bf16.mxu0 %v3807_v3 }
 0x165   :  { %v136_v34 = vpop.f32.mrb[0].mxu0 }
 0x166   :  { %v4022_v35 = vadd.f32 %v143_v33, %v136_v34  ;;  %v3336_v36 = vpop.f32.mrb[1].mxu0 }
 0x167   :  { %v139_v37 = vpop.f32.mrb[2].mxu0  ;;  %v147_v36 = vshrl.u32 %v87_v28, 7 }
 0x168   :  { %v4024_v38 = vadd.f32 %v143_v33, %v139_v37  ;;  %v3337_v39 = vpop.f32.mrb[3].mxu0  ;;  %v169_v40 = vsel %vm168_vm4, %v4022_v35, 0.0  ;;  %v3811_v37 = vmov -1e+09  }
 0x169   :  { %170 = vadd.xlane.f32.xlu1 %v169_v40  ;;  %vm148_vm6 = vcmp.le.s32.totalorder %v4013_v30, %v147_v36  ;;  %v3097_v40 = vld [vmem:[%s4813_s3] ss:$0 sm:$0xff] }
 0x16a   :  { %v172_v41 = vsel %vm168_vm4, %v4024_v38, 0.0  ;;  %v149_v39 = vsel %vm148_vm6, 0.0, %v3811_v37 }
 0x16d   :  { %173 = vadd.xlane.f32.xlu1 %v172_v41  ;;  %v4085_v41 = vadd.f32 %v3097_v40, %v149_v39 }
 0x1f6   :  { %v171_v42 = vpop.xlane.xlu1 %170 }
 0x1f7   :  { %v176_v43 = vmul.f32 0.03125, %v171_v42  ;;  %v3098_v42 = vld [vmem:[%s4813_s3 + $0x1] ss:$0 sm:$0xff] }
 0x1f9   :  { %v178_v44 = vsub.f32 %v4022_v35, %v176_v43 }
 0x1fa   :  { %v174_v45 = vpop.xlane.xlu1 %173 }
 0x1fb   :  { %v177_v46 = vmul.f32 0.03125, %v174_v45  ;;  %v180_v47 = vmul.f32 %v178_v44, %v178_v44 }
 0x1fd   :  { %v179_v48 = vsub.f32 %v4024_v38, %v177_v46  ;;  %v182_v49 = vsel %vm168_vm4, %v180_v47, 0.0  ;;  %v4090_v47 = vadd.f32 %v3098_v42, %v149_v39 }
 0x1fe   :  { %183 = vadd.xlane.f32.xlu0 %v182_v49 }
 0x1ff   :  { %v181_v50 = vmul.f32 %v179_v48, %v179_v48 }
 0x201   :  { %v185_v51 = vsel %vm168_vm4, %v181_v50, 0.0 }
 0x202   :  { %186 = vadd.xlane.f32.xlu1 %v185_v51 }
 0x28b   :  { %v184_v58 = vpop.xlane.xlu0 %183 }
 0x28c   :  { %v188_v59 = vmul.f32 0.03125, %v184_v58 }
 0x28e   :  { %v190_v60 = vadd.f32 1e-05, %v188_v59 }
 0x28f   :  { %v187_v61 = vpop.xlane.xlu1 %186 }
 0x290   :  { %3690 = vrsqrt.f32 %v190_v60  ;;  %v189_v62 = vmul.f32 0.03125, %v187_v61 }
 0x292   :  { %v191_v63 = vadd.f32 1e-05, %v189_v62 }
 0x294   :  { %3692 = vrsqrt.f32 %v191_v63 }
 0x29a   :  { %v3691_v0 = vpop.eup %3690 }
 0x29b   :  { %v194_v1 = vmul.f32 %v3691_v0, %v178_v44 }
 0x29d   :  { %v200_v5 = vmul.f32 %v3099_v2, %v194_v1 }
 0x29e   :  { %v3693_v4 = vpop.eup %3692 }
 0x29f   :  { %v195_v6 = vmul.f32 %v3693_v4, %v179_v48  ;;  %v206_v11 = vadd.f32 %v3100_v8, %v200_v5 }
 0x2a1   :  { %v201_v10 = vmul.f32 %v3099_v2, %v195_v6 }
 0x2a3   :  { %v207_v13 = vadd.f32 %v3100_v8, %v201_v10 }
 0x2a5   :  { %v212_v14 = vpack.c.bf16 %v207_v13, %v206_v11 }
 0x2a7   :  { %3343 = vmatmul.mubr.msk.bf16.vlgmr.msra.gmra.mrb[4].mxu0 %vm168_vm4, %v212_v14 }
 0x2a8   :  { %3348 = vmatprep.mubr.msk.bf16.mxu0 %vm3808_vm0, %v3807_v3 }
 0x37a   :  { %v257_v17 = vpop.f32.mrb[4].mxu0 }
 0x37b   :  { %v258_v19 = vadd.f32 %v3101_v16, %v257_v17  ;;  %v3344_v20 = vpop.f32.mrb[5].mxu0 }
 0x37c   :  { %v260_v22 = vpop.f32.mrb[6].mxu0 }
 0x37d   :  { %v4060_v23 = vpack.c.bf16 %v258_v19, %v258_v19  ;;  %v261_v25 = vadd.f32 %v3101_v16, %v260_v22  ;;  %v3345_v26 = vpop.f32.mrb[7].mxu0 }
 0x37f   :  { %271 = vrot.lane.b32.xlu1 %v4060_v23, %s3810_s1  ;;  %v4064_v29 = vpack.c.bf16 %v261_v25, %v261_v25 }
 0x383   :  { %321 = vrot.lane.b32.xlu1 %v4064_v29, %s3810_s1 }
 0x3f1   :  { %v272_v31 = vpop.permute.xlu1 %271 }
 0x3f2   :  { %v278_v32 = vsel %vm273_vm5, %v272_v31, 0 }
 0x3f3   :  { %3347 = vmatpush3.bf16.xpose.msra.mxu0 %v278_v32 }
 0x3f4   :  { %3364 = vmatprep.subr.bf16.mxu0 %v3807_v3 }
 0x3f5   :  { %v322_v33 = vpop.permute.xlu1 %321 }
 0x3f6   :  { %v327_v34 = vsel %vm273_vm5, %v322_v33, 0 }
 0x3f7   :  { %3353 = vmatpush3.bf16.xpose.msra.mxu1 %v327_v34 }
 0x3f8   :  { %3358 = vmatprep.subr.bf16.mxu1 %v3807_v3 }
 0x3fa   :  { %3349 = vmatmul.mubr.msk.bf16.vlgmr.msra.gmra.mrb[8].mxu0 %vm273_vm5, %v4060_v23 }
 0x3fb   :  { %3366 = vmatprep.mubr.msk.bf16.mxu0 %vm3808_vm0, %v3807_v3 }
 0x3fe   :  { %3355 = vmatmul.mubr.msk.bf16.vlgmr.msra.gmra.mrb[0].mxu1 %vm273_vm5, %v4064_v29 }
 0x3ff   :  { %3360 = vmatprep.mubr.msk.bf16.mxu1 %vm3808_vm0, %v3807_v3 }
 0x4cd   :  { %v314_v43 = vpop.f32.mrb[8].mxu0 }
 0x4ce   :  { %v369_v44 = vmul.f32 0.35355338, %v314_v43  ;;  %v3350_v45 = vpop.f32.mrb[9].mxu0 }
 0x4cf   :  { %v317_v46 = vpop.f32.mrb[10].mxu0 }
 0x4d0   :  { %v3351_v28 = vpop.f32.mrb[11].mxu0  ;;  %v371_v30 = vadd.f32 %v369_v44, %v4085_v41 }
 0x4d1   :  { %v363_v48 = vpop.f32.mrb[0].mxu1 }
 0x4d2   :  { %v370_v49 = vmul.f32 0.35355338, %v363_v48  ;;  %v3356_v50 = vpop.f32.mrb[1].mxu1  ;;  %v373_v51 = vsel %vm273_vm5, %v371_v30, -inf }
 0x4d3   :  { %v366_v52 = vpop.f32.mrb[2].mxu1  ;;  %374 = vmax.xlane.f32.xlu1 %v373_v51 }
 0x4d4   :  { %v3357_v53 = vpop.f32.mrb[3].mxu1  ;;  %v372_v54 = vadd.f32 %v370_v49, %v4090_v47 }
 0x4d6   :  { %v376_v55 = vsel %vm273_vm5, %v372_v54, -inf }
 0x4d7   :  { %377 = vmax.xlane.f32.xlu0 %v376_v55 }
 0x4e4   :  { %446 = vrot.lane.b32.xlu1 %v4064_v29, %s3812_s2 }
 0x4ed   :  { %397 = vrot.lane.b32.xlu0 %v4060_v23, %s3812_s2 }
 0x4f1   :  { %498 = vrot.lane.b32.xlu0 %v4060_v23, %s3813_s23 }
 0x560   :  { %v375_v56 = vpop.xlane.xlu1 %374 }
 0x561   :  { %v379_v57 = vsub.f32 %v371_v30, %v375_v56 }
 0x563   :  { %v381_v58 = vmul.f32 1.442695, %v379_v57 }
 0x564   :  { %v378_v59 = vpop.xlane.xlu0 %377  ;;  %v447_v60 = vpop.permute.xlu1 %446 }
 0x565   :  { %3694 = vpow2.f32 %v381_v58  ;;  %v380_v61 = vsub.f32 %v372_v54, %v378_v59  ;;  %v452_v62 = vsel %vm402_vm7, %v447_v60, 0 }
 0x566   :  { %3365 = vmatpush3.bf16.msra.mxu0 %v452_v62 }
 0x567   :  { %v383_v63 = vmul.f32 1.442695, %v380_v61  ;;  %3376 = vmatprep.subr.bf16.mxu0 %v3807_v3 }
 0x568   :  { %v398_v0 = vpop.permute.xlu0 %397 }
 0x569   :  { %3696 = vpow2.f32 %v383_v63  ;;  %v404_v1 = vsel %vm402_vm7, %v398_v0, 0 }
 0x56a   :  { %3359 = vmatpush3.bf16.msra.mxu1 %v404_v1 }
 0x56b   :  { %3370 = vmatprep.subr.bf16.mxu1 %v3807_v3 }
 0x56c   :  { %v499_v8 = vpop.permute.xlu0 %498 }
 0x56d   :  { %v504_v20 = vsel %vm273_vm5, %v499_v8, 0 }
 0x56f   :  { %v3695_v2 = vpop.eup %3694 }
 0x570   :  { %v385_v4 = vsel %vm273_vm5, %v3695_v2, 0.0 }
 0x571   :  { %386 = vadd.xlane.f32.xlu0 %v385_v4 }
 0x573   :  { %v3697_v5 = vpop.eup %3696 }
 0x574   :  { %v388_v6 = vsel %vm273_vm5, %v3697_v5, 0.0 }
 0x575   :  { %389 = vadd.xlane.f32.xlu0 %v388_v6 }
 0x58b   :  { %548 = vrot.lane.b32.xlu0 %v4064_v29, %s3813_s23 }
 0x58f   :  { %496 = vrot.lane.b32.xlu0 %v4060_v23, %s3814_s24 }
 0x593   :  { %546 = vrot.lane.b32.xlu0 %v4064_v29, %s3814_s24 }
 0x5fe   :  { %v387_v10 = vpop.xlane.xlu0 %386 }
 0x5ff   :  { %3698 = vrcp.f32 %v387_v10 }
 0x602   :  { %v390_v11 = vpop.xlane.xlu0 %389 }
 0x603   :  { %3700 = vrcp.f32 %v390_v11  ;;  %v265_v11 = vld [vmem:[%s4789_s10 + $0x8] sm:$0xff] }
 0x606   :  { %v549_v19 = vpop.permute.xlu0 %548 }
 0x607   :  { %v554_v26 = vsel %vm273_vm5, %v549_v19, 0  ;;  %v264_v19 = vld [vmem:[%s4789_s10] sm:$0xff] }
 0x609   :  { %v3699_v13 = vpop.eup %3698 }
 0x60a   :  { %v393_v14 = vmul.f32 %v3699_v13, %v3695_v2  ;;  %v497_v31 = vpop.permute.xlu0 %496 }
 0x60c   :  { %v395_v16 = vpack.c.bf16 %v393_v14, %v393_v14 }
 0x60d   :  { %v3701_v17 = vpop.eup %3700 }
 0x60e   :  { %v394_v22 = vmul.f32 %v3701_v17, %v3697_v5  ;;  %3361 = vmatmul.mubr.msk.bf16.vlgmr.msra.gmra.mrb[4].mxu1 %vm273_vm5, %v395_v16  ;;  %v547_v32 = vpop.permute.xlu0 %546  ;;  %v721_v16 = vpack.c.bf16 %v265_v11, %v265_v11 }
 0x60f   :  { %3371 = vmatpush3.bf16.xpose.msra.mxu1 %v504_v20  ;;  %3372 = vmatprep.mubr.msk.bf16.mxu1 %vm3808_vm0, %v3807_v3 }
 0x610   :  { %v396_v25 = vpack.c.bf16 %v394_v22, %v394_v22  ;;  %3382 = vmatprep.subr.bf16.mxu1 %v3807_v3 }
 0x612   :  { %3367 = vmatmul.mubr.msk.bf16.vlgmr.msra.gmra.mrb[12].mxu0 %vm273_vm5, %v396_v25  ;;  %v495_v25 = vpack.c.bf16 %v264_v19, %v264_v19 }
 0x613   :  { %3377 = vmatpush3.bf16.xpose.msra.mxu0 %v554_v26  ;;  %3378 = vmatprep.mubr.msk.bf16.mxu0 %vm3808_vm0, %v3807_v3  ;;  %v726_v26 = vsel %vm402_vm7, %v721_v16, 0 }
 0x614   :  { %3388 = vmatprep.subr.bf16.mxu0 %v3807_v3 }
 0x616   :  { %3373 = vmatmul.mubr.msk.bf16.vlgmr.msra.gmra.mrb[8].mxu1 %vm273_vm5, %v497_v31 }
 0x617   :  { %3384 = vmatprep.mubr.msk.bf16.mxu1 %vm3808_vm0, %v3807_v3 }
 0x61a   :  { %3379 = vmatmul.mubr.msk.bf16.vlgmr.msra.gmra.mrb[16].mxu0 %vm273_vm5, %v547_v32 }
 0x61b   :  { %3390 = vmatprep.mubr.msk.bf16.mxu0 %vm3808_vm0, %v3807_v3 }
 0x6e1   :  { %v4130_v33 = vpop.f32.mrb[4].mxu1 }
 0x6e2   :  { %v3362_v34 = vpop.f32.mrb[5].mxu1 }
 0x6e3   :  { %v443_v36 = vpop.f32.mrb[6].mxu1 }
 0x6e4   :  { %v3363_v37 = vpop.f32.mrb[7].mxu1  ;;  %v773_v36 = vsel %vm402_vm7, %v495_v25, 0 }
 0x6e5   :  { %v4132_v39 = vpop.f32.mrb[12].mxu0 }
 0x6e6   :  { %v494_v40 = vpack.c.bf16 %v4132_v39, %v4130_v33  ;;  %v3368_v42 = vpop.f32.mrb[13].mxu0 }
 0x6e7   :  { %v491_v43 = vpop.f32.mrb[14].mxu0 }
 0x6e8   :  { %v3369_v44 = vpop.f32.mrb[15].mxu0 }
 0x6e9   :  { %v540_v45 = vpop.f32.mrb[8].mxu1 }
 0x6ea   :  { %v596_v46 = vmul.f32 0.35355338, %v540_v45  ;;  %v3374_v28 = vpop.f32.mrb[9].mxu1 }
 0x6eb   :  { %v543_v30 = vpop.f32.mrb[10].mxu1 }
 0x6ec   :  { %v3375_v48 = vpop.f32.mrb[11].mxu1  ;;  %v598_v49 = vadd.f32 %v596_v46, %v4085_v41 }
 0x6ed   :  { %v590_v50 = vpop.f32.mrb[16].mxu0 }
 0x6ee   :  { %v597_v51 = vmul.f32 0.35355338, %v590_v50  ;;  %v3380_v52 = vpop.f32.mrb[17].mxu0  ;;  %v600_v53 = vsel %vm273_vm5, %v598_v49, -inf }
 0x6ef   :  { %601 = vmax.xlane.f32.xlu1 %v600_v53  ;;  %v593_v54 = vpop.f32.mrb[18].mxu0 }
 0x6f0   :  { %v3381_v55 = vpop.f32.mrb[19].mxu0  ;;  %v599_v56 = vadd.f32 %v597_v51, %v4090_v47 }
 0x6f2   :  { %v603_v57 = vsel %vm273_vm5, %v599_v56, -inf }
 0x6f3   :  { %604 = vmax.xlane.f32.xlu0 %v603_v57 }
 0x77c   :  { %v602_v58 = vpop.xlane.xlu1 %601 }
 0x77d   :  { %v606_v59 = vsub.f32 %v598_v49, %v602_v58 }
 0x77f   :  { %v608_v60 = vmul.f32 1.442695, %v606_v59 }
 0x780   :  { %v605_v61 = vpop.xlane.xlu0 %604 }
 0x781   :  { %3702 = vpow2.f32 %v608_v60  ;;  %v607_v62 = vsub.f32 %v599_v56, %v605_v61 }
 0x783   :  { %v610_v63 = vmul.f32 1.442695, %v607_v62 }
 0x785   :  { %3704 = vpow2.f32 %v610_v63 }
 0x78b   :  { %v3703_v0 = vpop.eup %3702 }
 0x78c   :  { %v612_v1 = vsel %vm273_vm5, %v3703_v0, 0.0 }
 0x78d   :  { %613 = vadd.xlane.f32.xlu0 %v612_v1 }
 0x78f   :  { %v3705_v2 = vpop.eup %3704 }
 0x790   :  { %v615_v4 = vsel %vm273_vm5, %v3705_v2, 0.0 }
 0x791   :  { %616 = vadd.xlane.f32.xlu1 %v615_v4 }
 0x7a2   :  { %672 = vrot.lane.b32.xlu1 %v4064_v29, %s3815_s25 }
 0x7a3   :  { %624 = vrot.lane.b32.xlu0 %v4060_v23, %s3815_s25 }
 0x7a6   :  { %818 = vrot.lane.b32.xlu1 %v4060_v23, %s3816_s26 }
 0x7a7   :  { %868 = vrot.lane.b32.xlu0 %v4064_v29, %s3816_s26 }
 0x7aa   :  { %816 = vrot.lane.b32.xlu1 %v4060_v23, %s3817_s27 }
 0x7ab   :  { %866 = vrot.lane.b32.xlu0 %v4064_v29, %s3817_s27 }
 0x81a   :  { %v614_v5 = vpop.xlane.xlu0 %613 }
 0x81b   :  { %3706 = vrcp.f32 %v614_v5 }
 0x81e   :  { %v617_v6 = vpop.xlane.xlu1 %616  ;;  %v625_v8 = vpop.permute.xlu0 %624 }
 0x81f   :  { %3708 = vrcp.f32 %v617_v6  ;;  %v630_v10 = vsel %vm402_vm7, %v625_v8, 0 }
 0x820   :  { %3383 = vmatpush3.bf16.msra.mxu1 %v630_v10 }
 0x821   :  { %3394 = vmatprep.subr.bf16.mxu1 %v3807_v3 }
 0x822   :  { %v673_v13 = vpop.permute.xlu1 %672  ;;  %v869_v37 = vpop.permute.xlu0 %868 }
 0x823   :  { %v678_v14 = vsel %vm402_vm7, %v673_v13, 0  ;;  %v874_v42 = vsel %vm273_vm5, %v869_v37, 0 }
 0x824   :  { %3389 = vmatpush3.bf16.msra.mxu0 %v678_v14 }
 0x825   :  { %v3707_v17 = vpop.eup %3706  ;;  %3400 = vmatprep.subr.bf16.mxu0 %v3807_v3 }
 0x826   :  { %v620_v20 = vmul.f32 %v3707_v17, %v3703_v0  ;;  %v867_v43 = vpop.permute.xlu0 %866  ;;  %v819_v39 = vpop.permute.xlu1 %818 }
 0x827   :  { %v824_v49 = vsel %vm273_vm5, %v819_v39, 0 }
 0x828   :  { %v622_v22 = vpack.c.bf16 %v620_v20, %v620_v20 }
 0x829   :  { %v3709_v31 = vpop.eup %3708 }
 0x82a   :  { %v621_v32 = vmul.f32 %v3709_v31, %v3705_v2  ;;  %3385 = vmatmul.mubr.msk.bf16.vlgmr.msra.gmra.mrb[12].mxu1 %vm273_vm5, %v622_v22  ;;  %v817_v53 = vpop.permute.xlu1 %816 }
 0x82b   :  { %3395 = vmatpush3.bf16.msra.mxu1 %v726_v26  ;;  %3396 = vmatprep.mubr.msk.bf16.mxu1 %vm3808_vm0, %v3807_v3 }
 0x82c   :  { %v623_v34 = vpack.c.bf16 %v621_v32, %v621_v32  ;;  %3406 = vmatprep.subr.bf16.mxu1 %v3807_v3 }
 0x82e   :  { %3391 = vmatmul.mubr.msk.bf16.vlgmr.msra.gmra.mrb[20].mxu0 %vm273_vm5, %v623_v34 }
 0x82f   :  { %3401 = vmatpush3.bf16.msra.mxu0 %v773_v36  ;;  %3402 = vmatprep.mubr.msk.bf16.mxu0 %vm3808_vm0, %v3807_v3 }
 0x830   :  { %3412 = vmatprep.subr.bf16.mxu0 %v3807_v3 }
 0x836   :  { %3403 = vmatmul.mubr.msk.bf16.vlgmr.msra.gmra.mrb[24].mxu0 %vm273_vm5, %v494_v40 }
 0x837   :  { %3414 = vmatprep.mubr.msk.bf16.mxu0 %vm3808_vm0, %v3807_v3 }
 0x838   :  { %3413 = vmatpush3.bf16.xpose.msra.mxu0 %v874_v42 }
 0x839   :  { %3424 = vmatprep.subr.bf16.mxu0 %v3807_v3 }
 0x83f   :  { %3415 = vmatmul.mubr.msk.bf16.vlgmr.msra.gmra.mrb[28].mxu0 %vm273_vm5, %v867_v43 }
 0x840   :  { %3426 = vmatprep.mubr.msk.bf16.mxu0 %vm3808_vm0, %v3807_v3 }
 0x8fd   :  { %v666_v44 = vpop.f32.mrb[12].mxu1 }
 0x8fe   :  { %v3386_v45 = vpop.f32.mrb[13].mxu1 }
 0x8ff   :  { %v669_v46 = vpop.f32.mrb[14].mxu1 }
 0x900   :  { %v3387_v33 = vpop.f32.mrb[15].mxu1 }
 0x901   :  { %v714_v40 = vpop.f32.mrb[20].mxu0 }
 0x902   :  { %v720_v28 = vpack.c.bf16 %v714_v40, %v666_v44  ;;  %v3392_v30 = vpop.f32.mrb[21].mxu0 }
 0x903   :  { %v717_v48 = vpop.f32.mrb[22].mxu0 }
 0x904   :  { %v3393_v50 = vpop.f32.mrb[23].mxu0  ;;  %3397 = vmatmul.mubr.msk.bf16.vlgmr.msra.gmra.mrb[16].mxu1 %vm273_vm5, %v720_v28 }
 0x905   :  { %3407 = vmatpush3.bf16.xpose.msra.mxu1 %v824_v49  ;;  %3408 = vmatprep.mubr.msk.bf16.mxu1 %vm3808_vm0, %v3807_v3  ;;  %v266_v49 = vld [vmem:[%s4789_s10 + $0x10] sm:$0xff] }
 0x906   :  { %3418 = vmatprep.subr.bf16.mxu1 %v3807_v3  ;;  %v1041_v50 = vpack.c.bf16 %v266_v49, %v266_v49 }
 0x909   :  { %v809_v51 = vpop.f32.mrb[24].mxu0 }
 0x90a   :  { %v3404_v52 = vpop.f32.mrb[25].mxu0 }
 0x90b   :  { %v812_v54 = vpop.f32.mrb[26].mxu0 }
 0x90c   :  { %v3405_v55 = vpop.f32.mrb[27].mxu0  ;;  %3409 = vmatmul.mubr.msk.bf16.vlgmr.msra.gmra.mrb[20].mxu1 %vm273_vm5, %v817_v53 }
 0x90d   :  { %3420 = vmatprep.mubr.msk.bf16.mxu1 %vm3808_vm0, %v3807_v3 }
 0x912   :  { %v910_v56 = vpop.f32.mrb[28].mxu0 }
 0x913   :  { %v917_v57 = vmul.f32 0.35355338, %v910_v56  ;;  %v3416_v58 = vpop.f32.mrb[29].mxu0 }
 0x914   :  { %v913_v59 = vpop.f32.mrb[30].mxu0 }
 0x915   :  { %v3417_v60 = vpop.f32.mrb[31].mxu0  ;;  %v919_v61 = vadd.f32 %v917_v57, %v4090_v47 }
 0x917   :  { %v923_v62 = vsel %vm273_vm5, %v919_v61, -inf }
 0x918   :  { %924 = vmax.xlane.f32.xlu0 %v923_v62 }
 0x9a5   :  { %v925_v63 = vpop.xlane.xlu0 %924 }
 0x9a6   :  { %v927_v0 = vsub.f32 %v919_v61, %v925_v63 }
 0x9a8   :  { %v930_v1 = vmul.f32 1.442695, %v927_v0 }
 0x9aa   :  { %3710 = vpow2.f32 %v930_v1 }
 0x9b4   :  { %v3711_v22 = vpop.eup %3710 }
 0x9b5   :  { %v935_v25 = vsel %vm273_vm5, %v3711_v22, 0.0 }
 0x9d7   :  { %v762_v2 = vpop.f32.mrb[16].mxu1 }
 0x9d8   :  { %v4195_v4 = vadd.f32 %v809_v51, %v762_v2  ;;  %v3398_v5 = vpop.f32.mrb[17].mxu1 }
 0x9d9   :  { %v765_v6 = vpop.f32.mrb[18].mxu1 }
 0x9da   :  { %v4197_v8 = vadd.f32 %v812_v54, %v765_v6  ;;  %v3399_v10 = vpop.f32.mrb[19].mxu1  ;;  %v1046_v54 = vsel %vm402_vm7, %v1041_v50, 0 }
 0x9df   :  { %v860_v11 = vpop.f32.mrb[20].mxu1 }
 0x9e0   :  { %v916_v13 = vmul.f32 0.35355338, %v860_v11  ;;  %v3410_v14 = vpop.f32.mrb[21].mxu1 }
 0x9e1   :  { %v863_v16 = vpop.f32.mrb[22].mxu1 }
 0x9e2   :  { %v3411_v17 = vpop.f32.mrb[23].mxu1  ;;  %v918_v19 = vadd.f32 %v916_v13, %v4085_v41 }
 0x9e4   :  { %v920_v20 = vsel %vm273_vm5, %v918_v19, -inf }
 0x9e5   :  { %921 = vmax.xlane.f32.xlu1 %v920_v20 }
 0x9e9   :  { %936 = vadd.xlane.f32.xlu1 %v935_v25 }
 0x9fa   :  { %992 = vrot.lane.b32.xlu1 %v4064_v29, %s3818_s19 }
 0x9fe   :  { %1093 = vrot.lane.b32.xlu1 %v4060_v23, %s4805_s5 }
 0xa02   :  { %1091 = vrot.lane.b32.xlu1 %v4060_v23, %s4803_s20 }
 0xa72   :  { %v922_v26 = vpop.xlane.xlu1 %921 }
 0xa73   :  { %v926_v31 = vsub.f32 %v918_v19, %v922_v26 }
 0xa75   :  { %v928_v32 = vmul.f32 1.442695, %v926_v31 }
 0xa76   :  { %v937_v34 = vpop.xlane.xlu1 %936 }
 0xa77   :  { %3712 = vpow2.f32 %v928_v32 }
 0xa78   :  { %3714 = vrcp.f32 %v937_v34 }
 0xa7a   :  { %v993_v36 = vpop.permute.xlu1 %992 }
 0xa7b   :  { %v998_v37 = vsel %vm402_vm7, %v993_v36, 0 }
 0xa7c   :  { %3425 = vmatpush3.bf16.msra.mxu0 %v998_v37 }
 0xa7d   :  { %3436 = vmatprep.subr.bf16.mxu0 %v3807_v3 }
 0xa7e   :  { %v1094_v46 = vpop.permute.xlu1 %1093 }
 0xa7f   :  { %v1099_v39 = vsel %vm273_vm5, %v1094_v46, 0 }
 0xa81   :  { %v3713_v42 = vpop.eup %3712 }
 0xa82   :  { %v3715_v43 = vpop.eup %3714  ;;  %v932_v44 = vsel %vm273_vm5, %v3713_v42, 0.0  ;;  %v1092_v40 = vpop.permute.xlu1 %1091 }
 0xa83   :  { %v941_v45 = vmul.f32 %v3715_v43, %v3711_v22  ;;  %933 = vadd.xlane.f32.xlu0 %v932_v44 }
 0xa85   :  { %v943_v33 = vpack.c.bf16 %v941_v45, %v941_v45 }
 0xa87   :  { %3427 = vmatmul.mubr.msk.bf16.vlgmr.msra.gmra.mrb[32].mxu0 %vm273_vm5, %v943_v33 }
 0xa88   :  { %3437 = vmatpush3.bf16.xpose.msra.mxu0 %v1099_v39  ;;  %3438 = vmatprep.mubr.msk.bf16.mxu0 %vm3808_vm0, %v3807_v3 }
 0xa89   :  { %3448 = vmatprep.subr.bf16.mxu0 %v3807_v3 }
 0xa8f   :  { %3439 = vmatmul.mubr.msk.bf16.vlgmr.msra.gmra.mrb[36].mxu0 %vm273_vm5, %v1092_v40 }
 0xa90   :  { %3450 = vmatprep.mubr.msk.bf16.mxu0 %vm3808_vm0, %v3807_v3 }
 0xa99   :  { %944 = vrot.lane.b32.xlu0 %v4060_v23, %s3818_s19 }
 0xa9d   :  { %1143 = vrot.lane.b32.xlu0 %v4064_v29, %s4805_s5 }
 0xaa1   :  { %1141 = vrot.lane.b32.xlu0 %v4064_v29, %s4803_s20 }
 0xb10   :  { %v934_v28 = vpop.xlane.xlu0 %933 }
 0xb11   :  { %3716 = vrcp.f32 %v934_v28 }
 0xb14   :  { %v945_v30 = vpop.permute.xlu0 %944 }
 0xb15   :  { %v950_v48 = vsel %vm402_vm7, %v945_v30, 0 }
 0xb16   :  { %3419 = vmatpush3.bf16.msra.mxu1 %v950_v48 }
 0xb17   :  { %3430 = vmatprep.subr.bf16.mxu1 %v3807_v3 }
 0xb18   :  { %v1144_v2 = vpop.permute.xlu0 %1143 }
 0xb19   :  { %v1149_v13 = vsel %vm273_vm5, %v1144_v2, 0 }
 0xb1b   :  { %v3717_v51 = vpop.eup %3716 }
 0xb1c   :  { %v940_v52 = vmul.f32 %v3717_v51, %v3713_v42  ;;  %v1142_v16 = vpop.permute.xlu0 %1141 }
 0xb1e   :  { %v942_v53 = vpack.c.bf16 %v940_v52, %v940_v52 }
 0xb20   :  { %3421 = vmatmul.mubr.msk.bf16.vlgmr.msra.gmra.mrb[24].mxu1 %vm273_vm5, %v942_v53 }
 0xb21   :  { %3431 = vmatpush3.bf16.msra.mxu1 %v1046_v54  ;;  %3432 = vmatprep.mubr.msk.bf16.mxu1 %vm3808_vm0, %v3807_v3 }
 0xb22   :  { %3442 = vmatprep.subr.bf16.mxu1 %v3807_v3 }
 0xb5a   :  { %v1034_v55 = vpop.f32.mrb[32].mxu0 }
 0xb5b   :  { %v3428_v56 = vpop.f32.mrb[33].mxu0 }
 0xb5c   :  { %v1037_v57 = vpop.f32.mrb[34].mxu0 }
 0xb5d   :  { %v3429_v58 = vpop.f32.mrb[35].mxu0 }
 0xb62   :  { %v1135_v59 = vpop.f32.mrb[36].mxu0 }
 0xb63   :  { %v1191_v60 = vmul.f32 0.35355338, %v1135_v59  ;;  %v3440_v61 = vpop.f32.mrb[37].mxu0 }
 0xb64   :  { %v1138_v62 = vpop.f32.mrb[38].mxu0 }
 0xb65   :  { %v3441_v63 = vpop.f32.mrb[39].mxu0  ;;  %v1193_v0 = vadd.f32 %v1191_v60, %v4085_v41 }
 0xb67   :  { %v1195_v1 = vsel %vm273_vm5, %v1193_v0, -inf }
 0xb68   :  { %1196 = vmax.xlane.f32.xlu1 %v1195_v1 }
 0xbf3   :  { %v986_v5 = vpop.f32.mrb[24].mxu1 }
 0xbf4   :  { %v1040_v6 = vpack.c.bf16 %v1034_v55, %v986_v5  ;;  %v3422_v10 = vpop.f32.mrb[25].mxu1 }
 0xbf5   :  { %v989_v11 = vpop.f32.mrb[26].mxu1  ;;  %v1197_v17 = vpop.xlane.xlu1 %1196 }
 0xbf6   :  { %v3423_v14 = vpop.f32.mrb[27].mxu1  ;;  %3433 = vmatmul.mubr.msk.bf16.vlgmr.msra.gmra.mrb[28].mxu1 %vm273_vm5, %v1040_v6  ;;  %v1201_v19 = vsub.f32 %v1193_v0, %v1197_v17 }
 0xbf7   :  { %3443 = vmatpush3.bf16.xpose.msra.mxu1 %v1149_v13  ;;  %3444 = vmatprep.mubr.msk.bf16.mxu1 %vm3808_vm0, %v3807_v3 }
 0xbf8   :  { %3454 = vmatprep.subr.bf16.mxu1 %v3807_v3  ;;  %v1203_v20 = vmul.f32 1.442695, %v1201_v19 }
 0xbfa   :  { %3718 = vpow2.f32 %v1203_v20 }
 0xbfe   :  { %3445 = vmatmul.mubr.msk.bf16.vlgmr.msra.gmra.mrb[32].mxu1 %vm273_vm5, %v1142_v16  ;;  %v3123_v16 = vld [vmem:[%s4790_s11] ss:$0 sm:$0xff] }
 0xbff   :  { %3456 = vmatprep.mubr.msk.bf16.mxu1 %vm3808_vm0, %v3807_v3 }
 0xc04   :  { %v3719_v33 = vpop.eup %3718 }
 0xcc9   :  { %v1082_v22 = vpop.f32.mrb[28].mxu1 }
 0xcca   :  { %v4246_v25 = vadd.f32 %v1082_v22, %v4195_v4  ;;  %v3434_v26 = vpop.f32.mrb[29].mxu1  ;;  %v1207_v4 = vsel %vm273_vm5, %v3719_v33, 0.0 }
 0xccb   :  { %v1085_v31 = vpop.f32.mrb[30].mxu1 }
 0xccc   :  { %v4249_v32 = vadd.f32 %v1085_v31, %v4197_v8  ;;  %v3435_v34 = vpop.f32.mrb[31].mxu1 }
 0xcd1   :  { %v1185_v36 = vpop.f32.mrb[32].mxu1 }
 0xcd2   :  { %v1192_v37 = vmul.f32 0.35355338, %v1185_v36  ;;  %v3446_v42 = vpop.f32.mrb[33].mxu1 }
 0xcd3   :  { %v1188_v43 = vpop.f32.mrb[34].mxu1 }
 0xcd4   :  { %v3447_v44 = vpop.f32.mrb[35].mxu1  ;;  %v1194_v45 = vadd.f32 %v1192_v37, %v4090_v47 }
 0xcd6   :  { %v1198_v46 = vsel %vm273_vm5, %v1194_v45, -inf }
 0xcd7   :  { %1199 = vmax.xlane.f32.xlu0 %v1198_v46 }
 0xcdb   :  { %1208 = vadd.xlane.f32.xlu0 %v1207_v4  ;;  %v1415_v4 = vld [vmem:[%s4793_s14] sm:$0xff] }
 0xcf1   :  { %1219 = vrot.lane.b32.xlu0 %v4060_v23, %s4801_s22  ;;  %v267_v23 = vld [vmem:[%s4789_s10 + $0x18] sm:$0xff] }
 0xcf2   :  { %v1316_v54 = vpack.c.bf16 %v267_v23, %v267_v23 }
 0xcf4   :  { %v1321_v55 = vsel %vm402_vm7, %v1316_v54, 0  ;;  %v3124_v54 = vld [vmem:[%s4791_s12] ss:$0 sm:$0xff] }
 0xd64   :  { %v1200_v8 = vpop.xlane.xlu0 %1199 }
 0xd65   :  { %v1202_v39 = vsub.f32 %v1194_v45, %v1200_v8  ;;  %v1416_v8 = vld [vmem:[%s4793_s14 + $0x8] sm:$0xff] }
 0xd67   :  { %v1205_v40 = vmul.f32 1.442695, %v1202_v39  ;;  %v1420_v39 = vpack.c.bf16 %v1416_v8, %v1415_v4 }
 0xd68   :  { %v1209_v28 = vpop.xlane.xlu0 %1208 }
 0xd69   :  { %3720 = vpow2.f32 %v1205_v40  ;;  %v1417_v40 = vld [vmem:[%s4793_s14 + $0x10] sm:$0xff] }
 0xd6a   :  { %3722 = vrcp.f32 %v1209_v28  ;;  %v1418_v28 = vld [vmem:[%s4793_s14 + $0x18] sm:$0xff] }
 0xd6c   :  { %v1220_v30 = vpop.permute.xlu0 %1219 }
 0xd6d   :  { %v1225_v48 = vsel %vm402_vm7, %v1220_v30, 0  ;;  %v1421_v30 = vpack.c.bf16 %v1418_v28, %v1417_v40 }
 0xd6e   :  { %3449 = vmatpush3.bf16.msra.mxu0 %v1225_v48 }
 0xd6f   :  { %3460 = vmatprep.subr.bf16.mxu0 %v3807_v3 }
 0xd73   :  { %v3721_v49 = vpop.eup %3720 }
 0xd74   :  { %v3723_v50 = vpop.eup %3722  ;;  %v1210_v51 = vsel %vm273_vm5, %v3721_v49, 0.0 }
 0xd75   :  { %v1215_v52 = vmul.f32 %v3723_v50, %v3719_v33  ;;  %1211 = vadd.xlane.f32.xlu1 %v1210_v51 }
 0xd77   :  { %v1217_v53 = vpack.c.bf16 %v1215_v52, %v1215_v52 }
 0xd79   :  { %3451 = vmatmul.mubr.msk.bf16.vlgmr.msra.gmra.mrb[40].mxu0 %vm273_vm5, %v1217_v53 }
 0xd7a   :  { %3462 = vmatprep.mubr.msk.bf16.mxu0 %vm3808_vm0, %v3807_v3  ;;  %3461 = vmatpush3.bf16.msra.mxu0 %v1321_v55 }
 0xd7b   :  { %3474 = vmatprep.subr.bf16.mxu0 %v3807_v3 }
 0xd86   :  { %1267 = vrot.lane.b32.xlu1 %v4064_v29, %s4801_s22 }
 0xe02   :  { %v1212_v56 = vpop.xlane.xlu1 %1211 }
 0xe03   :  { %3724 = vrcp.f32 %v1212_v56 }
 0xe06   :  { %v1268_v57 = vpop.permute.xlu1 %1267 }
 0xe07   :  { %v1273_v58 = vsel %vm402_vm7, %v1268_v57, 0 }
 0xe08   :  { %3455 = vmatpush3.bf16.msra.mxu1 %v1273_v58 }
 0xe09   :  { %3466 = vmatprep.subr.bf16.mxu1 %v3807_v3 }
 0xe0d   :  { %v3725_v59 = vpop.eup %3724 }
 0xe0e   :  { %v1216_v29 = vmul.f32 %v3725_v59, %v3721_v49  ;;  %v3125_v59 = vld [vmem:[%s4792_s13] ss:$0 sm:$0xff] }
 0xe10   :  { %v1218_v60 = vpack.c.bf16 %v1216_v29, %v1216_v29 }
 0xe12   :  { %3457 = vmatmul.mubr.msk.bf16.vlgmr.msra.gmra.mrb[36].mxu1 %vm273_vm5, %v1218_v60 }
 0xe13   :  { %3470 = vmatprep.mubr.msk.bf16.mxu1 %vm3808_vm0, %v3807_v3  ;;  %3467 = vmatpush3.bf16.msra.mxu1 %v1420_v39 }
 0xe14   :  { %3468 = vmatprep.subr.bf16.mxu1 %v3807_v3 }
 0xe17   :  { %3469 = vmatpush3.bf16.msra.mxu1 %v1421_v30 }
 0xe18   :  { %3494 = vmatprep.subr.bf16.mxu1 %v3807_v3 }
 0xe4c   :  { %v1261_v61 = vpop.f32.mrb[40].mxu0 }
 0xe4d   :  { %v3452_v62 = vpop.f32.mrb[41].mxu0 }
 0xe4e   :  { %v1264_v63 = vpop.f32.mrb[42].mxu0 }
 0xe4f   :  { %v3453_v0 = vpop.f32.mrb[43].mxu0  ;;  %v1489_v63 = vld [vmem:[%s4795_s16] sm:$0xff] }
 0xe50   :  { %v1490_v0 = vld [vmem:[%s4795_s16 + $0x8] sm:$0xff] }
 0xee5   :  { %v1309_v1 = vpop.f32.mrb[36].mxu1 }
 0xee6   :  { %v1315_v2 = vpack.c.bf16 %v1309_v1, %v1261_v61  ;;  %v3458_v5 = vpop.f32.mrb[37].mxu1  ;;  %v1506_v1 = vpack.c.bf16 %v1490_v0, %v1489_v63  ;;  %v3128_v63 = vld [vmem:[%s4796_s17] ss:$0 sm:$0xff] }
 0xee7   :  { %v1312_v6 = vpop.f32.mrb[38].mxu1  ;;  %v1492_v5 = vld [vmem:[%s4795_s16 + $0x18] sm:$0xff] }
 0xee8   :  { %v3459_v10 = vpop.f32.mrb[39].mxu1  ;;  %3463 = vmatmul.mubr.msk.bf16.vlgmr.msra.gmra.mrb[44].mxu0 %vm273_vm5, %v1315_v2  ;;  %v1491_v2 = vld [vmem:[%s4795_s16 + $0x10] sm:$0xff] }
 0xee9   :  { %3490 = vmatprep.mubr.msk.bf16.mxu0 %vm3808_vm0, %v3807_v3  ;;  %3475 = vmatpush3.bf16.msra.mxu0 %v1506_v1  ;;  %v1507_v6 = vpack.c.bf16 %v1492_v5, %v1491_v2  ;;  %v1493_v10 = vld [vmem:[%s4795_s16 + $0x20] sm:$0xff] }
 0xeea   :  { %3476 = vmatprep.subr.bf16.mxu0 %v3807_v3 }
 0xeed   :  { %3477 = vmatpush3.bf16.msra.mxu0 %v1507_v6 }
 0xeee   :  { %3478 = vmatprep.subr.bf16.mxu0 %v3807_v3 }
 0xfbb   :  { %v1357_v11 = vpop.f32.mrb[44].mxu0 }
 0xfbc   :  { %v1364_v13 = vadd.f32 %v1357_v11, %v4246_v25  ;;  %v3464_v14 = vpop.f32.mrb[45].mxu0  ;;  %v1494_v11 = vld [vmem:[%s4795_s16 + $0x28] sm:$0xff] }
 0xfbd   :  { %v1360_v17 = vpop.f32.mrb[46].mxu0  ;;  %v1495_v14 = vld [vmem:[%s4795_s16 + $0x30] sm:$0xff] }
 0xfbe   :  { %v1366_v19 = vadd.f32 %v1364_v13, %v4022_v35  ;;  %v1365_v20 = vadd.f32 %v1360_v17, %v4249_v32  ;;  %v3465_v22 = vpop.f32.mrb[47].mxu0  ;;  %v1508_v13 = vpack.c.bf16 %v1494_v11, %v1493_v10 }
 0xfc0   :  { %v4283_v26 = vadd.f32 %v3123_v16, %v1366_v19  ;;  %v1367_v31 = vadd.f32 %v1365_v20, %v4024_v38  ;;  %3479 = vmatpush3.bf16.msra.mxu0 %v1508_v13  ;;  %v1497_v19 = vld [vmem:[%s4795_s16 + $0x40] sm:$0xff]  ;;  %v1498_v20 = vld [vmem:[%s4795_s16 + $0x48] sm:$0xff] }
 0xfc1   :  { %3480 = vmatprep.subr.bf16.mxu0 %v3807_v3  ;;  %v1510_v22 = vpack.c.bf16 %v1498_v20, %v1497_v19 }
 0xfc2   :  { %v4286_v34 = vadd.f32 %v3123_v16, %v1367_v31  ;;  %v1377_v25 = vsel %vm168_vm4, %v4283_v26, 0.0  ;;  %v1496_v16 = vld [vmem:[%s4795_s16 + $0x38] sm:$0xff]  ;;  %v1499_v31 = vld [vmem:[%s4795_s16 + $0x50] sm:$0xff] }
 0xfc3   :  { %1378 = vadd.xlane.f32.xlu1 %v1377_v25  ;;  %v1509_v17 = vpack.c.bf16 %v1496_v16, %v1495_v14  ;;  %v1500_v25 = vld [vmem:[%s4795_s16 + $0x58] sm:$0xff] }
 0xfc4   :  { %v1380_v36 = vsel %vm168_vm4, %v4286_v34, 0.0 }
 0xfc5   :  { %1381 = vadd.xlane.f32.xlu0 %v1380_v36  ;;  %3481 = vmatpush3.bf16.msra.mxu0 %v1509_v17  ;;  %v1511_v36 = vpack.c.bf16 %v1500_v25, %v1499_v31 }
 0xfc6   :  { %3482 = vmatprep.subr.bf16.mxu0 %v3807_v3 }
 0xfc9   :  { %3483 = vmatpush3.bf16.msra.mxu0 %v1510_v22 }
 0xfca   :  { %3484 = vmatprep.subr.bf16.mxu0 %v3807_v3 }
 0xfcd   :  { %3485 = vmatpush3.bf16.msra.mxu0 %v1511_v36 }
 0xfce   :  { %3486 = vmatprep.subr.bf16.mxu0 %v3807_v3 }
0x1050   :  { %v1379_v37 = vpop.xlane.xlu1 %1378 }
0x1051   :  { %v1383_v42 = vmul.f32 0.03125, %v1379_v37  ;;  %v1501_v37 = vld [vmem:[%s4795_s16 + $0x60] sm:$0xff] }
0x1052   :  { %v1382_v35 = vpop.xlane.xlu0 %1381 }
0x1053   :  { %v1385_v32 = vsub.f32 %v4283_v26, %v1383_v42  ;;  %v1384_v43 = vmul.f32 0.03125, %v1382_v35  ;;  %v1502_v42 = vld [vmem:[%s4795_s16 + $0x68] sm:$0xff] }
0x1054   :  { %v1512_v35 = vpack.c.bf16 %v1502_v42, %v1501_v37  ;;  %v3131_v37 = vld [vmem:[%s4787_s8 + $0x20] sm:$0xff]  ;;  %v3132_v42 = vld [vmem:[%s4787_s8 + $0x28] sm:$0xff] }
0x1055   :  { %v1386_v44 = vsub.f32 %v4286_v34, %v1384_v43  ;;  %v1387_v45 = vmul.f32 %v1385_v32, %v1385_v32  ;;  %v1504_v43 = vld [vmem:[%s4795_s16 + $0x78] sm:$0xff] }
0x1056   :  { %3487 = vmatpush3.bf16.msra.mxu0 %v1512_v35  ;;  %v1610_v35 = vpack.c.bf16 %v3132_v42, %v3131_v37 }
0x1057   :  { %v1389_v38 = vsel %vm168_vm4, %v1387_v45, 0.0  ;;  %v1388_v46 = vmul.f32 %v1386_v44, %v1386_v44  ;;  %3488 = vmatprep.subr.bf16.mxu0 %v3807_v3  ;;  %v3126_v45 = vld [vmem:[%s4794_s15] ss:$0 sm:$0xff] }
0x1058   :  { %1390 = vadd.xlane.f32.xlu0 %v1389_v38 }
0x1059   :  { %v1392_v33 = vsel %vm168_vm4, %v1388_v46, 0.0 }
0x105a   :  { %1393 = vadd.xlane.f32.xlu1 %v1392_v33 }
0x10e5   :  { %v1391_v48 = vpop.xlane.xlu0 %1390 }
0x10e6   :  { %v1395_v49 = vmul.f32 0.03125, %v1391_v48 }
0x10e7   :  { %v1394_v50 = vpop.xlane.xlu1 %1393 }
0x10e8   :  { %v1397_v51 = vadd.f32 1e-05, %v1395_v49  ;;  %v1396_v52 = vmul.f32 0.03125, %v1394_v50 }
0x10ea   :  { %3726 = vrsqrt.f32 %v1397_v51  ;;  %v1398_v53 = vadd.f32 1e-05, %v1396_v52 }
0x10ec   :  { %3728 = vrsqrt.f32 %v1398_v53 }
0x10f4   :  { %v3727_v23 = vpop.eup %3726 }
0x10f5   :  { %v1401_v55 = vmul.f32 %v3727_v23, %v1385_v32  ;;  %v1503_v32 = vld [vmem:[%s4795_s16 + $0x70] sm:$0xff] }
0x10f6   :  { %v3729_v56 = vpop.eup %3728 }
0x10f7   :  { %v1407_v57 = vmul.f32 %v3124_v54, %v1401_v55  ;;  %v1402_v58 = vmul.f32 %v3729_v56, %v1386_v44  ;;  %v1513_v44 = vpack.c.bf16 %v1504_v43, %v1503_v32  ;;  %v3133_v32 = vld [vmem:[%s4787_s8 + $0x30] sm:$0xff]  ;;  %v3134_v43 = vld [vmem:[%s4787_s8 + $0x38] sm:$0xff] }
0x10f9   :  { %v1408_v29 = vmul.f32 %v3124_v54, %v1402_v58  ;;  %v1413_v60 = vadd.f32 %v3125_v59, %v1407_v57  ;;  %3489 = vmatpush3.bf16.msra.mxu0 %v1513_v44  ;;  %v1611_v44 = vpack.c.bf16 %v3134_v43, %v3133_v32 }
0x10fa   :  { %3520 = vmatprep.subr.bf16.mxu0 %v3807_v3 }
0x10fb   :  { %v1414_v61 = vadd.f32 %v3125_v59, %v1408_v29 }
0x10fd   :  { %v1419_v62 = vpack.c.bf16 %v1414_v61, %v1413_v60 }
0x10ff   :  { %3471 = vmatmul.mubr.msk.bf16.vlgmr.msra.gmra.mrb[40].mxu1 %vm168_vm4, %v1419_v62 }
0x1100   :  { %3498 = vmatprep.mubr.msk.bf16.mxu1 %vm3808_vm0, %v3807_v3  ;;  %3495 = vmatpush3.bf16.msra.mxu1 %v1610_v35 }
0x1101   :  { %3496 = vmatprep.subr.bf16.mxu1 %v3807_v3 }
0x1104   :  { %3497 = vmatpush3.bf16.msra.mxu1 %v1611_v44 }
0x1105   :  { %3502 = vmatprep.subr.bf16.mxu1 %v3807_v3 }
0x11d2   :  { %v1464_v38 = vpop.f32.mrb[40].mxu1 }
0x11d3   :  { %v1465_v46 = vadd.f32 %v3126_v45, %v1464_v38  ;;  %v3472_v33 = vpop.f32.mrb[41].mxu1 }
0x11d4   :  { %v1467_v4 = vpop.f32.mrb[42].mxu1 }
0x11d5   :  { %v1473_v8 = vmul.f32 0.044715, %v1465_v46  ;;  %v1468_v39 = vadd.f32 %v3126_v45, %v1467_v4  ;;  %v3473_v40 = vpop.f32.mrb[43].mxu1  ;;  %v1471_v57 = vmul.f32 0.5, %v1465_v46 }
0x11d6   :  { %v3129_v40 = vld [vmem:[%s4785_s6 + $0x1] ss:$0 sm:$0xff] }
0x11d7   :  { %v1475_v28 = vmul.f32 %v1473_v8, %v1465_v46  ;;  %v1474_v30 = vmul.f32 0.044715, %v1468_v39  ;;  %v1472_v58 = vmul.f32 0.5, %v1468_v39 }
0x11d9   :  { %v1477_v48 = vmul.f32 %v1475_v28, %v1465_v46  ;;  %v1476_v49 = vmul.f32 %v1474_v30, %v1468_v39 }
0x11db   :  { %v1479_v50 = vadd.f32 %v1477_v48, %v1465_v46  ;;  %v1478_v51 = vmul.f32 %v1476_v49, %v1468_v39 }
0x11dd   :  { %v1481_v52 = vmul.f32 0.7978846, %v1479_v50  ;;  %v1480_v53 = vadd.f32 %v1478_v51, %v1468_v39  ;;  %v3130_v50 = vld [vmem:[%s4786_s7 + $0x1] ss:$0 sm:$0xff] }
0x11df   :  { %3730 = vtanh.f32 %v1481_v52  ;;  %v1482_v23 = vmul.f32 0.7978846, %v1480_v53 }
0x11e1   :  { %3732 = vtanh.f32 %v1482_v23 }
0x11e9   :  { %v3731_v54 = vpop.eup %3730 }
0x11ea   :  { %v1485_v55 = vadd.f32 1.0, %v3731_v54  ;;  %v3135_v54 = vld [vmem:[%s4788_s9 + $0x1] ss:$0 sm:$0xff] }
0x11eb   :  { %v3733_v56 = vpop.eup %3732 }
0x11ec   :  { %v1486_v59 = vadd.f32 1.0, %v3733_v56  ;;  %v1487_v29 = vmul.f32 %v1485_v55, %v1471_v57 }
0x11ee   :  { %v1488_v60 = vmul.f32 %v1486_v59, %v1472_v58 }
0x11f0   :  { %v1505_v61 = vpack.c.bf16 %v1488_v60, %v1487_v29 }
0x11f2   :  { %3491 = vmatmul.mubr.bf16.vlgmr.msra.gmra.mrb[48].mxu0 %v1505_v61 }
0x11f3   :  { %3522 = vmatprep.mubr.msk.bf16.mxu0 %vm3808_vm0, %v3807_v3 }
0x12c5   :  { %v1548_v62 = vpop.f32.mrb[48].mxu0 }
0x12c6   :  { %v1555_v0 = vadd.f32 %v1548_v62, %v4283_v26  ;;  %v3492_v1 = vpop.f32.mrb[49].mxu0 }
0x12c7   :  { %v1551_v2 = vpop.f32.mrb[50].mxu0 }
0x12c8   :  { %v4384_v5 = vadd.f32 %v3128_v63, %v1555_v0  ;;  %v1556_v6 = vadd.f32 %v1551_v2, %v4286_v34  ;;  %v3493_v10 = vpop.f32.mrb[51].mxu0 }
0x12ca   :  { %v4387_v11 = vadd.f32 %v3128_v63, %v1556_v6  ;;  %v1566_v13 = vsel %vm168_vm4, %v4384_v5, 0.0 }
0x12cb   :  { %1567 = vadd.xlane.f32.xlu0 %v1566_v13 }
0x12cc   :  { %v1569_v14 = vsel %vm168_vm4, %v4387_v11, 0.0 }
0x12cd   :  { %1570 = vadd.xlane.f32.xlu1 %v1569_v14 }
0x1358   :  { %v1568_v16 = vpop.xlane.xlu0 %1567 }
0x1359   :  { %v1572_v17 = vmul.f32 0.03125, %v1568_v16 }
0x135a   :  { %v1571_v26 = vpop.xlane.xlu1 %1570 }
0x135b   :  { %v1574_v19 = vsub.f32 %v4384_v5, %v1572_v17  ;;  %v1573_v20 = vmul.f32 0.03125, %v1571_v26 }
0x135d   :  { %v1575_v22 = vsub.f32 %v4387_v11, %v1573_v20  ;;  %v1576_v34 = vmul.f32 %v1574_v19, %v1574_v19 }
0x135f   :  { %v1578_v31 = vsel %vm168_vm4, %v1576_v34, 0.0  ;;  %v1577_v25 = vmul.f32 %v1575_v22, %v1575_v22 }
0x1360   :  { %1579 = vadd.xlane.f32.xlu0 %v1578_v31 }
0x1361   :  { %v1581_v36 = vsel %vm168_vm4, %v1577_v25, 0.0 }
0x1362   :  { %1582 = vadd.xlane.f32.xlu1 %v1581_v36 }
0x13ed   :  { %v1580_v45 = vpop.xlane.xlu0 %1579 }
0x13ee   :  { %v1584_v38 = vmul.f32 0.03125, %v1580_v45 }
0x13ef   :  { %v1583_v46 = vpop.xlane.xlu1 %1582 }
0x13f0   :  { %v1586_v33 = vadd.f32 1e-05, %v1584_v38  ;;  %v1585_v4 = vmul.f32 0.03125, %v1583_v46 }
0x13f2   :  { %3734 = vrsqrt.f32 %v1586_v33  ;;  %v1587_v8 = vadd.f32 1e-05, %v1585_v4 }
0x13f4   :  { %3736 = vrsqrt.f32 %v1587_v8 }
0x13fc   :  { %v3735_v39 = vpop.eup %3734 }
0x13fd   :  { %v1590_v28 = vmul.f32 %v3735_v39, %v1574_v19 }
0x13fe   :  { %v3737_v30 = vpop.eup %3736 }
0x13ff   :  { %v1596_v48 = vmul.f32 %v3129_v40, %v1590_v28  ;;  %v1591_v49 = vmul.f32 %v3737_v30, %v1575_v22 }
0x1401   :  { %v1597_v51 = vmul.f32 %v3129_v40, %v1591_v49  ;;  %v1602_v52 = vadd.f32 %v3130_v50, %v1596_v48 }
0x1403   :  { %v1603_v53 = vadd.f32 %v3130_v50, %v1597_v51 }
0x1405   :  { %v1609_v23 = vpack.c.bf16 %v1603_v53, %v1602_v52 }
0x1407   :  { %3499 = vmatmul.mubr.msk.bf16.vlgmr.msra.gmra.mrb[44].mxu1 %vm168_vm4, %v1609_v23 }
0x1408   :  { %3504 = vmatprep.mubr.msk.bf16.mxu1 %vm3808_vm0, %v3807_v3 }
0x14da   :  { %v1654_v55 = vpop.f32.mrb[44].mxu1 }
0x14db   :  { %v1655_v56 = vadd.f32 %v3135_v54, %v1654_v55  ;;  %v3500_v57 = vpop.f32.mrb[45].mxu1 }
0x14dc   :  { %v1657_v58 = vpop.f32.mrb[46].mxu1 }
0x14dd   :  { %v4423_v59 = vpack.c.bf16 %v1655_v56, %v1655_v56  ;;  %v1658_v29 = vadd.f32 %v3135_v54, %v1657_v58  ;;  %v3501_v60 = vpop.f32.mrb[47].mxu1 }
0x14df   :  { %v4425_v61 = vpack.c.bf16 %v1658_v29, %v1658_v29  ;;  %1669 = vrot.lane.b32.xlu0 %v4423_v59, %s3810_s1 }
0x14e1   :  { %1718 = vrot.lane.b32.xlu1 %v4425_v61, %s3810_s1 }
0x1551   :  { %v1670_v62 = vpop.permute.xlu0 %1669 }
0x1552   :  { %v1675_v63 = vsel %vm273_vm5, %v1670_v62, 0 }
0x1553   :  { %3503 = vmatpush3.bf16.xpose.msra.mxu1 %v1675_v63  ;;  %v1719_v0 = vpop.permute.xlu1 %1718 }
0x1554   :  { %3508 = vmatprep.subr.bf16.mxu1 %v3807_v3  ;;  %v1724_v1 = vsel %vm273_vm5, %v1719_v0, 0 }
0x155a   :  { %3505 = vmatmul.mubr.msk.bf16.vlgmr.msra.gmra.mrb[48].mxu1 %vm273_vm5, %v4423_v59 }
0x155b   :  { %3509 = vmatpush3.bf16.xpose.msra.mxu1 %v1724_v1  ;;  %3510 = vmatprep.mubr.msk.bf16.mxu1 %vm3808_vm0, %v3807_v3 }
0x155c   :  { %3514 = vmatprep.subr.bf16.mxu1 %v3807_v3 }
0x1562   :  { %3511 = vmatmul.mubr.msk.bf16.vlgmr.msra.gmra.mrb[52].mxu1 %vm273_vm5, %v4425_v61 }
0x1563   :  { %3516 = vmatprep.mubr.msk.bf16.mxu1 %vm3808_vm0, %v3807_v3 }
0x162d   :  { %v1711_v2 = vpop.f32.mrb[48].mxu1 }
0x162e   :  { %v1766_v6 = vmul.f32 0.35355338, %v1711_v2  ;;  %v3506_v10 = vpop.f32.mrb[49].mxu1 }
0x162f   :  { %v1714_v13 = vpop.f32.mrb[50].mxu1 }
0x1630   :  { %v3507_v14 = vpop.f32.mrb[51].mxu1  ;;  %v1768_v16 = vadd.f32 %v1766_v6, %v4085_v41 }
0x1632   :  { %v1770_v17 = vsel %vm273_vm5, %v1768_v16, -inf }
0x1633   :  { %1771 = vmax.xlane.f32.xlu1 %v1770_v17 }
0x1635   :  { %v1760_v26 = vpop.f32.mrb[52].mxu1 }
0x1636   :  { %v1767_v19 = vmul.f32 0.35355338, %v1760_v26  ;;  %v3512_v20 = vpop.f32.mrb[53].mxu1 }
0x1637   :  { %v1763_v22 = vpop.f32.mrb[54].mxu1 }
0x1638   :  { %v3513_v34 = vpop.f32.mrb[55].mxu1  ;;  %v1769_v31 = vadd.f32 %v1767_v19, %v4090_v47 }
0x163a   :  { %v1773_v25 = vsel %vm273_vm5, %v1769_v31, -inf }
0x163b   :  { %1774 = vmax.xlane.f32.xlu0 %v1773_v25 }
0x1644   :  { %1842 = vrot.lane.b32.xlu1 %v4425_v61, %s3812_s2 }
0x1651   :  { %1794 = vrot.lane.b32.xlu0 %v4423_v59, %s3812_s2  ;;  %s4814_s2 = smov 72  }
0x16c0   :  { %v1772_v36 = vpop.xlane.xlu1 %1771 }
0x16c1   :  { %v1776_v37 = vsub.f32 %v1768_v16, %v1772_v36 }
0x16c3   :  { %v1778_v42 = vmul.f32 1.442695, %v1776_v37 }
0x16c4   :  { %v1843_v35 = vpop.permute.xlu1 %1842 }
0x16c5   :  { %3738 = vpow2.f32 %v1778_v42  ;;  %v1848_v32 = vsel %vm402_vm7, %v1843_v35, 0 }
0x16c6   :  { %3521 = vmatpush3.bf16.msra.mxu0 %v1848_v32 }
0x16c7   :  { %3532 = vmatprep.subr.bf16.mxu0 %v3807_v3 }
0x16c8   :  { %v1775_v43 = vpop.xlane.xlu0 %1774 }
0x16c9   :  { %v1777_v44 = vsub.f32 %v1769_v31, %v1775_v43 }
0x16cb   :  { %v1780_v45 = vmul.f32 1.442695, %v1777_v44 }
0x16cc   :  { %v1795_v38 = vpop.permute.xlu0 %1794 }
0x16cd   :  { %3740 = vpow2.f32 %v1780_v45  ;;  %v1800_v46 = vsel %vm402_vm7, %v1795_v38, 0 }
0x16ce   :  { %3515 = vmatpush3.bf16.msra.mxu1 %v1800_v46 }
0x16cf   :  { %v3739_v33 = vpop.eup %3738  ;;  %3526 = vmatprep.subr.bf16.mxu1 %v3807_v3 }
0x16d0   :  { %v1782_v4 = vsel %vm273_vm5, %v3739_v33, 0.0 }
0x16d1   :  { %1783 = vadd.xlane.f32.xlu0 %v1782_v4 }
0x16d7   :  { %v3741_v8 = vpop.eup %3740 }
0x16d8   :  { %v1785_v39 = vsel %vm273_vm5, %v3741_v8, 0.0 }
0x16d9   :  { %1786 = vadd.xlane.f32.xlu1 %v1785_v39 }
0x16e7   :  { %1944 = vrot.lane.b32.xlu0 %v4425_v61, %s3813_s23 }
0x16ea   :  { %1894 = vrot.lane.b32.xlu1 %v4423_v59, %s3813_s23  ;;  %s4815_s23 = smov 104  }
0x16eb   :  { %1942 = vrot.lane.b32.xlu0 %v4425_v61, %s3814_s24 }
0x16ee   :  { %1892 = vrot.lane.b32.xlu1 %v4423_v59, %s3814_s24 }
0x175e   :  { %v1784_v40 = vpop.xlane.xlu0 %1783 }
0x175f   :  { %3742 = vrcp.f32 %v1784_v40 }
0x1762   :  { %v1945_v23 = vpop.permute.xlu0 %1944 }
0x1763   :  { %v1950_v56 = vsel %vm273_vm5, %v1945_v23, 0 }
0x1766   :  { %v1787_v28 = vpop.xlane.xlu1 %1786  ;;  %v1943_v57 = vpop.permute.xlu0 %1942 }
0x1767   :  { %3744 = vrcp.f32 %v1787_v28 }
0x1769   :  { %v3743_v30 = vpop.eup %3742 }
0x176a   :  { %v1790_v48 = vmul.f32 %v3743_v30, %v3739_v33  ;;  %v1895_v49 = vpop.permute.xlu1 %1894 }
0x176b   :  { %v1900_v51 = vsel %vm273_vm5, %v1895_v49, 0 }
0x176c   :  { %v1792_v50 = vpack.c.bf16 %v1790_v48, %v1790_v48 }
0x176e   :  { %3517 = vmatmul.mubr.msk.bf16.vlgmr.msra.gmra.mrb[56].mxu1 %vm273_vm5, %v1792_v50  ;;  %v1893_v55 = vpop.permute.xlu1 %1892 }
0x176f   :  { %3527 = vmatpush3.bf16.xpose.msra.mxu1 %v1900_v51  ;;  %3528 = vmatprep.mubr.msk.bf16.mxu1 %vm3808_vm0, %v3807_v3 }
0x1770   :  { %3538 = vmatprep.subr.bf16.mxu1 %v3807_v3 }
0x1771   :  { %v3745_v52 = vpop.eup %3744 }
0x1772   :  { %v1791_v53 = vmul.f32 %v3745_v52, %v3741_v8  ;;  %v3137_v52 = vld [vmem:[%s4789_s10 + $0x20] sm:$0xff] }
0x1774   :  { %v1793_v54 = vpack.c.bf16 %v1791_v53, %v1791_v53  ;;  %v1891_v53 = vpack.c.bf16 %v3137_v52, %v3137_v52 }
0x1776   :  { %3523 = vmatmul.mubr.msk.bf16.vlgmr.msra.gmra.mrb[52].mxu0 %vm273_vm5, %v1793_v54  ;;  %3529 = vmatmul.mubr.msk.bf16.vlgmr.msra.gmra.mrb[60].mxu1 %vm273_vm5, %v1893_v55 }
0x1777   :  { %3533 = vmatpush3.bf16.xpose.msra.mxu0 %v1950_v56  ;;  %3534 = vmatprep.mubr.msk.bf16.mxu0 %vm3808_vm0, %v3807_v3  ;;  %v2169_v56 = vsel %vm402_vm7, %v1891_v53, 0 }
0x1778   :  { %3544 = vmatprep.subr.bf16.mxu0 %v3807_v3  ;;  %3540 = vmatprep.mubr.msk.bf16.mxu1 %vm3808_vm0, %v3807_v3 }
0x177e   :  { %3535 = vmatmul.mubr.msk.bf16.vlgmr.msra.gmra.mrb[56].mxu0 %vm273_vm5, %v1943_v57 }
0x177f   :  { %3546 = vmatprep.mubr.msk.bf16.mxu0 %vm3808_vm0, %v3807_v3 }
0x1841   :  { %v4481_v58 = vpop.f32.mrb[56].mxu1 }
0x1842   :  { %v3518_v29 = vpop.f32.mrb[57].mxu1 }
0x1843   :  { %v1839_v60 = vpop.f32.mrb[58].mxu1 }
0x1844   :  { %v3519_v62 = vpop.f32.mrb[59].mxu1 }
0x1849   :  { %v4483_v63 = vpop.f32.mrb[52].mxu0  ;;  %v1936_v0 = vpop.f32.mrb[60].mxu1 }
0x184a   :  { %v1890_v1 = vpack.c.bf16 %v4483_v63, %v4481_v58  ;;  %v1992_v2 = vmul.f32 0.35355338, %v1936_v0  ;;  %v3524_v6 = vpop.f32.mrb[53].mxu0  ;;  %v3530_v10 = vpop.f32.mrb[61].mxu1  ;;  %v3138_v58 = vld [vmem:[%s4789_s10 + $0x28] sm:$0xff] }
0x184b   :  { %v1887_v13 = vpop.f32.mrb[54].mxu0  ;;  %v1939_v14 = vpop.f32.mrb[62].mxu1  ;;  %v2117_v62 = vpack.c.bf16 %v3138_v58, %v3138_v58 }
0x184c   :  { %v3525_v16 = vpop.f32.mrb[55].mxu0  ;;  %v3531_v17 = vpop.f32.mrb[63].mxu1  ;;  %v1994_v26 = vadd.f32 %v1992_v2, %v4085_v41 }
0x184d   :  { %v2122_v63 = vsel %vm402_vm7, %v2117_v62, 0 }
0x184e   :  { %v1996_v19 = vsel %vm273_vm5, %v1994_v26, -inf }
0x184f   :  { %1997 = vmax.xlane.f32.xlu1 %v1996_v19 }
0x1851   :  { %v1986_v20 = vpop.f32.mrb[56].mxu0 }
0x1852   :  { %v1993_v22 = vmul.f32 0.35355338, %v1986_v20  ;;  %v3536_v34 = vpop.f32.mrb[57].mxu0 }
0x1853   :  { %v1989_v31 = vpop.f32.mrb[58].mxu0 }
0x1854   :  { %v3537_v25 = vpop.f32.mrb[59].mxu0  ;;  %v1995_v36 = vadd.f32 %v1993_v22, %v4090_v47 }
0x1856   :  { %v1999_v37 = vsel %vm273_vm5, %v1995_v36, -inf }
0x1857   :  { %2000 = vmax.xlane.f32.xlu0 %v1999_v37 }
0x18dc   :  { %v1998_v42 = vpop.xlane.xlu1 %1997 }
0x18dd   :  { %v2002_v35 = vsub.f32 %v1994_v26, %v1998_v42 }
0x18df   :  { %v2004_v32 = vmul.f32 1.442695, %v2002_v35 }
0x18e1   :  { %3746 = vpow2.f32 %v2004_v32 }
0x18e4   :  { %v2001_v43 = vpop.xlane.xlu0 %2000 }
0x18e5   :  { %v2003_v44 = vsub.f32 %v1995_v36, %v2001_v43 }
0x18e7   :  { %v2006_v45 = vmul.f32 1.442695, %v2003_v44 }
0x18e9   :  { %3748 = vpow2.f32 %v2006_v45 }
0x18eb   :  { %v3747_v38 = vpop.eup %3746 }
0x18ec   :  { %v2008_v46 = vsel %vm273_vm5, %v3747_v38, 0.0 }
0x18ed   :  { %2009 = vadd.xlane.f32.xlu0 %v2008_v46 }
0x18f3   :  { %v3749_v33 = vpop.eup %3748 }
0x18f4   :  { %v2011_v4 = vsel %vm273_vm5, %v3749_v33, 0.0 }
0x18f5   :  { %2012 = vadd.xlane.f32.xlu1 %v2011_v4 }
0x1903   :  { %2020 = vrot.lane.b32.xlu0 %v4423_v59, %s3815_s25 }
0x1906   :  { %2068 = vrot.lane.b32.xlu1 %v4425_v61, %s3815_s25 }
0x1907   :  { %2264 = vrot.lane.b32.xlu0 %v4425_v61, %s3816_s26 }
0x190a   :  { %2214 = vrot.lane.b32.xlu1 %v4423_v59, %s3816_s26  ;;  %s4816_s26 = smov 40  }
0x190b   :  { %2262 = vrot.lane.b32.xlu0 %v4425_v61, %s3817_s27 }
0x190e   :  { %2212 = vrot.lane.b32.xlu1 %v4423_v59, %s3817_s27 }
0x197a   :  { %v2010_v8 = vpop.xlane.xlu0 %2009 }
0x197b   :  { %3750 = vrcp.f32 %v2010_v8 }
0x197e   :  { %v2021_v39 = vpop.permute.xlu0 %2020 }
0x197f   :  { %v2026_v40 = vsel %vm402_vm7, %v2021_v39, 0 }
0x1980   :  { %3539 = vmatpush3.bf16.msra.mxu1 %v2026_v40 }
0x1981   :  { %3550 = vmatprep.subr.bf16.mxu1 %v3807_v3 }
0x1982   :  { %v2013_v28 = vpop.xlane.xlu1 %2012  ;;  %v2265_v57 = vpop.permute.xlu0 %2264 }
0x1983   :  { %3752 = vrcp.f32 %v2013_v28  ;;  %v2270_v29 = vsel %vm273_vm5, %v2265_v57, 0 }
0x1985   :  { %v3751_v30 = vpop.eup %3750 }
0x1986   :  { %v2016_v48 = vmul.f32 %v3751_v30, %v3747_v38  ;;  %v2069_v49 = vpop.permute.xlu1 %2068  ;;  %v2263_v60 = vpop.permute.xlu0 %2262 }
0x1987   :  { %v2074_v50 = vsel %vm402_vm7, %v2069_v49, 0 }
0x1988   :  { %3545 = vmatpush3.bf16.msra.mxu0 %v2074_v50  ;;  %v2018_v51 = vpack.c.bf16 %v2016_v48, %v2016_v48 }
0x1989   :  { %3556 = vmatprep.subr.bf16.mxu0 %v3807_v3 }
0x198a   :  { %3541 = vmatmul.mubr.msk.bf16.vlgmr.msra.gmra.mrb[64].mxu1 %vm273_vm5, %v2018_v51  ;;  %v2215_v10 = vpop.permute.xlu1 %2214 }
0x198b   :  { %3552 = vmatprep.mubr.msk.bf16.mxu1 %vm3808_vm0, %v3807_v3  ;;  %3551 = vmatpush3.bf16.msra.mxu1 %v2122_v63  ;;  %v2220_v26 = vsel %vm273_vm5, %v2215_v10, 0 }
0x198c   :  { %3562 = vmatprep.subr.bf16.mxu1 %v3807_v3 }
0x198d   :  { %v3753_v23 = vpop.eup %3752 }
0x198e   :  { %v2017_v54 = vmul.f32 %v3753_v23, %v3749_v33  ;;  %v2213_v34 = vpop.permute.xlu1 %2212 }
0x1990   :  { %v2019_v55 = vpack.c.bf16 %v2017_v54, %v2017_v54 }
0x1992   :  { %3547 = vmatmul.mubr.msk.bf16.vlgmr.msra.gmra.mrb[60].mxu0 %vm273_vm5, %v2019_v55 }
0x1993   :  { %3557 = vmatpush3.bf16.msra.mxu0 %v2169_v56  ;;  %3558 = vmatprep.mubr.msk.bf16.mxu0 %vm3808_vm0, %v3807_v3 }
0x1994   :  { %3568 = vmatprep.subr.bf16.mxu0 %v3807_v3 }
0x199a   :  { %3559 = vmatmul.mubr.msk.bf16.vlgmr.msra.gmra.mrb[64].mxu0 %vm273_vm5, %v1890_v1 }
0x199b   :  { %3570 = vmatprep.mubr.msk.bf16.mxu0 %vm3808_vm0, %v3807_v3 }
0x199c   :  { %3569 = vmatpush3.bf16.xpose.msra.mxu0 %v2270_v29 }
0x199d   :  { %3580 = vmatprep.subr.bf16.mxu0 %v3807_v3 }
0x19a3   :  { %3571 = vmatmul.mubr.msk.bf16.vlgmr.msra.gmra.mrb[68].mxu0 %vm273_vm5, %v2263_v60 }
0x19a4   :  { %3582 = vmatprep.mubr.msk.bf16.mxu0 %vm3808_vm0, %v3807_v3 }
0x1a5d   :  { %v2062_v0 = vpop.f32.mrb[64].mxu1 }
0x1a5e   :  { %v3542_v1 = vpop.f32.mrb[65].mxu1 }
0x1a5f   :  { %v2065_v2 = vpop.f32.mrb[66].mxu1 }
0x1a60   :  { %v3543_v6 = vpop.f32.mrb[67].mxu1 }
0x1a65   :  { %v2110_v13 = vpop.f32.mrb[60].mxu0 }
0x1a66   :  { %v2116_v14 = vpack.c.bf16 %v2110_v13, %v2062_v0  ;;  %v3548_v16 = vpop.f32.mrb[61].mxu0 }
0x1a67   :  { %v2113_v17 = vpop.f32.mrb[62].mxu0 }
0x1a68   :  { %v3549_v19 = vpop.f32.mrb[63].mxu0  ;;  %3553 = vmatmul.mubr.msk.bf16.vlgmr.msra.gmra.mrb[68].mxu1 %vm273_vm5, %v2116_v14 }
0x1a69   :  { %3563 = vmatpush3.bf16.xpose.msra.mxu1 %v2220_v26  ;;  %3564 = vmatprep.mubr.msk.bf16.mxu1 %vm3808_vm0, %v3807_v3  ;;  %v3139_v26 = vld [vmem:[%s4789_s10 + $0x30] sm:$0xff] }
0x1a6a   :  { %3574 = vmatprep.subr.bf16.mxu1 %v3807_v3  ;;  %v2437_v19 = vpack.c.bf16 %v3139_v26, %v3139_v26 }
0x1a6d   :  { %v2205_v20 = vpop.f32.mrb[64].mxu0 }
0x1a6e   :  { %v3560_v22 = vpop.f32.mrb[65].mxu0 }
0x1a6f   :  { %v2208_v31 = vpop.f32.mrb[66].mxu0 }
0x1a70   :  { %v3561_v25 = vpop.f32.mrb[67].mxu0  ;;  %3565 = vmatmul.mubr.msk.bf16.vlgmr.msra.gmra.mrb[72].mxu1 %vm273_vm5, %v2213_v34 }
0x1a71   :  { %3576 = vmatprep.mubr.msk.bf16.mxu1 %vm3808_vm0, %v3807_v3 }
0x1a76   :  { %v2306_v36 = vpop.f32.mrb[68].mxu0 }
0x1a77   :  { %v2313_v37 = vmul.f32 0.35355338, %v2306_v36  ;;  %v3572_v42 = vpop.f32.mrb[69].mxu0 }
0x1a78   :  { %v2309_v35 = vpop.f32.mrb[70].mxu0 }
0x1a79   :  { %v3573_v32 = vpop.f32.mrb[71].mxu0  ;;  %v2315_v43 = vadd.f32 %v2313_v37, %v4090_v47 }
0x1a7b   :  { %v2319_v44 = vsel %vm273_vm5, %v2315_v43, -inf }
0x1a7c   :  { %2320 = vmax.xlane.f32.xlu0 %v2319_v44 }
0x1b09   :  { %v2321_v45 = vpop.xlane.xlu0 %2320 }
0x1b0a   :  { %v2323_v38 = vsub.f32 %v2315_v43, %v2321_v45 }
0x1b0c   :  { %v2326_v46 = vmul.f32 1.442695, %v2323_v38 }
0x1b0e   :  { %3754 = vpow2.f32 %v2326_v46 }
0x1b18   :  { %v3755_v23 = vpop.eup %3754 }
0x1b19   :  { %v2331_v54 = vsel %vm273_vm5, %v3755_v23, 0.0 }
0x1b3b   :  { %v2158_v33 = vpop.f32.mrb[68].mxu1 }
0x1b3c   :  { %v4546_v4 = vadd.f32 %v2205_v20, %v2158_v33  ;;  %v3554_v8 = vpop.f32.mrb[69].mxu1 }
0x1b3d   :  { %v2161_v39 = vpop.f32.mrb[70].mxu1 }
0x1b3e   :  { %v4548_v40 = vadd.f32 %v2208_v31, %v2161_v39  ;;  %v3555_v28 = vpop.f32.mrb[71].mxu1  ;;  %v2442_v31 = vsel %vm402_vm7, %v2437_v19, 0 }
0x1b43   :  { %v2256_v30 = vpop.f32.mrb[72].mxu1 }
0x1b44   :  { %v2312_v48 = vmul.f32 0.35355338, %v2256_v30  ;;  %v3566_v49 = vpop.f32.mrb[73].mxu1 }
0x1b45   :  { %v2259_v50 = vpop.f32.mrb[74].mxu1 }
0x1b46   :  { %v3567_v51 = vpop.f32.mrb[75].mxu1  ;;  %v2314_v52 = vadd.f32 %v2312_v48, %v4085_v41 }
0x1b48   :  { %v2316_v53 = vsel %vm273_vm5, %v2314_v52, -inf }
0x1b49   :  { %2317 = vmax.xlane.f32.xlu1 %v2316_v53 }
0x1b4d   :  { %2332 = vadd.xlane.f32.xlu1 %v2331_v54 }
0x1b5e   :  { %2388 = vrot.lane.b32.xlu1 %v4425_v61, %s3818_s19 }
0x1b62   :  { %2489 = vrot.lane.b32.xlu1 %v4423_v59, %s4814_s2 }
0x1b66   :  { %2487 = vrot.lane.b32.xlu1 %v4423_v59, %s4815_s23 }
0x1bd6   :  { %v2318_v55 = vpop.xlane.xlu1 %2317 }
0x1bd7   :  { %v2322_v56 = vsub.f32 %v2314_v52, %v2318_v55 }
0x1bd9   :  { %v2324_v57 = vmul.f32 1.442695, %v2322_v56 }
0x1bda   :  { %v2333_v29 = vpop.xlane.xlu1 %2332 }
0x1bdb   :  { %3756 = vpow2.f32 %v2324_v57 }
0x1bdc   :  { %3758 = vrcp.f32 %v2333_v29 }
0x1bde   :  { %v2389_v60 = vpop.permute.xlu1 %2388 }
0x1bdf   :  { %v2394_v58 = vsel %vm402_vm7, %v2389_v60, 0 }
0x1be0   :  { %3581 = vmatpush3.bf16.msra.mxu0 %v2394_v58 }
0x1be1   :  { %3592 = vmatprep.subr.bf16.mxu0 %v3807_v3 }
0x1be2   :  { %v2490_v2 = vpop.permute.xlu1 %2489 }
0x1be3   :  { %v2495_v10 = vsel %vm273_vm5, %v2490_v2, 0 }
0x1be5   :  { %v3757_v62 = vpop.eup %3756 }
0x1be6   :  { %v3759_v63 = vpop.eup %3758  ;;  %v2328_v0 = vsel %vm273_vm5, %v3757_v62, 0.0  ;;  %v2488_v13 = vpop.permute.xlu1 %2487 }
0x1be7   :  { %v2337_v1 = vmul.f32 %v3759_v63, %v3755_v23  ;;  %2329 = vadd.xlane.f32.xlu0 %v2328_v0 }
0x1be9   :  { %v2339_v6 = vpack.c.bf16 %v2337_v1, %v2337_v1 }
0x1beb   :  { %3583 = vmatmul.mubr.msk.bf16.vlgmr.msra.gmra.mrb[72].mxu0 %vm273_vm5, %v2339_v6 }
0x1bec   :  { %3593 = vmatpush3.bf16.xpose.msra.mxu0 %v2495_v10  ;;  %3594 = vmatprep.mubr.msk.bf16.mxu0 %vm3808_vm0, %v3807_v3 }
0x1bed   :  { %3604 = vmatprep.subr.bf16.mxu0 %v3807_v3 }
0x1bf3   :  { %3595 = vmatmul.mubr.msk.bf16.vlgmr.msra.gmra.mrb[76].mxu0 %vm273_vm5, %v2488_v13 }
0x1bf4   :  { %3606 = vmatprep.mubr.msk.bf16.mxu0 %vm3808_vm0, %v3807_v3 }
0x1bfd   :  { %2340 = vrot.lane.b32.xlu0 %v4423_v59, %s3818_s19  ;;  %s4817_s19 = sld [smem:[#allocation8_spill]] }
0x1c01   :  { %2539 = vrot.lane.b32.xlu0 %v4425_v61, %s4814_s2 }
0x1c05   :  { %2537 = vrot.lane.b32.xlu0 %v4425_v61, %s4815_s23 }
0x1c74   :  { %v2330_v14 = vpop.xlane.xlu0 %2329 }
0x1c75   :  { %3760 = vrcp.f32 %v2330_v14 }
0x1c78   :  { %v2341_v16 = vpop.permute.xlu0 %2340 }
0x1c79   :  { %v2346_v17 = vsel %vm402_vm7, %v2341_v16, 0 }
0x1c7a   :  { %3575 = vmatpush3.bf16.msra.mxu1 %v2346_v17 }
0x1c7b   :  { %3586 = vmatprep.subr.bf16.mxu1 %v3807_v3 }
0x1c7c   :  { %v2540_v33 = vpop.permute.xlu0 %2539 }
0x1c7d   :  { %v2545_v48 = vsel %vm273_vm5, %v2540_v33, 0 }
0x1c7f   :  { %v3761_v20 = vpop.eup %3760 }
0x1c80   :  { %v2336_v22 = vmul.f32 %v3761_v20, %v3757_v62 }
0x1c82   :  { %v2338_v34 = vpack.c.bf16 %v2336_v22, %v2336_v22 }
0x1c84   :  { %3577 = vmatmul.mubr.msk.bf16.vlgmr.msra.gmra.mrb[76].mxu1 %vm273_vm5, %v2338_v34 }
0x1c85   :  { %3587 = vmatpush3.bf16.msra.mxu1 %v2442_v31  ;;  %3588 = vmatprep.mubr.msk.bf16.mxu1 %vm3808_vm0, %v3807_v3 }
0x1c86   :  { %3598 = vmatprep.subr.bf16.mxu1 %v3807_v3 }
0x1cbe   :  { %v2430_v25 = vpop.f32.mrb[72].mxu0 }
0x1cbf   :  { %v3584_v36 = vpop.f32.mrb[73].mxu0 }
0x1cc0   :  { %v2433_v37 = vpop.f32.mrb[74].mxu0 }
0x1cc1   :  { %v3585_v42 = vpop.f32.mrb[75].mxu0 }
0x1cc6   :  { %v2531_v35 = vpop.f32.mrb[76].mxu0 }
0x1cc7   :  { %v2587_v32 = vmul.f32 0.35355338, %v2531_v35  ;;  %v3596_v43 = vpop.f32.mrb[77].mxu0 }
0x1cc8   :  { %v2534_v44 = vpop.f32.mrb[78].mxu0 }
0x1cc9   :  { %v3597_v45 = vpop.f32.mrb[79].mxu0  ;;  %v2589_v38 = vadd.f32 %v2587_v32, %v4085_v41  ;;  %v2538_v41 = vpop.permute.xlu0 %2537 }
0x1ccb   :  { %v2591_v46 = vsel %vm273_vm5, %v2589_v38, -inf }
0x1ccc   :  { %2592 = vmax.xlane.f32.xlu1 %v2591_v46 }
0x1d57   :  { %v2382_v8 = vpop.f32.mrb[76].mxu1 }
0x1d58   :  { %v2436_v39 = vpack.c.bf16 %v2430_v25, %v2382_v8  ;;  %v3578_v28 = vpop.f32.mrb[77].mxu1 }
0x1d59   :  { %v2385_v30 = vpop.f32.mrb[78].mxu1  ;;  %v2593_v50 = vpop.xlane.xlu1 %2592 }
0x1d5a   :  { %v3579_v49 = vpop.f32.mrb[79].mxu1  ;;  %3589 = vmatmul.mubr.msk.bf16.vlgmr.msra.gmra.mrb[80].mxu1 %vm273_vm5, %v2436_v39  ;;  %v2597_v51 = vsub.f32 %v2589_v38, %v2593_v50 }
0x1d5b   :  { %3599 = vmatpush3.bf16.xpose.msra.mxu1 %v2545_v48  ;;  %3600 = vmatprep.mubr.msk.bf16.mxu1 %vm3808_vm0, %v3807_v3  ;;  %v3161_v48 = vld [vmem:[%s4790_s11 + $0x1] ss:$0 sm:$0xff] }
0x1d5c   :  { %3610 = vmatprep.subr.bf16.mxu1 %v3807_v3  ;;  %v2599_v52 = vmul.f32 1.442695, %v2597_v51 }
0x1d5e   :  { %3762 = vpow2.f32 %v2599_v52 }
0x1d62   :  { %3601 = vmatmul.mubr.msk.bf16.vlgmr.msra.gmra.mrb[84].mxu1 %vm273_vm5, %v2538_v41 }
0x1d63   :  { %3612 = vmatprep.mubr.msk.bf16.mxu1 %vm3808_vm0, %v3807_v3 }
0x1d68   :  { %v3763_v2 = vpop.eup %3762 }
0x1e2d   :  { %v2478_v53 = vpop.f32.mrb[80].mxu1 }
0x1e2e   :  { %v4597_v23 = vadd.f32 %v2478_v53, %v4546_v4  ;;  %v3590_v54 = vpop.f32.mrb[81].mxu1  ;;  %v2603_v4 = vsel %vm273_vm5, %v3763_v2, 0.0 }
0x1e2f   :  { %v2481_v55 = vpop.f32.mrb[82].mxu1 }
0x1e30   :  { %v4600_v56 = vadd.f32 %v2481_v55, %v4548_v40  ;;  %v3591_v57 = vpop.f32.mrb[83].mxu1 }
0x1e35   :  { %v2581_v29 = vpop.f32.mrb[84].mxu1 }
0x1e36   :  { %v2588_v60 = vmul.f32 0.35355338, %v2581_v29  ;;  %v3602_v58 = vpop.f32.mrb[85].mxu1 }
0x1e37   :  { %v2584_v62 = vpop.f32.mrb[86].mxu1 }
0x1e38   :  { %v3603_v63 = vpop.f32.mrb[87].mxu1  ;;  %v2590_v0 = vadd.f32 %v2588_v60, %v4090_v47 }
0x1e3a   :  { %v2594_v1 = vsel %vm273_vm5, %v2590_v0, -inf }
0x1e3b   :  { %2595 = vmax.xlane.f32.xlu0 %v2594_v1  ;;  %v3164_v1 = vld [vmem:[%s4793_s14 + $0x20] sm:$0xff] }
0x1e3f   :  { %2604 = vadd.xlane.f32.xlu0 %v2603_v4 }
0x1e55   :  { %2615 = vrot.lane.b32.xlu0 %v4423_v59, %s4816_s26  ;;  %v3140_v59 = vld [vmem:[%s4789_s10 + $0x38] sm:$0xff]  ;;  %s3822_s10 = smov [#allocation2]  }
0x1e56   :  { %v2712_v22 = vpack.c.bf16 %v3140_v59, %v3140_v59  ;;  %s3082_s21 = sshll.u32 %s3822_s10, 4  ;;  %s3083_s21 = int_to_ptr.vmem [resolvable:$true] %s3082_s21 }
0x1e57   :  { %p3787_p1 = scmp.lt.s32.totalorder %s3083_s21, %s3083_s21 }
0x1e58   :  { %v2717_v34 = vsel %vm402_vm7, %v2712_v22, 0 }
0x1ec8   :  { %v2596_v40 = vpop.xlane.xlu0 %2595 }
0x1ec9   :  { %v2598_v6 = vsub.f32 %v2590_v0, %v2596_v40  ;;  %v3166_v40 = vld [vmem:[%s4793_s14 + $0x30] sm:$0xff] }
0x1ecb   :  { %v2601_v10 = vmul.f32 1.442695, %v2598_v6  ;;  %v3167_v6 = vld [vmem:[%s4793_s14 + $0x38] sm:$0xff] }
0x1ecc   :  { %v2605_v13 = vpop.xlane.xlu0 %2604 }
0x1ecd   :  { %3764 = vpow2.f32 %v2601_v10  ;;  %v2818_v10 = vpack.c.bf16 %v3167_v6, %v3166_v40 }
0x1ece   :  { %3766 = vrcp.f32 %v2605_v13 }
0x1ed0   :  { %v2616_v14 = vpop.permute.xlu0 %2615 }
0x1ed1   :  { %v2621_v16 = vsel %vm402_vm7, %v2616_v14, 0 }
0x1ed2   :  { %3605 = vmatpush3.bf16.msra.mxu0 %v2621_v16 }
0x1ed3   :  { %3616 = vmatprep.subr.bf16.mxu0 %v3807_v3 }
0x1ed7   :  { %v3765_v47 = vpop.eup %3764 }
0x1ed8   :  { %v3767_v17 = vpop.eup %3766  ;;  %v2606_v26 = vsel %vm273_vm5, %v3765_v47, 0.0 }
0x1ed9   :  { %v2611_v19 = vmul.f32 %v3767_v17, %v3763_v2  ;;  %2607 = vadd.xlane.f32.xlu1 %v2606_v26  ;;  %v3165_v2 = vld [vmem:[%s4793_s14 + $0x28] sm:$0xff] }
0x1eda   :  { %v2817_v4 = vpack.c.bf16 %v3165_v2, %v3164_v1 }
0x1edb   :  { %v2613_v20 = vpack.c.bf16 %v2611_v19, %v2611_v19 }
0x1edd   :  { %3607 = vmatmul.mubr.msk.bf16.vlgmr.msra.gmra.mrb[80].mxu0 %vm273_vm5, %v2613_v20  ;;  %v3162_v20 = vld [vmem:[%s4791_s12 + $0x1] ss:$0 sm:$0xff] }
0x1ede   :  { %3618 = vmatprep.mubr.msk.bf16.mxu0 %vm3808_vm0, %v3807_v3  ;;  %3617 = vmatpush3.bf16.msra.mxu0 %v2717_v34 }
0x1edf   :  { %3630 = vmatprep.subr.bf16.mxu0 %v3807_v3 }
0x1eea   :  { %2663 = vrot.lane.b32.xlu1 %v4425_v61, %s4816_s26 }
0x1f66   :  { %v2608_v31 = vpop.xlane.xlu1 %2607 }
0x1f67   :  { %3768 = vrcp.f32 %v2608_v31 }
0x1f6a   :  { %v2664_v25 = vpop.permute.xlu1 %2663 }
0x1f6b   :  { %v2669_v36 = vsel %vm402_vm7, %v2664_v25, 0  ;;  %v3163_v25 = vld [vmem:[%s4792_s13 + $0x1] ss:$0 sm:$0xff] }
0x1f6c   :  { %3611 = vmatpush3.bf16.msra.mxu1 %v2669_v36 }
0x1f6d   :  { %3622 = vmatprep.subr.bf16.mxu1 %v3807_v3 }
0x1f71   :  { %v3769_v37 = vpop.eup %3768 }
0x1f72   :  { %v2612_v61 = vmul.f32 %v3769_v37, %v3765_v47 }
0x1f74   :  { %v2614_v42 = vpack.c.bf16 %v2612_v61, %v2612_v61 }
0x1f76   :  { %3613 = vmatmul.mubr.msk.bf16.vlgmr.msra.gmra.mrb[88].mxu1 %vm273_vm5, %v2614_v42 }
0x1f77   :  { %3626 = vmatprep.mubr.msk.bf16.mxu1 %vm3808_vm0, %v3807_v3  ;;  %3623 = vmatpush3.bf16.msra.mxu1 %v2817_v4 }
0x1f78   :  { %3624 = vmatprep.subr.bf16.mxu1 %v3807_v3 }
0x1f7b   :  { %3625 = vmatpush3.bf16.msra.mxu1 %v2818_v10 }
0x1f7c   :  { %3650 = vmatprep.subr.bf16.mxu1 %v3807_v3 }
0x1fb0   :  { %v2657_v35 = vpop.f32.mrb[80].mxu0 }
0x1fb1   :  { %v3608_v32 = vpop.f32.mrb[81].mxu0 }
0x1fb2   :  { %v2660_v43 = vpop.f32.mrb[82].mxu0  ;;  %v3171_v32 = vld [vmem:[%s4795_s16 + $0x88] sm:$0xff] }
0x1fb3   :  { %v3609_v44 = vpop.f32.mrb[83].mxu0 }
0x1fb4   :  { %v3172_v44 = vld [vmem:[%s4795_s16 + $0x90] sm:$0xff] }
0x2049   :  { %v2705_v45 = vpop.f32.mrb[88].mxu1 }
0x204a   :  { %v2711_v38 = vpack.c.bf16 %v2705_v45, %v2657_v35  ;;  %v3614_v46 = vpop.f32.mrb[89].mxu1  ;;  %v3170_v35 = vld [vmem:[%s4795_s16 + $0x80] sm:$0xff]  ;;  %v3173_v45 = vld [vmem:[%s4795_s16 + $0x98] sm:$0xff] }
0x204b   :  { %v2708_v33 = vpop.f32.mrb[90].mxu1  ;;  %v2904_v43 = vpack.c.bf16 %v3171_v32, %v3170_v35  ;;  %v3174_v46 = vld [vmem:[%s4795_s16 + $0xa0] sm:$0xff] }
0x204c   :  { %v3615_v8 = vpop.f32.mrb[91].mxu1  ;;  %3619 = vmatmul.mubr.msk.bf16.vlgmr.msra.gmra.mrb[84].mxu0 %vm273_vm5, %v2711_v38  ;;  %v2905_v38 = vpack.c.bf16 %v3173_v45, %v3172_v44  ;;  %v3175_v33 = vld [vmem:[%s4795_s16 + $0xa8] sm:$0xff] }
0x204d   :  { %3646 = vmatprep.mubr.msk.bf16.mxu0 %vm3808_vm0, %v3807_v3  ;;  %3631 = vmatpush3.bf16.msra.mxu0 %v2904_v43  ;;  %v2906_v8 = vpack.c.bf16 %v3175_v33, %v3174_v46 }
0x204e   :  { %3632 = vmatprep.subr.bf16.mxu0 %v3807_v3 }
0x2051   :  { %3633 = vmatpush3.bf16.msra.mxu0 %v2905_v38 }
0x2052   :  { %3634 = vmatprep.subr.bf16.mxu0 %v3807_v3 }
0x2055   :  { %3635 = vmatpush3.bf16.msra.mxu0 %v2906_v8  ;;  %v3011_v8 = vsel %vm168_vm4, %v3936_v7, 0  ;;  %v3023_v7 = vsel %vm168_vm4, %v3977_v18, 0  ;;  %v3026_v18 = vsel %vm168_vm4, %v3987_v21, 0 }
0x2056   :  { %3636 = vmatprep.subr.bf16.mxu0 %v3807_v3 }
0x211f   :  { %v2753_v39 = vpop.f32.mrb[84].mxu0 }
0x2120   :  { %v2760_v28 = vadd.f32 %v2753_v39, %v4597_v23  ;;  %v3620_v30 = vpop.f32.mrb[85].mxu0  ;;  %v3176_v39 = vld [vmem:[%s4795_s16 + $0xb0] sm:$0xff] }
0x2121   :  { %v2756_v49 = vpop.f32.mrb[86].mxu0 }
0x2122   :  { %v2762_v41 = vadd.f32 %v2760_v28, %v4384_v5  ;;  %v2761_v50 = vadd.f32 %v2756_v49, %v4600_v56  ;;  %v3621_v51 = vpop.f32.mrb[87].mxu0  ;;  %v3177_v28 = vld [vmem:[%s4795_s16 + $0xb8] sm:$0xff]  ;;  %v3179_v49 = vld [vmem:[%s4795_s16 + $0xc8] sm:$0xff] }
0x2123   :  { %v2907_v30 = vpack.c.bf16 %v3177_v28, %v3176_v39  ;;  %v3181_v51 = vld [vmem:[%s4795_s16 + $0xd8] sm:$0xff]  ;;  %v3020_v39 = vsel %vm168_vm4, %v3967_v15, 0 }
0x2124   :  { %v4634_v52 = vadd.f32 %v3161_v48, %v2762_v41  ;;  %v2763_v53 = vadd.f32 %v2761_v50, %v4387_v11  ;;  %v3180_v50 = vld [vmem:[%s4795_s16 + $0xd0] sm:$0xff] }
0x2125   :  { %3637 = vmatpush3.bf16.msra.mxu0 %v2907_v30 }
0x2126   :  { %v4637_v54 = vadd.f32 %v3161_v48, %v2763_v53  ;;  %v2773_v23 = vsel %vm168_vm4, %v4634_v52, 0.0  ;;  %v3178_v48 = vld [vmem:[%s4795_s16 + $0xc0] sm:$0xff]  ;;  %3638 = vmatprep.subr.bf16.mxu0 %v3807_v3  ;;  %v2909_v53 = vpack.c.bf16 %v3181_v51, %v3180_v50 }
0x2127   :  { %2774 = vadd.xlane.f32.xlu1 %v2773_v23  ;;  %v2908_v41 = vpack.c.bf16 %v3179_v49, %v3178_v48  ;;  %v3182_v23 = vld [vmem:[%s4795_s16 + $0xe0] sm:$0xff] }
0x2128   :  { %v2776_v55 = vsel %vm168_vm4, %v4637_v54, 0.0 }
0x2129   :  { %2777 = vadd.xlane.f32.xlu0 %v2776_v55  ;;  %3639 = vmatpush3.bf16.msra.mxu0 %v2908_v41  ;;  %v3183_v55 = vld [vmem:[%s4795_s16 + $0xe8] sm:$0xff] }
0x212a   :  { %3640 = vmatprep.subr.bf16.mxu0 %v3807_v3 }
0x212d   :  { %3641 = vmatpush3.bf16.msra.mxu0 %v2909_v53  ;;  %v3029_v53 = vsel %vm168_vm4, %v3997_v24, 0  ;;  %v3187_v24 = vld [vmem:[%s4783_s4] ss:$0 sm:$0xff]  ;;  %s3782_s4 = scalar_lea.vmem %s3083_s21, 256 }
0x212e   :  { %3642 = vmatprep.subr.bf16.mxu0 %v3807_v3  ;;  %p3783_p0 = scmp.ne.s32.totalorder %s3083_s21, %s3782_s4  ;;  %p3788_p2 = scmp.lt.s32.totalorder %s3782_s4, %s3782_s4 }
0x2130   :  { %p3789_p3 = por %p3788_p2, %p3787_p1 }
0x2132   :  { %p3790_p4 = pnand %p3789_p3, %p3783_p0 }
0x21b4   :  { %v2775_v57 = vpop.xlane.xlu1 %2774 }
0x21b5   :  { %v2779_v29 = vmul.f32 0.03125, %v2775_v57  ;;  %v2910_v57 = vpack.c.bf16 %v3183_v55, %v3182_v23  ;;  %v3032_v23 = vsel %vm168_vm4, %v4007_v27, 0  ;;  %v3188_v27 = vld [vmem:[%s4817_s19] ss:$0 sm:$0xff] }
0x21b6   :  { %v2778_v5 = vpop.xlane.xlu0 %2777 }
0x21b7   :  { %v2781_v56 = vsub.f32 %v4634_v52, %v2779_v29  ;;  %v2780_v60 = vmul.f32 0.03125, %v2778_v5  ;;  %v3184_v29 = vld [vmem:[%s4795_s16 + $0xf0] sm:$0xff]  ;;  %v3185_v5 = vld [vmem:[%s4795_s16 + $0xf8] sm:$0xff]  ;;  %3643 = vmatpush3.bf16.msra.mxu0 %v2910_v57 }
0x21b8   :  { %3644 = vmatprep.subr.bf16.mxu0 %v3807_v3 }
0x21b9   :  { %v2782_v58 = vsub.f32 %v4637_v54, %v2780_v60  ;;  %v2783_v62 = vmul.f32 %v2781_v56, %v2781_v56  ;;  %v3168_v60 = vld [vmem:[%s4794_s15 + $0x1] ss:$0 sm:$0xff] }
0x21bb   :  { %v2785_v11 = vsel %vm168_vm4, %v2783_v62, 0.0  ;;  %v2784_v63 = vmul.f32 %v2782_v58, %v2782_v58 }
0x21bc   :  { %2786 = vadd.xlane.f32.xlu0 %v2785_v11 }
0x21bd   :  { %v2788_v0 = vsel %vm168_vm4, %v2784_v63, 0.0 }
0x21be   :  { %2789 = vadd.xlane.f32.xlu1 %v2788_v0 }
0x2249   :  { %v2787_v13 = vpop.xlane.xlu0 %2786 }
0x224a   :  { %v2791_v14 = vmul.f32 0.03125, %v2787_v13 }
0x224b   :  { %v2790_v16 = vpop.xlane.xlu1 %2789 }
0x224c   :  { %v2793_v47 = vadd.f32 1e-05, %v2791_v14  ;;  %v2792_v17 = vmul.f32 0.03125, %v2790_v16 }
0x224e   :  { %3770 = vrsqrt.f32 %v2793_v47  ;;  %v2794_v26 = vadd.f32 1e-05, %v2792_v17 }
0x2250   :  { %3772 = vrsqrt.f32 %v2794_v26 }
0x2258   :  { %v3771_v19 = vpop.eup %3770 }
0x2259   :  { %v2797_v59 = vmul.f32 %v3771_v19, %v2781_v56  ;;  %v2911_v56 = vpack.c.bf16 %v3185_v5, %v3184_v29 }
0x225a   :  { %v3773_v22 = vpop.eup %3772 }
0x225b   :  { %v2803_v34 = vmul.f32 %v3162_v20, %v2797_v59  ;;  %v2798_v31 = vmul.f32 %v3773_v22, %v2782_v58  ;;  %3645 = vmatpush3.bf16.msra.mxu0 %v2911_v56 }
0x225d   :  { %v2804_v36 = vmul.f32 %v3162_v20, %v2798_v31  ;;  %v2809_v37 = vadd.f32 %v3163_v25, %v2803_v34 }
0x225f   :  { %v2810_v61 = vadd.f32 %v3163_v25, %v2804_v36 }
0x2261   :  { %v2816_v42 = vpack.c.bf16 %v2810_v61, %v2809_v37  ;;  %v3186_v61 = vld [vmem:[%s4796_s17 + $0x1] ss:$0 sm:$0xff] }
0x2263   :  { %3627 = vmatmul.mubr.msk.bf16.vlgmr.msra.gmra.mrb[92].mxu1 %vm168_vm4, %v2816_v42 }
0x2264   :  { %3666 = vmatprep.mubr.msk.bf16.mxu1 %vm3808_vm0, %v3807_v3  ;;  %3651 = vmatpush3.bf16.xpose.msra.mxu1 %v3011_v8 }
0x2265   :  { %3652 = vmatprep.subr.bf16.mxu1 %v3807_v3 }
0x2336   :  { %v2861_v58 = vpop.f32.mrb[92].mxu1 }
0x2337   :  { %v2862_v62 = vadd.f32 %v3168_v60, %v2861_v58  ;;  %v3628_v11 = vpop.f32.mrb[93].mxu1 }
0x2338   :  { %v2864_v63 = vpop.f32.mrb[94].mxu1 }
0x2339   :  { %v2870_v0 = vmul.f32 0.044715, %v2862_v62  ;;  %v2865_v1 = vadd.f32 %v3168_v60, %v2864_v63  ;;  %v3629_v2 = vpop.f32.mrb[95].mxu1  ;;  %v2868_v59 = vmul.f32 0.5, %v2862_v62 }
0x233b   :  { %v2872_v4 = vmul.f32 %v2870_v0, %v2862_v62  ;;  %v2871_v40 = vmul.f32 0.044715, %v2865_v1  ;;  %v2869_v22 = vmul.f32 0.5, %v2865_v1 }
0x233d   :  { %v2874_v6 = vmul.f32 %v2872_v4, %v2862_v62  ;;  %v2873_v10 = vmul.f32 %v2871_v40, %v2865_v1 }
0x233f   :  { %v2876_v13 = vadd.f32 %v2874_v6, %v2862_v62  ;;  %v2875_v14 = vmul.f32 %v2873_v10, %v2865_v1 }
0x2341   :  { %v2878_v16 = vmul.f32 0.7978846, %v2876_v13  ;;  %v2877_v47 = vadd.f32 %v2875_v14, %v2865_v1 }
0x2343   :  { %3774 = vtanh.f32 %v2878_v16  ;;  %v2879_v17 = vmul.f32 0.7978846, %v2877_v47 }
0x2345   :  { %3776 = vtanh.f32 %v2879_v17 }
0x234d   :  { %v3775_v26 = vpop.eup %3774 }
0x234e   :  { %v2882_v19 = vadd.f32 1.0, %v3775_v26 }
0x234f   :  { %v3777_v20 = vpop.eup %3776 }
0x2350   :  { %v2883_v34 = vadd.f32 1.0, %v3777_v20  ;;  %v2884_v31 = vmul.f32 %v2882_v19, %v2868_v59 }
0x2352   :  { %v2885_v25 = vmul.f32 %v2883_v34, %v2869_v22 }
0x2354   :  { %v2903_v36 = vpack.c.bf16 %v2885_v25, %v2884_v31 }
0x2356   :  { %3647 = vmatmul.mubr.bf16.vlgmr.msra.gmra.mrb[88].mxu0 %v2903_v36 }
0x2429   :  { %v2946_v37 = vpop.f32.mrb[88].mxu0 }
0x242a   :  { %v2953_v42 = vadd.f32 %v2946_v37, %v4634_v52  ;;  %v3648_v35 = vpop.f32.mrb[89].mxu0  ;;  %v3014_v52 = vsel %vm168_vm4, %v3943_v9, 0 }
0x242b   :  { %v2949_v32 = vpop.f32.mrb[90].mxu0  ;;  %3653 = vmatpush3.bf16.xpose.msra.mxu1 %v3014_v52 }
0x242c   :  { %v2960_v43 = vadd.f32 %v3186_v61, %v2953_v42  ;;  %v2954_v44 = vadd.f32 %v2949_v32, %v4637_v54  ;;  %v3649_v45 = vpop.f32.mrb[91].mxu0  ;;  %3654 = vmatprep.subr.bf16.mxu1 %v3807_v3  ;;  %v3017_v54 = vsel %vm168_vm4, %v3957_v12, 0 }
0x242e   :  { %v2964_v38 = vsel %vm168_vm4, %v2960_v43, 0.0  ;;  %v2961_v46 = vadd.f32 %v3186_v61, %v2954_v44 }
0x242f   :  { %2965 = vadd.xlane.f32.xlu0 %v2964_v38 }
0x2430   :  { %v2967_v33 = vsel %vm168_vm4, %v2961_v46, 0.0 }
0x2431   :  { %2968 = vadd.xlane.f32.xlu1 %v2967_v33 }
0x2433   :  { %3655 = vmatpush3.bf16.xpose.msra.mxu1 %v3017_v54 }
0x2434   :  { %3656 = vmatprep.subr.bf16.mxu1 %v3807_v3 }
0x243b   :  { %3657 = vmatpush3.bf16.xpose.msra.mxu1 %v3020_v39 }
0x243c   :  { %3658 = vmatprep.subr.bf16.mxu1 %v3807_v3 }
0x2443   :  { %3659 = vmatpush3.bf16.xpose.msra.mxu1 %v3023_v7 }
0x2444   :  { %3660 = vmatprep.subr.bf16.mxu1 %v3807_v3 }
0x244b   :  { %3661 = vmatpush3.bf16.xpose.msra.mxu1 %v3026_v18 }
0x244c   :  { %3662 = vmatprep.subr.bf16.mxu1 %v3807_v3 }
0x2453   :  { %3663 = vmatpush3.bf16.xpose.msra.mxu1 %v3029_v53 }
0x2454   :  { %3664 = vmatprep.subr.bf16.mxu1 %v3807_v3 }
0x245b   :  { %3665 = vmatpush3.bf16.xpose.msra.mxu1 %v3032_v23 }
0x24bc   :  { %v2966_v9 = vpop.xlane.xlu0 %2965 }
0x24bd   :  { %v2970_v28 = vmul.f32 0.03125, %v2966_v9 }
0x24be   :  { %v2969_v30 = vpop.xlane.xlu1 %2968 }
0x24bf   :  { %v2972_v48 = vsub.f32 %v2960_v43, %v2970_v28  ;;  %v2971_v12 = vmul.f32 0.03125, %v2969_v30 }
0x24c1   :  { %v2973_v49 = vsub.f32 %v2961_v46, %v2971_v12  ;;  %v2974_v41 = vmul.f32 %v2972_v48, %v2972_v48 }
0x24c3   :  { %v2976_v50 = vsel %vm168_vm4, %v2974_v41, 0.0  ;;  %v2975_v51 = vmul.f32 %v2973_v49, %v2973_v49 }
0x24c4   :  { %2977 = vadd.xlane.f32.xlu0 %v2976_v50 }
0x24c5   :  { %v2979_v15 = vsel %vm168_vm4, %v2975_v51, 0.0 }
0x24c6   :  { %2980 = vadd.xlane.f32.xlu1 %v2979_v15 }
0x2551   :  { %v2978_v55 = vpop.xlane.xlu0 %2977 }
0x2552   :  { %v2982_v57 = vmul.f32 0.03125, %v2978_v55 }
0x2553   :  { %v2981_v29 = vpop.xlane.xlu1 %2980 }
0x2554   :  { %v2984_v5 = vadd.f32 1e-05, %v2982_v57  ;;  %v2983_v56 = vmul.f32 0.03125, %v2981_v29 }
0x2556   :  { %3778 = vrsqrt.f32 %v2984_v5  ;;  %v2985_v21 = vadd.f32 1e-05, %v2983_v56 }
0x2558   :  { %3780 = vrsqrt.f32 %v2985_v21 }
0x2560   :  { %v3779_v60 = vpop.eup %3778 }
0x2561   :  { %v2988_v58 = vmul.f32 %v3779_v60, %v2972_v48 }
0x2562   :  { %v3781_v62 = vpop.eup %3780 }
0x2563   :  { %v2996_v3 = vmul.f32 %v3187_v24, %v2988_v58  ;;  %v2989_v11 = vmul.f32 %v3781_v62, %v2973_v49 }
0x2565   :  { %v2997_v63 = vmul.f32 %v3187_v24, %v2989_v11  ;;  %v3004_v0 = vadd.f32 %v3188_v27, %v2996_v3 }
0x2567   :  { %v3005_v1 = vadd.f32 %v3188_v27, %v2997_v63 }
0x2569   :  { %v3006_v2 = vpack.c.bf16 %v3005_v1, %v3004_v0 }
0x256b   :  { %3667 = vmatmul.mubr.msk.bf16.vlgmr.msra.gmra.mrb[96].mxu1 %vm168_vm4, %v3006_v2 }
0x263e   :  { %v3068_v4 = vpop.f32.mrb[96].mxu1 }
0x263f   :  { %3075 = vst [vmem:[#allocation2] sm:$0xff] %v3068_v4  ;;  %v3668_v40 = vpop.f32.mrb[97].mxu1 }
0x2640   :  { %v3071_v6 = vpop.f32.mrb[98].mxu1 }
0x2641   :  { %3076 = vst [vmem:[#allocation2 + $0x8] sm:$0xff] %v3071_v6  ;;  %v3669_v10 = vpop.f32.mrb[99].mxu1 }
0x2642   :  { %3793 = shalt.err (!%p3790_p4)
}
0x2643   :  { %s3794_s22 = scalar_lea.hbm %s4797_s18, 256 }
0x2644   :  { %p3795_p5 = scmp.ne.s32.totalorder %s4797_s18, %s3794_s22  ;;  %p3798_p6 = scmp.lt.u32.totalorder %s3794_s22, %s4797_s18 }
0x2646   :  { %p3800_p7 = pnand %p3798_p6, %p3795_p5 }
0x2648   :  { %3803 = shalt.err (!%p3800_p7)
}
0x2649   :  { %s3823_s5 = smov 128   ;;  %s3824_s0 = smov 8  }
0x264a   :  { %3088 = dma.vmem_to_hbm [thread:$0]  %s3083_s21, 256, %s4797_s18, [#allocation3], %s3823_s5, %s3823_s5, %s3824_s0  }
0x264b   :  { %3804 = dma.done.wait [#allocation3], 256  }
0x264c   :  { %3805 = vsyncadd [#allocation3], 4294967040 }
0x264d   :  { %3092 = vsyncpa [#allocation3], 1 }

</bundles_post_ra>
